<compile_context>
chip_gen: v7x
topology: tpu7x:2x2x1
jax: 0.10.0
libtpu: 0.0.40
codegen_flags: <defaults>
</compile_context>

<pallas_src>
import math
import jax
import jax.numpy as jnp
from jax.experimental import pallas as pl
from jax.experimental.pallas import tpu as pltpu

NUM_HEADS = 4
LN_EPS = 1e-5

LAYER_PARAM_NAMES = ("in_w", "in_b", "out_w", "out_b", "ln1_w", "ln1_b",
                     "ff1_w", "ff1_b", "ff2_w", "ff2_b", "ln2_w", "ln2_b")


def _layernorm(y, w, b):
    mu = jnp.mean(y, axis=-1, keepdims=True)
    var = jnp.mean((y - mu) ** 2, axis=-1, keepdims=True)
    return (y - mu) * jax.lax.rsqrt(var + LN_EPS) * w + b


def _encoder_layer(x, B, S, refs):
    """One post-norm nn.TransformerEncoderLayer (eval mode). x: (B*S, D)."""
    (in_w, in_b, out_w, out_b, ln1_w, ln1_b,
     ff1_w, ff1_b, ff2_w, ff2_b, ln2_w, ln2_b) = refs
    BS, D = x.shape
    H = NUM_HEADS
    hd = D // H

    # ---- fused in-projection (q-scale already folded into in_w / in_b) ----
    qkv = jnp.dot(x, in_w[...], preferred_element_type=jnp.float32) + in_b[...]  # (BS, 3D)
    q = qkv[:, 0 * D:1 * D].reshape(B, S, D)
    k = qkv[:, 1 * D:2 * D].reshape(B, S, D)
    v = qkv[:, 2 * D:3 * D].reshape(B, S, D)

    # ---- head-batched attention: heads stacked on the leading batch axis ----
    def split_heads(t):  # (B, S, D) -> (H*B, S, hd)
        return jnp.concatenate([t[:, :, h * hd:(h + 1) * hd] for h in range(H)], axis=0)

    qs, ks, vs = split_heads(q), split_heads(k), split_heads(v)
    s = jnp.einsum('bqd,bkd->bqk', qs, ks, preferred_element_type=jnp.float32)    # (H*B, S, S)
    s = s - jnp.max(s, axis=-1, keepdims=True)
    p = jnp.exp(s)
    p = p * pl.reciprocal(jnp.sum(p, axis=-1, keepdims=True), approx=True)
    ctx = jnp.einsum('bqk,bkd->bqd', p, vs, preferred_element_type=jnp.float32)   # (H*B, S, hd)

    # merge heads back along the feature (lane) dim, then out-projection
    attn = jnp.concatenate([ctx[h * B:(h + 1) * B] for h in range(H)], axis=-1)   # (B, S, D)
    attn = attn.reshape(BS, D)
    attn = jnp.dot(attn, out_w[...], preferred_element_type=jnp.float32) + out_b[...]

    # ---- add & norm 1 (dropout = identity in eval) ----
    y = _layernorm(x + attn, ln1_w[...], ln1_b[...])

    # ---- feed-forward (relu) ----
    h1 = jnp.maximum(jnp.dot(y, ff1_w[...], preferred_element_type=jnp.float32) + ff1_b[...], 0.0)
    h2 = jnp.dot(h1, ff2_w[...], preferred_element_type=jnp.float32) + ff2_b[...]

    # ---- add & norm 2 ----
    return _layernorm(y + h2, ln2_w[...], ln2_b[...])


def run_fused_encoder(x_emb, params):
    """Single pallas_call: both encoder layers + max-pool over seq + fc."""
    B, S, D = x_emb.shape
    num_layers = len(params["layers"])
    n_lw = len(LAYER_PARAM_NAMES)

    flat_weights = []
    for lp in params["layers"]:
        flat_weights += [lp[name] for name in LAYER_PARAM_NAMES]

    def kernel(*refs):
        x_ref = refs[0]
        fc_w_ref = refs[1 + n_lw * num_layers]
        fc_b_ref = refs[2 + n_lw * num_layers]
        o_ref = refs[3 + n_lw * num_layers]

        x = x_ref[...]                                   # (B*S, D), stays in VMEM throughout
        for l in range(num_layers):
            x = _encoder_layer(x, B, S, refs[1 + n_lw * l: 1 + n_lw * (l + 1)])

        m = jnp.max(x.reshape(B, S, D), axis=1)          # torch.max over dim=1 -> (B, D)
        o_ref[...] = (jnp.dot(m, fc_w_ref[...], preferred_element_type=jnp.float32)
                      + fc_b_ref[...])                   # (B, 1)

    out = pl.pallas_call(
        kernel,
        out_shape=jax.ShapeDtypeStruct((B, 1), jnp.float32),
    )(x_emb.reshape(B * S, D), *flat_weights, params["fc_w"], params["fc_b"])
    return out[:, :, None]                               # unsqueeze(dim=2) -> (B, 1, 1)


def init_params(key, vocab, D, d_ff, num_layers):
    """All linear weights stored pre-transposed as (in, out); q-scale folded into in-proj."""
    H = NUM_HEADS
    hd = D // H
    scale = 1.0 / math.sqrt(hd)

    def normal(k, shape, std=0.02):
        return (std * jax.random.normal(k, shape)).astype(jnp.float32)

    keys = jax.random.split(key, 2 + 6 * num_layers)
    params = {
        "embedding": normal(keys[0], (vocab, D), 1.0),
        "fc_w": normal(keys[1], (D, 1)),                 # (in, out)
        "fc_b": jnp.zeros((1, 1), jnp.float32),
        "layers": [],
    }
    # fold the 1/sqrt(head_dim) attention scale into the q columns of the in-projection
    q_scale = jnp.concatenate([jnp.full((1, D), scale, jnp.float32),
                               jnp.ones((1, 2 * D), jnp.float32)], axis=1)
    for l in range(num_layers):
        k = keys[2 + 6 * l: 2 + 6 * (l + 1)]
        params["layers"].append({
            "in_w": normal(k[0], (D, 3 * D)) * q_scale,          # (in, out), q cols pre-scaled
            "in_b": jnp.zeros((1, 3 * D), jnp.float32) * q_scale,
            "out_w": normal(k[1], (D, D)),
            "out_b": jnp.zeros((1, D), jnp.float32),
            "ln1_w": jnp.ones((1, D), jnp.float32),
            "ln1_b": jnp.zeros((1, D), jnp.float32),
            "ff1_w": normal(k[2], (D, d_ff)),
            "ff1_b": jnp.zeros((1, d_ff), jnp.float32),
            "ff2_w": normal(k[3], (d_ff, D)),
            "ff2_b": jnp.zeros((1, D), jnp.float32),
            "ln2_w": jnp.ones((1, D), jnp.float32),
            "ln2_b": jnp.zeros((1, D), jnp.float32),
        })
    return params


def transformer_encoder(tokens, params):
    # embedding gather is pure glue (no hot compute) -> plain JAX outside the kernel
    x = jnp.take(params["embedding"], tokens, axis=0)    # (B, S, D)
    return run_fused_encoder(x, params)                  # (B, 1, 1)


if __name__ == "__main__":
    key = jax.random.PRNGKey(0)
    VOCAB, HIDDEN, NUM_LAYERS = 100, 32, 2
    D_FF = 2048          # PyTorch default of nn.TransformerEncoderLayer (arg unused in module)
    B, S = 2, 8

    k_tok, k_param = jax.random.split(key)
    tokens = jax.random.randint(k_tok, (B, S), 0, VOCAB, dtype=jnp.int32)
    params = init_params(k_param, VOCAB, HIDDEN, D_FF, NUM_LAYERS)

    out = transformer_encoder(tokens, params)
    out = jax.block_until_ready(out)
    assert out.shape == (B, 1, 1), out.shape
    print("KERNEL_OK")
</pallas_src>

<mosaic_0001>
module attributes {stable_mosaic.version = 11 : i64} {
  func.func @kernel(%arg0: memref<16x32xf32, #tpu.memory_space<vmem>>, %arg1: memref<32x96xf32, #tpu.memory_space<vmem>>, %arg2: memref<1x96xf32, #tpu.memory_space<vmem>>, %arg3: memref<32x32xf32, #tpu.memory_space<vmem>>, %arg4: memref<1x32xf32, #tpu.memory_space<vmem>>, %arg5: memref<1x32xf32, #tpu.memory_space<vmem>>, %arg6: memref<1x32xf32, #tpu.memory_space<vmem>>, %arg7: memref<32x2048xf32, #tpu.memory_space<vmem>>, %arg8: memref<1x2048xf32, #tpu.memory_space<vmem>>, %arg9: memref<2048x32xf32, #tpu.memory_space<vmem>>, %arg10: memref<1x32xf32, #tpu.memory_space<vmem>>, %arg11: memref<1x32xf32, #tpu.memory_space<vmem>>, %arg12: memref<1x32xf32, #tpu.memory_space<vmem>>, %arg13: memref<32x96xf32, #tpu.memory_space<vmem>>, %arg14: memref<1x96xf32, #tpu.memory_space<vmem>>, %arg15: memref<32x32xf32, #tpu.memory_space<vmem>>, %arg16: memref<1x32xf32, #tpu.memory_space<vmem>>, %arg17: memref<1x32xf32, #tpu.memory_space<vmem>>, %arg18: memref<1x32xf32, #tpu.memory_space<vmem>>, %arg19: memref<32x2048xf32, #tpu.memory_space<vmem>>, %arg20: memref<1x2048xf32, #tpu.memory_space<vmem>>, %arg21: memref<2048x32xf32, #tpu.memory_space<vmem>>, %arg22: memref<1x32xf32, #tpu.memory_space<vmem>>, %arg23: memref<1x32xf32, #tpu.memory_space<vmem>>, %arg24: memref<1x32xf32, #tpu.memory_space<vmem>>, %arg25: memref<32x1xf32, #tpu.memory_space<vmem>>, %arg26: memref<1x1xf32, #tpu.memory_space<vmem>>, %arg27: memref<2x1xf32, #tpu.memory_space<vmem>>) attributes {dimension_semantics = [], scalar_prefetch = 0 : i64, scratch_operands = 0 : i64, tpu.core_type = #tpu.core_type<tc>} {
    %c0 = arith.constant 0 : index
    %c0_0 = arith.constant 0 : index
    %0 = vector.load %arg0[%c0, %c0_0] : memref<16x32xf32, #tpu.memory_space<vmem>>, vector<16x32xf32>
    %c0_1 = arith.constant 0 : index
    %c0_2 = arith.constant 0 : index
    %1 = vector.load %arg1[%c0_1, %c0_2] : memref<32x96xf32, #tpu.memory_space<vmem>>, vector<32x96xf32>
    %cst = arith.constant dense<0.000000e+00> : vector<16x96xf32>
    %2 = tpu.matmul %0, %1, %cst {dimension_numbers = #tpu.dot_dimension_numbers<[1], [0], [0], [1], [0, 0, 1, 1], [], []>} : vector<16x32xf32>, vector<32x96xf32>, vector<16x96xf32> -> vector<16x96xf32>
    %c0_3 = arith.constant 0 : index
    %c0_4 = arith.constant 0 : index
    %3 = vector.load %arg2[%c0_3, %c0_4] : memref<1x96xf32, #tpu.memory_space<vmem>>, vector<1x96xf32>
    %4 = vector.broadcast %3 : vector<1x96xf32> to vector<16x96xf32>
    %5 = arith.addf %2, %4 : vector<16x96xf32>
    %6 = vector.extract_strided_slice %5 {offsets = [0, 0], sizes = [16, 32], strides = [1, 1]} : vector<16x96xf32> to vector<16x32xf32>
    %7 = vector.shape_cast %6 : vector<16x32xf32> to vector<2x8x32xf32>
    %8 = vector.extract_strided_slice %5 {offsets = [0, 32], sizes = [16, 32], strides = [1, 1]} : vector<16x96xf32> to vector<16x32xf32>
    %9 = vector.shape_cast %8 : vector<16x32xf32> to vector<2x8x32xf32>
    %10 = vector.extract_strided_slice %5 {offsets = [0, 64], sizes = [16, 32], strides = [1, 1]} : vector<16x96xf32> to vector<16x32xf32>
    %11 = vector.shape_cast %10 : vector<16x32xf32> to vector<2x8x32xf32>
    %12 = vector.extract_strided_slice %7 {offsets = [0, 0, 0], sizes = [2, 8, 8], strides = [1, 1, 1]} : vector<2x8x32xf32> to vector<2x8x8xf32>
    %13 = vector.extract_strided_slice %7 {offsets = [0, 0, 8], sizes = [2, 8, 8], strides = [1, 1, 1]} : vector<2x8x32xf32> to vector<2x8x8xf32>
    %14 = vector.extract_strided_slice %7 {offsets = [0, 0, 16], sizes = [2, 8, 8], strides = [1, 1, 1]} : vector<2x8x32xf32> to vector<2x8x8xf32>
    %15 = vector.extract_strided_slice %7 {offsets = [0, 0, 24], sizes = [2, 8, 8], strides = [1, 1, 1]} : vector<2x8x32xf32> to vector<2x8x8xf32>
    %16 = tpu.concatenate %12, %13, %14, %15 in 0 : vector<2x8x8xf32>, vector<2x8x8xf32>, vector<2x8x8xf32>, vector<2x8x8xf32> -> vector<8x8x8xf32>
    %17 = vector.extract_strided_slice %9 {offsets = [0, 0, 0], sizes = [2, 8, 8], strides = [1, 1, 1]} : vector<2x8x32xf32> to vector<2x8x8xf32>
    %18 = vector.extract_strided_slice %9 {offsets = [0, 0, 8], sizes = [2, 8, 8], strides = [1, 1, 1]} : vector<2x8x32xf32> to vector<2x8x8xf32>
    %19 = vector.extract_strided_slice %9 {offsets = [0, 0, 16], sizes = [2, 8, 8], strides = [1, 1, 1]} : vector<2x8x32xf32> to vector<2x8x8xf32>
    %20 = vector.extract_strided_slice %9 {offsets = [0, 0, 24], sizes = [2, 8, 8], strides = [1, 1, 1]} : vector<2x8x32xf32> to vector<2x8x8xf32>
    %21 = tpu.concatenate %17, %18, %19, %20 in 0 : vector<2x8x8xf32>, vector<2x8x8xf32>, vector<2x8x8xf32>, vector<2x8x8xf32> -> vector<8x8x8xf32>
    %22 = vector.extract_strided_slice %11 {offsets = [0, 0, 0], sizes = [2, 8, 8], strides = [1, 1, 1]} : vector<2x8x32xf32> to vector<2x8x8xf32>
    %23 = vector.extract_strided_slice %11 {offsets = [0, 0, 8], sizes = [2, 8, 8], strides = [1, 1, 1]} : vector<2x8x32xf32> to vector<2x8x8xf32>
    %24 = vector.extract_strided_slice %11 {offsets = [0, 0, 16], sizes = [2, 8, 8], strides = [1, 1, 1]} : vector<2x8x32xf32> to vector<2x8x8xf32>
    %25 = vector.extract_strided_slice %11 {offsets = [0, 0, 24], sizes = [2, 8, 8], strides = [1, 1, 1]} : vector<2x8x32xf32> to vector<2x8x8xf32>
    %26 = tpu.concatenate %22, %23, %24, %25 in 0 : vector<2x8x8xf32>, vector<2x8x8xf32>, vector<2x8x8xf32>, vector<2x8x8xf32> -> vector<8x8x8xf32>
    "tpu.trace_start"() <{level = 10 : i32, message = "bqd,bkd->bqk"}> : () -> ()
    %cst_5 = arith.constant dense<0.000000e+00> : vector<8x8x8xf32>
    %27 = tpu.matmul %16, %21, %cst_5 {dimension_numbers = #tpu.dot_dimension_numbers<[2], [2], [1], [1], [0, 0, 0, 1, 1, 1], [0], [0]>} : vector<8x8x8xf32>, vector<8x8x8xf32>, vector<8x8x8xf32> -> vector<8x8x8xf32>
    "tpu.trace_stop"() : () -> ()
    %cst_6 = arith.constant dense<0xFF800000> : vector<8x8xf32>
    %28 = vector.multi_reduction <maximumf>, %27, %cst_6 [2] : vector<8x8x8xf32> to vector<8x8xf32>
    %29 = vector.shape_cast %28 : vector<8x8xf32> to vector<8x8x1xf32>
    %30 = vector.broadcast %29 : vector<8x8x1xf32> to vector<8x8x8xf32>
    %31 = arith.subf %27, %30 : vector<8x8x8xf32>
    %32 = math.exp %31 : vector<8x8x8xf32>
    %cst_7 = arith.constant dense<0.000000e+00> : vector<8x8xf32>
    %33 = vector.multi_reduction <add>, %32, %cst_7 [2] : vector<8x8x8xf32> to vector<8x8xf32>
    %34 = vector.shape_cast %33 : vector<8x8xf32> to vector<8x8x1xf32>
    %35 = tpu.reciprocal %34 {approx = true} : vector<8x8x1xf32> -> vector<8x8x1xf32>
    %36 = vector.broadcast %35 : vector<8x8x1xf32> to vector<8x8x8xf32>
    %37 = arith.mulf %32, %36 : vector<8x8x8xf32>
    "tpu.trace_start"() <{level = 10 : i32, message = "bqk,bkd->bqd"}> : () -> ()
    %cst_8 = arith.constant dense<0.000000e+00> : vector<8x8x8xf32>
    %38 = tpu.matmul %37, %26, %cst_8 {dimension_numbers = #tpu.dot_dimension_numbers<[2], [1], [1], [2], [0, 0, 0, 1, 1, 2], [0], [0]>} : vector<8x8x8xf32>, vector<8x8x8xf32>, vector<8x8x8xf32> -> vector<8x8x8xf32>
    "tpu.trace_stop"() : () -> ()
    %39 = vector.extract_strided_slice %38 {offsets = [0, 0, 0], sizes = [2, 8, 8], strides = [1, 1, 1]} : vector<8x8x8xf32> to vector<2x8x8xf32>
    %40 = vector.extract_strided_slice %38 {offsets = [2, 0, 0], sizes = [2, 8, 8], strides = [1, 1, 1]} : vector<8x8x8xf32> to vector<2x8x8xf32>
    %41 = vector.extract_strided_slice %38 {offsets = [4, 0, 0], sizes = [2, 8, 8], strides = [1, 1, 1]} : vector<8x8x8xf32> to vector<2x8x8xf32>
    %42 = vector.extract_strided_slice %38 {offsets = [6, 0, 0], sizes = [2, 8, 8], strides = [1, 1, 1]} : vector<8x8x8xf32> to vector<2x8x8xf32>
    %43 = tpu.concatenate %39, %40, %41, %42 in 2 : vector<2x8x8xf32>, vector<2x8x8xf32>, vector<2x8x8xf32>, vector<2x8x8xf32> -> vector<2x8x32xf32>
    %44 = vector.shape_cast %43 : vector<2x8x32xf32> to vector<16x32xf32>
    %c0_9 = arith.constant 0 : index
    %c0_10 = arith.constant 0 : index
    %45 = vector.load %arg3[%c0_9, %c0_10] : memref<32x32xf32, #tpu.memory_space<vmem>>, vector<32x32xf32>
    %cst_11 = arith.constant dense<0.000000e+00> : vector<16x32xf32>
    %46 = tpu.matmul %44, %45, %cst_11 {dimension_numbers = #tpu.dot_dimension_numbers<[1], [0], [0], [1], [0, 0, 1, 1], [], []>} : vector<16x32xf32>, vector<32x32xf32>, vector<16x32xf32> -> vector<16x32xf32>
    %c0_12 = arith.constant 0 : index
    %c0_13 = arith.constant 0 : index
    %47 = vector.load %arg4[%c0_12, %c0_13] : memref<1x32xf32, #tpu.memory_space<vmem>>, vector<1x32xf32>
    %48 = vector.broadcast %47 : vector<1x32xf32> to vector<16x32xf32>
    %49 = arith.addf %46, %48 : vector<16x32xf32>
    %50 = arith.addf %0, %49 : vector<16x32xf32>
    %c0_14 = arith.constant 0 : index
    %c0_15 = arith.constant 0 : index
    %51 = vector.load %arg5[%c0_14, %c0_15] : memref<1x32xf32, #tpu.memory_space<vmem>>, vector<1x32xf32>
    %c0_16 = arith.constant 0 : index
    %c0_17 = arith.constant 0 : index
    %52 = vector.load %arg6[%c0_16, %c0_17] : memref<1x32xf32, #tpu.memory_space<vmem>>, vector<1x32xf32>
    %cst_18 = arith.constant dense<0.000000e+00> : vector<16xf32>
    %53 = vector.multi_reduction <add>, %50, %cst_18 [1] : vector<16x32xf32> to vector<16xf32>
    %54 = vector.shape_cast %53 : vector<16xf32> to vector<16x1xf32>
    %cst_19 = arith.constant 3.200000e+01 : f32
    %55 = vector.broadcast %cst_19 : f32 to vector<16x1xf32>
    %56 = arith.divf %54, %55 : vector<16x1xf32>
    %57 = vector.broadcast %56 : vector<16x1xf32> to vector<16x32xf32>
    %58 = arith.subf %50, %57 : vector<16x32xf32>
    %59 = arith.mulf %58, %58 : vector<16x32xf32>
    %cst_20 = arith.constant dense<0.000000e+00> : vector<16xf32>
    %60 = vector.multi_reduction <add>, %59, %cst_20 [1] : vector<16x32xf32> to vector<16xf32>
    %61 = vector.shape_cast %60 : vector<16xf32> to vector<16x1xf32>
    %cst_21 = arith.constant 3.200000e+01 : f32
    %62 = vector.broadcast %cst_21 : f32 to vector<16x1xf32>
    %63 = arith.divf %61, %62 : vector<16x1xf32>
    %64 = vector.broadcast %56 : vector<16x1xf32> to vector<16x32xf32>
    %65 = arith.subf %50, %64 : vector<16x32xf32>
    %cst_22 = arith.constant 9.99999974E-6 : f32
    %66 = vector.broadcast %cst_22 : f32 to vector<16x1xf32>
    %67 = arith.addf %63, %66 : vector<16x1xf32>
    %68 = math.rsqrt %67 : vector<16x1xf32>
    %69 = vector.broadcast %68 : vector<16x1xf32> to vector<16x32xf32>
    %70 = arith.mulf %65, %69 : vector<16x32xf32>
    %71 = vector.broadcast %51 : vector<1x32xf32> to vector<16x32xf32>
    %72 = arith.mulf %70, %71 : vector<16x32xf32>
    %73 = vector.broadcast %52 : vector<1x32xf32> to vector<16x32xf32>
    %74 = arith.addf %72, %73 : vector<16x32xf32>
    %c0_23 = arith.constant 0 : index
    %c0_24 = arith.constant 0 : index
    %75 = vector.load %arg7[%c0_23, %c0_24] : memref<32x2048xf32, #tpu.memory_space<vmem>>, vector<32x2048xf32>
    %cst_25 = arith.constant dense<0.000000e+00> : vector<16x2048xf32>
    %76 = tpu.matmul %74, %75, %cst_25 {dimension_numbers = #tpu.dot_dimension_numbers<[1], [0], [0], [1], [0, 0, 1, 1], [], []>} : vector<16x32xf32>, vector<32x2048xf32>, vector<16x2048xf32> -> vector<16x2048xf32>
    %c0_26 = arith.constant 0 : index
    %c0_27 = arith.constant 0 : index
    %77 = vector.load %arg8[%c0_26, %c0_27] : memref<1x2048xf32, #tpu.memory_space<vmem>>, vector<1x2048xf32>
    %78 = vector.broadcast %77 : vector<1x2048xf32> to vector<16x2048xf32>
    %79 = arith.addf %76, %78 : vector<16x2048xf32>
    %cst_28 = arith.constant 0.000000e+00 : f32
    %80 = vector.broadcast %cst_28 : f32 to vector<16x2048xf32>
    %81 = arith.maximumf %79, %80 : vector<16x2048xf32>
    %c0_29 = arith.constant 0 : index
    %c0_30 = arith.constant 0 : index
    %82 = vector.load %arg9[%c0_29, %c0_30] : memref<2048x32xf32, #tpu.memory_space<vmem>>, vector<2048x32xf32>
    %cst_31 = arith.constant dense<0.000000e+00> : vector<16x32xf32>
    %83 = tpu.matmul %81, %82, %cst_31 {dimension_numbers = #tpu.dot_dimension_numbers<[1], [0], [0], [1], [0, 0, 1, 1], [], []>} : vector<16x2048xf32>, vector<2048x32xf32>, vector<16x32xf32> -> vector<16x32xf32>
    %c0_32 = arith.constant 0 : index
    %c0_33 = arith.constant 0 : index
    %84 = vector.load %arg10[%c0_32, %c0_33] : memref<1x32xf32, #tpu.memory_space<vmem>>, vector<1x32xf32>
    %85 = vector.broadcast %84 : vector<1x32xf32> to vector<16x32xf32>
    %86 = arith.addf %83, %85 : vector<16x32xf32>
    %87 = arith.addf %74, %86 : vector<16x32xf32>
    %c0_34 = arith.constant 0 : index
    %c0_35 = arith.constant 0 : index
    %88 = vector.load %arg11[%c0_34, %c0_35] : memref<1x32xf32, #tpu.memory_space<vmem>>, vector<1x32xf32>
    %c0_36 = arith.constant 0 : index
    %c0_37 = arith.constant 0 : index
    %89 = vector.load %arg12[%c0_36, %c0_37] : memref<1x32xf32, #tpu.memory_space<vmem>>, vector<1x32xf32>
    %cst_38 = arith.constant dense<0.000000e+00> : vector<16xf32>
    %90 = vector.multi_reduction <add>, %87, %cst_38 [1] : vector<16x32xf32> to vector<16xf32>
    %91 = vector.shape_cast %90 : vector<16xf32> to vector<16x1xf32>
    %cst_39 = arith.constant 3.200000e+01 : f32
    %92 = vector.broadcast %cst_39 : f32 to vector<16x1xf32>
    %93 = arith.divf %91, %92 : vector<16x1xf32>
    %94 = vector.broadcast %93 : vector<16x1xf32> to vector<16x32xf32>
    %95 = arith.subf %87, %94 : vector<16x32xf32>
    %96 = arith.mulf %95, %95 : vector<16x32xf32>
    %cst_40 = arith.constant dense<0.000000e+00> : vector<16xf32>
    %97 = vector.multi_reduction <add>, %96, %cst_40 [1] : vector<16x32xf32> to vector<16xf32>
    %98 = vector.shape_cast %97 : vector<16xf32> to vector<16x1xf32>
    %cst_41 = arith.constant 3.200000e+01 : f32
    %99 = vector.broadcast %cst_41 : f32 to vector<16x1xf32>
    %100 = arith.divf %98, %99 : vector<16x1xf32>
    %101 = vector.broadcast %93 : vector<16x1xf32> to vector<16x32xf32>
    %102 = arith.subf %87, %101 : vector<16x32xf32>
    %cst_42 = arith.constant 9.99999974E-6 : f32
    %103 = vector.broadcast %cst_42 : f32 to vector<16x1xf32>
    %104 = arith.addf %100, %103 : vector<16x1xf32>
    %105 = math.rsqrt %104 : vector<16x1xf32>
    %106 = vector.broadcast %105 : vector<16x1xf32> to vector<16x32xf32>
    %107 = arith.mulf %102, %106 : vector<16x32xf32>
    %108 = vector.broadcast %88 : vector<1x32xf32> to vector<16x32xf32>
    %109 = arith.mulf %107, %108 : vector<16x32xf32>
    %110 = vector.broadcast %89 : vector<1x32xf32> to vector<16x32xf32>
    %111 = arith.addf %109, %110 : vector<16x32xf32>
    %c0_43 = arith.constant 0 : index
    %c0_44 = arith.constant 0 : index
    %112 = vector.load %arg13[%c0_43, %c0_44] : memref<32x96xf32, #tpu.memory_space<vmem>>, vector<32x96xf32>
    %cst_45 = arith.constant dense<0.000000e+00> : vector<16x96xf32>
    %113 = tpu.matmul %111, %112, %cst_45 {dimension_numbers = #tpu.dot_dimension_numbers<[1], [0], [0], [1], [0, 0, 1, 1], [], []>} : vector<16x32xf32>, vector<32x96xf32>, vector<16x96xf32> -> vector<16x96xf32>
    %c0_46 = arith.constant 0 : index
    %c0_47 = arith.constant 0 : index
    %114 = vector.load %arg14[%c0_46, %c0_47] : memref<1x96xf32, #tpu.memory_space<vmem>>, vector<1x96xf32>
    %115 = vector.broadcast %114 : vector<1x96xf32> to vector<16x96xf32>
    %116 = arith.addf %113, %115 : vector<16x96xf32>
    %117 = vector.extract_strided_slice %116 {offsets = [0, 0], sizes = [16, 32], strides = [1, 1]} : vector<16x96xf32> to vector<16x32xf32>
    %118 = vector.shape_cast %117 : vector<16x32xf32> to vector<2x8x32xf32>
    %119 = vector.extract_strided_slice %116 {offsets = [0, 32], sizes = [16, 32], strides = [1, 1]} : vector<16x96xf32> to vector<16x32xf32>
    %120 = vector.shape_cast %119 : vector<16x32xf32> to vector<2x8x32xf32>
    %121 = vector.extract_strided_slice %116 {offsets = [0, 64], sizes = [16, 32], strides = [1, 1]} : vector<16x96xf32> to vector<16x32xf32>
    %122 = vector.shape_cast %121 : vector<16x32xf32> to vector<2x8x32xf32>
    %123 = vector.extract_strided_slice %118 {offsets = [0, 0, 0], sizes = [2, 8, 8], strides = [1, 1, 1]} : vector<2x8x32xf32> to vector<2x8x8xf32>
    %124 = vector.extract_strided_slice %118 {offsets = [0, 0, 8], sizes = [2, 8, 8], strides = [1, 1, 1]} : vector<2x8x32xf32> to vector<2x8x8xf32>
    %125 = vector.extract_strided_slice %118 {offsets = [0, 0, 16], sizes = [2, 8, 8], strides = [1, 1, 1]} : vector<2x8x32xf32> to vector<2x8x8xf32>
    %126 = vector.extract_strided_slice %118 {offsets = [0, 0, 24], sizes = [2, 8, 8], strides = [1, 1, 1]} : vector<2x8x32xf32> to vector<2x8x8xf32>
    %127 = tpu.concatenate %123, %124, %125, %126 in 0 : vector<2x8x8xf32>, vector<2x8x8xf32>, vector<2x8x8xf32>, vector<2x8x8xf32> -> vector<8x8x8xf32>
    %128 = vector.extract_strided_slice %120 {offsets = [0, 0, 0], sizes = [2, 8, 8], strides = [1, 1, 1]} : vector<2x8x32xf32> to vector<2x8x8xf32>
    %129 = vector.extract_strided_slice %120 {offsets = [0, 0, 8], sizes = [2, 8, 8], strides = [1, 1, 1]} : vector<2x8x32xf32> to vector<2x8x8xf32>
    %130 = vector.extract_strided_slice %120 {offsets = [0, 0, 16], sizes = [2, 8, 8], strides = [1, 1, 1]} : vector<2x8x32xf32> to vector<2x8x8xf32>
    %131 = vector.extract_strided_slice %120 {offsets = [0, 0, 24], sizes = [2, 8, 8], strides = [1, 1, 1]} : vector<2x8x32xf32> to vector<2x8x8xf32>
    %132 = tpu.concatenate %128, %129, %130, %131 in 0 : vector<2x8x8xf32>, vector<2x8x8xf32>, vector<2x8x8xf32>, vector<2x8x8xf32> -> vector<8x8x8xf32>
    %133 = vector.extract_strided_slice %122 {offsets = [0, 0, 0], sizes = [2, 8, 8], strides = [1, 1, 1]} : vector<2x8x32xf32> to vector<2x8x8xf32>
    %134 = vector.extract_strided_slice %122 {offsets = [0, 0, 8], sizes = [2, 8, 8], strides = [1, 1, 1]} : vector<2x8x32xf32> to vector<2x8x8xf32>
    %135 = vector.extract_strided_slice %122 {offsets = [0, 0, 16], sizes = [2, 8, 8], strides = [1, 1, 1]} : vector<2x8x32xf32> to vector<2x8x8xf32>
    %136 = vector.extract_strided_slice %122 {offsets = [0, 0, 24], sizes = [2, 8, 8], strides = [1, 1, 1]} : vector<2x8x32xf32> to vector<2x8x8xf32>
    %137 = tpu.concatenate %133, %134, %135, %136 in 0 : vector<2x8x8xf32>, vector<2x8x8xf32>, vector<2x8x8xf32>, vector<2x8x8xf32> -> vector<8x8x8xf32>
    "tpu.trace_start"() <{level = 10 : i32, message = "bqd,bkd->bqk"}> : () -> ()
    %cst_48 = arith.constant dense<0.000000e+00> : vector<8x8x8xf32>
    %138 = tpu.matmul %127, %132, %cst_48 {dimension_numbers = #tpu.dot_dimension_numbers<[2], [2], [1], [1], [0, 0, 0, 1, 1, 1], [0], [0]>} : vector<8x8x8xf32>, vector<8x8x8xf32>, vector<8x8x8xf32> -> vector<8x8x8xf32>
    "tpu.trace_stop"() : () -> ()
    %cst_49 = arith.constant dense<0xFF800000> : vector<8x8xf32>
    %139 = vector.multi_reduction <maximumf>, %138, %cst_49 [2] : vector<8x8x8xf32> to vector<8x8xf32>
    %140 = vector.shape_cast %139 : vector<8x8xf32> to vector<8x8x1xf32>
    %141 = vector.broadcast %140 : vector<8x8x1xf32> to vector<8x8x8xf32>
    %142 = arith.subf %138, %141 : vector<8x8x8xf32>
    %143 = math.exp %142 : vector<8x8x8xf32>
    %cst_50 = arith.constant dense<0.000000e+00> : vector<8x8xf32>
    %144 = vector.multi_reduction <add>, %143, %cst_50 [2] : vector<8x8x8xf32> to vector<8x8xf32>
    %145 = vector.shape_cast %144 : vector<8x8xf32> to vector<8x8x1xf32>
    %146 = tpu.reciprocal %145 {approx = true} : vector<8x8x1xf32> -> vector<8x8x1xf32>
    %147 = vector.broadcast %146 : vector<8x8x1xf32> to vector<8x8x8xf32>
    %148 = arith.mulf %143, %147 : vector<8x8x8xf32>
    "tpu.trace_start"() <{level = 10 : i32, message = "bqk,bkd->bqd"}> : () -> ()
    %cst_51 = arith.constant dense<0.000000e+00> : vector<8x8x8xf32>
    %149 = tpu.matmul %148, %137, %cst_51 {dimension_numbers = #tpu.dot_dimension_numbers<[2], [1], [1], [2], [0, 0, 0, 1, 1, 2], [0], [0]>} : vector<8x8x8xf32>, vector<8x8x8xf32>, vector<8x8x8xf32> -> vector<8x8x8xf32>
    "tpu.trace_stop"() : () -> ()
    %150 = vector.extract_strided_slice %149 {offsets = [0, 0, 0], sizes = [2, 8, 8], strides = [1, 1, 1]} : vector<8x8x8xf32> to vector<2x8x8xf32>
    %151 = vector.extract_strided_slice %149 {offsets = [2, 0, 0], sizes = [2, 8, 8], strides = [1, 1, 1]} : vector<8x8x8xf32> to vector<2x8x8xf32>
    %152 = vector.extract_strided_slice %149 {offsets = [4, 0, 0], sizes = [2, 8, 8], strides = [1, 1, 1]} : vector<8x8x8xf32> to vector<2x8x8xf32>
    %153 = vector.extract_strided_slice %149 {offsets = [6, 0, 0], sizes = [2, 8, 8], strides = [1, 1, 1]} : vector<8x8x8xf32> to vector<2x8x8xf32>
    %154 = tpu.concatenate %150, %151, %152, %153 in 2 : vector<2x8x8xf32>, vector<2x8x8xf32>, vector<2x8x8xf32>, vector<2x8x8xf32> -> vector<2x8x32xf32>
    %155 = vector.shape_cast %154 : vector<2x8x32xf32> to vector<16x32xf32>
    %c0_52 = arith.constant 0 : index
    %c0_53 = arith.constant 0 : index
    %156 = vector.load %arg15[%c0_52, %c0_53] : memref<32x32xf32, #tpu.memory_space<vmem>>, vector<32x32xf32>
    %cst_54 = arith.constant dense<0.000000e+00> : vector<16x32xf32>
    %157 = tpu.matmul %155, %156, %cst_54 {dimension_numbers = #tpu.dot_dimension_numbers<[1], [0], [0], [1], [0, 0, 1, 1], [], []>} : vector<16x32xf32>, vector<32x32xf32>, vector<16x32xf32> -> vector<16x32xf32>
    %c0_55 = arith.constant 0 : index
    %c0_56 = arith.constant 0 : index
    %158 = vector.load %arg16[%c0_55, %c0_56] : memref<1x32xf32, #tpu.memory_space<vmem>>, vector<1x32xf32>
    %159 = vector.broadcast %158 : vector<1x32xf32> to vector<16x32xf32>
    %160 = arith.addf %157, %159 : vector<16x32xf32>
    %161 = arith.addf %111, %160 : vector<16x32xf32>
    %c0_57 = arith.constant 0 : index
    %c0_58 = arith.constant 0 : index
    %162 = vector.load %arg17[%c0_57, %c0_58] : memref<1x32xf32, #tpu.memory_space<vmem>>, vector<1x32xf32>
    %c0_59 = arith.constant 0 : index
    %c0_60 = arith.constant 0 : index
    %163 = vector.load %arg18[%c0_59, %c0_60] : memref<1x32xf32, #tpu.memory_space<vmem>>, vector<1x32xf32>
    %cst_61 = arith.constant dense<0.000000e+00> : vector<16xf32>
    %164 = vector.multi_reduction <add>, %161, %cst_61 [1] : vector<16x32xf32> to vector<16xf32>
    %165 = vector.shape_cast %164 : vector<16xf32> to vector<16x1xf32>
    %cst_62 = arith.constant 3.200000e+01 : f32
    %166 = vector.broadcast %cst_62 : f32 to vector<16x1xf32>
    %167 = arith.divf %165, %166 : vector<16x1xf32>
    %168 = vector.broadcast %167 : vector<16x1xf32> to vector<16x32xf32>
    %169 = arith.subf %161, %168 : vector<16x32xf32>
    %170 = arith.mulf %169, %169 : vector<16x32xf32>
    %cst_63 = arith.constant dense<0.000000e+00> : vector<16xf32>
    %171 = vector.multi_reduction <add>, %170, %cst_63 [1] : vector<16x32xf32> to vector<16xf32>
    %172 = vector.shape_cast %171 : vector<16xf32> to vector<16x1xf32>
    %cst_64 = arith.constant 3.200000e+01 : f32
    %173 = vector.broadcast %cst_64 : f32 to vector<16x1xf32>
    %174 = arith.divf %172, %173 : vector<16x1xf32>
    %175 = vector.broadcast %167 : vector<16x1xf32> to vector<16x32xf32>
    %176 = arith.subf %161, %175 : vector<16x32xf32>
    %cst_65 = arith.constant 9.99999974E-6 : f32
    %177 = vector.broadcast %cst_65 : f32 to vector<16x1xf32>
    %178 = arith.addf %174, %177 : vector<16x1xf32>
    %179 = math.rsqrt %178 : vector<16x1xf32>
    %180 = vector.broadcast %179 : vector<16x1xf32> to vector<16x32xf32>
    %181 = arith.mulf %176, %180 : vector<16x32xf32>
    %182 = vector.broadcast %162 : vector<1x32xf32> to vector<16x32xf32>
    %183 = arith.mulf %181, %182 : vector<16x32xf32>
    %184 = vector.broadcast %163 : vector<1x32xf32> to vector<16x32xf32>
    %185 = arith.addf %183, %184 : vector<16x32xf32>
    %c0_66 = arith.constant 0 : index
    %c0_67 = arith.constant 0 : index
    %186 = vector.load %arg19[%c0_66, %c0_67] : memref<32x2048xf32, #tpu.memory_space<vmem>>, vector<32x2048xf32>
    %cst_68 = arith.constant dense<0.000000e+00> : vector<16x2048xf32>
    %187 = tpu.matmul %185, %186, %cst_68 {dimension_numbers = #tpu.dot_dimension_numbers<[1], [0], [0], [1], [0, 0, 1, 1], [], []>} : vector<16x32xf32>, vector<32x2048xf32>, vector<16x2048xf32> -> vector<16x2048xf32>
    %c0_69 = arith.constant 0 : index
    %c0_70 = arith.constant 0 : index
    %188 = vector.load %arg20[%c0_69, %c0_70] : memref<1x2048xf32, #tpu.memory_space<vmem>>, vector<1x2048xf32>
    %189 = vector.broadcast %188 : vector<1x2048xf32> to vector<16x2048xf32>
    %190 = arith.addf %187, %189 : vector<16x2048xf32>
    %cst_71 = arith.constant 0.000000e+00 : f32
    %191 = vector.broadcast %cst_71 : f32 to vector<16x2048xf32>
    %192 = arith.maximumf %190, %191 : vector<16x2048xf32>
    %c0_72 = arith.constant 0 : index
    %c0_73 = arith.constant 0 : index
    %193 = vector.load %arg21[%c0_72, %c0_73] : memref<2048x32xf32, #tpu.memory_space<vmem>>, vector<2048x32xf32>
    %cst_74 = arith.constant dense<0.000000e+00> : vector<16x32xf32>
    %194 = tpu.matmul %192, %193, %cst_74 {dimension_numbers = #tpu.dot_dimension_numbers<[1], [0], [0], [1], [0, 0, 1, 1], [], []>} : vector<16x2048xf32>, vector<2048x32xf32>, vector<16x32xf32> -> vector<16x32xf32>
    %c0_75 = arith.constant 0 : index
    %c0_76 = arith.constant 0 : index
    %195 = vector.load %arg22[%c0_75, %c0_76] : memref<1x32xf32, #tpu.memory_space<vmem>>, vector<1x32xf32>
    %196 = vector.broadcast %195 : vector<1x32xf32> to vector<16x32xf32>
    %197 = arith.addf %194, %196 : vector<16x32xf32>
    %198 = arith.addf %185, %197 : vector<16x32xf32>
    %c0_77 = arith.constant 0 : index
    %c0_78 = arith.constant 0 : index
    %199 = vector.load %arg23[%c0_77, %c0_78] : memref<1x32xf32, #tpu.memory_space<vmem>>, vector<1x32xf32>
    %c0_79 = arith.constant 0 : index
    %c0_80 = arith.constant 0 : index
    %200 = vector.load %arg24[%c0_79, %c0_80] : memref<1x32xf32, #tpu.memory_space<vmem>>, vector<1x32xf32>
    %cst_81 = arith.constant dense<0.000000e+00> : vector<16xf32>
    %201 = vector.multi_reduction <add>, %198, %cst_81 [1] : vector<16x32xf32> to vector<16xf32>
    %202 = vector.shape_cast %201 : vector<16xf32> to vector<16x1xf32>
    %cst_82 = arith.constant 3.200000e+01 : f32
    %203 = vector.broadcast %cst_82 : f32 to vector<16x1xf32>
    %204 = arith.divf %202, %203 : vector<16x1xf32>
    %205 = vector.broadcast %204 : vector<16x1xf32> to vector<16x32xf32>
    %206 = arith.subf %198, %205 : vector<16x32xf32>
    %207 = arith.mulf %206, %206 : vector<16x32xf32>
    %cst_83 = arith.constant dense<0.000000e+00> : vector<16xf32>
    %208 = vector.multi_reduction <add>, %207, %cst_83 [1] : vector<16x32xf32> to vector<16xf32>
    %209 = vector.shape_cast %208 : vector<16xf32> to vector<16x1xf32>
    %cst_84 = arith.constant 3.200000e+01 : f32
    %210 = vector.broadcast %cst_84 : f32 to vector<16x1xf32>
    %211 = arith.divf %209, %210 : vector<16x1xf32>
    %212 = vector.broadcast %204 : vector<16x1xf32> to vector<16x32xf32>
    %213 = arith.subf %198, %212 : vector<16x32xf32>
    %cst_85 = arith.constant 9.99999974E-6 : f32
    %214 = vector.broadcast %cst_85 : f32 to vector<16x1xf32>
    %215 = arith.addf %211, %214 : vector<16x1xf32>
    %216 = math.rsqrt %215 : vector<16x1xf32>
    %217 = vector.broadcast %216 : vector<16x1xf32> to vector<16x32xf32>
    %218 = arith.mulf %213, %217 : vector<16x32xf32>
    %219 = vector.broadcast %199 : vector<1x32xf32> to vector<16x32xf32>
    %220 = arith.mulf %218, %219 : vector<16x32xf32>
    %221 = vector.broadcast %200 : vector<1x32xf32> to vector<16x32xf32>
    %222 = arith.addf %220, %221 : vector<16x32xf32>
    %223 = vector.shape_cast %222 : vector<16x32xf32> to vector<2x8x32xf32>
    %cst_86 = arith.constant dense<0xFF800000> : vector<2x32xf32>
    %224 = vector.multi_reduction <maximumf>, %223, %cst_86 [1] : vector<2x8x32xf32> to vector<2x32xf32>
    %c0_87 = arith.constant 0 : index
    %c0_88 = arith.constant 0 : index
    %225 = vector.load %arg25[%c0_87, %c0_88] : memref<32x1xf32, #tpu.memory_space<vmem>>, vector<32x1xf32>
    %cst_89 = arith.constant dense<0.000000e+00> : vector<2x1xf32>
    %226 = tpu.matmul %224, %225, %cst_89 {dimension_numbers = #tpu.dot_dimension_numbers<[1], [0], [0], [1], [0, 0, 1, 1], [], []>} : vector<2x32xf32>, vector<32x1xf32>, vector<2x1xf32> -> vector<2x1xf32>
    %c0_90 = arith.constant 0 : index
    %c0_91 = arith.constant 0 : index
    %227 = vector.load %arg26[%c0_90, %c0_91] : memref<1x1xf32, #tpu.memory_space<vmem>>, vector<1x1xf32>
    %228 = vector.broadcast %227 : vector<1x1xf32> to vector<2x1xf32>
    %229 = arith.addf %226, %228 : vector<2x1xf32>
    %c0_92 = arith.constant 0 : index
    %c0_93 = arith.constant 0 : index
    %230 = vector.load %arg27[%c0_92, %c0_93] : memref<2x1xf32, #tpu.memory_space<vmem>>, vector<2x1xf32>
    tpu.vector_store %arg27[%c0_92, %c0_93], %229 {strides = array<i32>} : memref<2x1xf32, #tpu.memory_space<vmem>>, vector<2x1xf32>,
    return
  }
}

</mosaic_0001>

<bundles_post_ra>
// kernel: tpu_custom_call.1
= control target key start
LH: loop header
LB: loop body
LE: loop exit
PB: predicated region body
PF: predicated region fallthrough
CT: control target
= control target key end

     0   :  { %vm101_vm0 = vcmask 261120   ;;  %v8569_v10 = vmov 0.0   ;;  %s8571_s30 = smov 120   ;;  %vm8572_vm1 = vmmov 0   ;;  %vm199_vm2 = vcmask 64512   ;;  %s11608_s28 = smov 64   ;;  %s11567_s1 = inlined_call_operand.vmem [shape: f32[32,96], index: 1, kind: input, shape index: {}]   ;;  %s11568_s0 = inlined_call_operand.vmem [shape: f32[16,32], index: 0, kind: input, shape index: {}]   ;;  %s11569_s2 = inlined_call_operand.vmem [shape: f32[1,96], index: 2, kind: input, shape index: {}]   ;;  %s11570_s3 = inlined_call_operand.vmem [shape: f32[32,32], index: 3, kind: input, shape index: {}]   ;;  %s11571_s4 = inlined_call_operand.vmem [shape: f32[1,32], index: 4, kind: input, shape index: {}]   ;;  %s11572_s7 = inlined_call_operand.vmem [shape: f32[32,2048], index: 7, kind: input, shape index: {}]   ;;  %s11573_s5 = inlined_call_operand.vmem [shape: f32[1,32], index: 5, kind: input, shape index: {}]   ;;  %s11574_s6 = inlined_call_operand.vmem [shape: f32[1,32], index: 6, kind: input, shape index: {}]   ;;  %s11575_s9 = inlined_call_operand.vmem [shape: f32[2048,32], index: 9, kind: input, shape index: {}]   ;;  %s11576_s8 = inlined_call_operand.vmem [shape: f32[1,2048], index: 8, kind: input, shape index: {}]   ;;  %s11577_s10 = inlined_call_operand.vmem [shape: f32[1,32], index: 10, kind: input, shape index: {}]   ;;  %s11578_s13 = inlined_call_operand.vmem [shape: f32[32,96], index: 13, kind: input, shape index: {}]   ;;  %s11579_s11 = inlined_call_operand.vmem [shape: f32[1,32], index: 11, kind: input, shape index: {}]   ;;  %s11580_s12 = inlined_call_operand.vmem [shape: f32[1,32], index: 12, kind: input, shape index: {}]   ;;  %s11581_s14 = inlined_call_operand.vmem [shape: f32[1,96], index: 14, kind: input, shape index: {}]   ;;  %s11582_s15 = inlined_call_operand.vmem [shape: f32[32,32], index: 15, kind: input, shape index: {}]   ;;  %s11583_s16 = inlined_call_operand.vmem [shape: f32[1,32], index: 16, kind: input, shape index: {}]   ;;  %s11584_s19 = inlined_call_operand.vmem [shape: f32[32,2048], index: 19, kind: input, shape index: {}]   ;;  %s11585_s17 = inlined_call_operand.vmem [shape: f32[1,32], index: 17, kind: input, shape index: {}]   ;;  %s11586_s18 = inlined_call_operand.vmem [shape: f32[1,32], index: 18, kind: input, shape index: {}]   ;;  %s11587_s21 = inlined_call_operand.vmem [shape: f32[2048,32], index: 21, kind: input, shape index: {}]   ;;  %s11588_s20 = inlined_call_operand.vmem [shape: f32[1,2048], index: 20, kind: input, shape index: {}]   ;;  %s11589_s22 = inlined_call_operand.vmem [shape: f32[1,32], index: 22, kind: input, shape index: {}]   ;;  %s11590_s25 = inlined_call_operand.vmem [shape: f32[32,1], index: 25, kind: input, shape index: {}]   ;;  %s11591_s26 = inlined_call_operand.<no memory space> [shape: f32[1,1], index: 26, kind: input, shape index: {}]   ;;  %s11592_s23 = inlined_call_operand.vmem [shape: f32[1,32], index: 23, kind: input, shape index: {}]   ;;  %s11593_s24 = inlined_call_operand.vmem [shape: f32[1,32], index: 24, kind: input, shape index: {}]   ;;  %s11594_s27 = inlined_call_operand.vmem [shape: f32[2,1], index: 27, kind: output, shape index: {}]  }
   0x1   :  { %11616 = sst [smem:[#allocation3_spill]] %s11567_s1  ;;  %7596 = vmatprep.subr.mxu1 %v8569_v10  ;;  %7598 = vmatprep.mubr.msk.f32.mxu1 %vm8572_vm1, %v8569_v10  ;;  %vm1528_vm3 = vcmask 130048   ;;  %vm1531_vm4 = vcmask 195584   ;;  %s11644_s1 = smov 8   ;;  %vm6700_vm5 = vcmask 1041409   ;;  %vm6774_vm6 = vcmask 1024  }
   0x2   :  { %11617 = sst [smem:[#allocation4_spill]] %s11568_s0  ;;  %s11604_s0 = smov 16  }
   0x3   :  { %11618 = sst [smem:[#allocation5_spill]] %s11569_s2 }
   0x4   :  { %11619 = sst [smem:[#allocation6_spill]] %s11570_s3 }
   0x5   :  { %11620 = sst [smem:[#allocation7_spill]] %s11571_s4  ;;  %s11630_s4 = sld [smem:[#allocation5_spill]] }
   0x6   :  { %11621 = sst [smem:[#allocation8_spill]] %s11572_s7  ;;  %s11610_s7 = smov 96  }
   0x7   :  { %11622 = sst [smem:[#allocation9_spill]] %s11573_s5  ;;  %s11629_s5 = sld [smem:[#allocation4_spill]] }
   0x8   :  { %11623 = sst [smem:[#allocation10_spill]] %s11574_s6  ;;  %s11631_s29 = sld [smem:[#allocation6_spill]] }
   0x9   :  { %11624 = sst [smem:[#allocation11_spill]] %s11575_s9  ;;  %s11633_s3 = sld [smem:[#allocation8_spill]] }
   0xa   :  { %11625 = sst [smem:[#allocation12_spill]] %s11576_s8  ;;  %s11628_s9 = sld [smem:[#allocation3_spill]] }
   0xb   :  { %11626 = sst [smem:[#allocation13_spill]] %s11577_s10  ;;  %v6780_v8 = vld [vmem:[%s11630_s4] ss:$0 sm:$0xff]  ;;  %s11614_s8 = smov 104  }
   0xc   :  { %11627 = sst [smem:[#allocation14_spill]] %s11578_s13  ;;  %s11606_s4 = smov 8  }
   0xd   :  { %v8735_v5 = vld [vmem:[%s11629_s5] sm:$0xff]  ;;  %v8742_v7 = vld [vmem:[%s11629_s5 + $0x8] sm:$0xff]  ;;  %s11602_s10 = smov 24   ;;  %s11632_s5 = sld [smem:[#allocation7_spill]] }
   0xe   :  { %7593 = vmatprep.mubr.msk.f32.mxu0 %vm101_vm0, %v8735_v5  ;;  %s11637_s13 = sld [smem:[#allocation12_spill]] }
  0x10   :  { %v90_v0 = vld [vmem:[%s11628_s9] sm:$0xff]  ;;  %v91_v1 = vld [vmem:[%s11628_s9 + $0x8] sm:$0xff]  ;;  %v92_v2 = vld [vmem:[%s11628_s9 + $0x10] sm:$0xff] }
  0x11   :  { %v7800_v3 = vpack.c.bf16 %v91_v1, %v90_v0  ;;  %v93_v4 = vld [vmem:[%s11628_s9 + $0x18] sm:$0xff]  ;;  %s11612_s9 = smov 112  }
  0x12   :  { %v7804_v6 = vpack.c.bf16 %v93_v4, %v92_v2 }
  0x13   :  { %7801 = vmatprep.subr.bf16.mxu0 %v7800_v3 }
  0x14   :  { %7803 = vmatpush3.bf16.msra.mxu0 %v7800_v3 }
  0x15   :  { %7805 = vmatprep.subr.bf16.mxu0 %v7804_v6 }
  0x18   :  { %7807 = vmatpush3.bf16.msra.mxu0 %v7804_v6 }
  0x19   :  { %7606 = vmatprep.subr.mxu0 %v8569_v10 }
  0x1b   :  { %7594 = vmatmul.mubr.msk.f32.vlgmr.msra.gmra.mrb[0].mxu0 %vm101_vm0, %v8742_v7 }
  0x1c   :  { %7608 = vmatprep.mubr.msk.f32.mxu0 %vm8572_vm1, %v8569_v10 }
  0xee   :  { %v7595_v9 = vpop.f32.mrb[0].mxu0 }
  0xef   :  { %v174_v11 = vpop.f32.mrb[1].mxu0  ;;  %v8761_v13 = vadd.f32 %v7595_v9, %v6780_v8 }
  0xf0   :  { %v8751_v12 = vadd.f32 %v6780_v8, %v174_v11 }
  0xf2   :  { %189 = vrot.lane.b32.xlu1 %v8751_v12, %s11612_s9  ;;  %185 = vrot.lane.b32.xlu0 %v8751_v12, %s8571_s30 }
  0xf6   :  { %191 = vrot.lane.b32.xlu1 %v8761_v13, %s11612_s9  ;;  %187 = vrot.lane.b32.xlu0 %v8761_v13, %s8571_s30 }
  0xfa   :  { %195 = vrot.lane.b32.xlu1 %v8761_v13, %s11614_s8  ;;  %193 = vrot.lane.b32.xlu0 %v8751_v12, %s11614_s8  ;;  %s11638_s8 = sld [smem:[#allocation13_spill]] }
  0xfe   :  { %274 = vrot.lane.b32.xlu1 %v8761_v13, %s11610_s7  ;;  %197 = vrot.lane.b32.xlu0 %v8751_v12, %s11610_s7 }
 0x164   :  { %v8775_v14 = vpop.permute.xlu1 %189  ;;  %v8777_v15 = vpop.permute.xlu0 %185 }
 0x165   :  { %350 = vrot.lane.b32.xlu0 %v8777_v15, %s11610_s7 }
 0x168   :  { %v8781_v16 = vpop.permute.xlu1 %191  ;;  %v8783_v17 = vpop.permute.xlu0 %187 }
 0x169   :  { %502 = vrot.lane.b32.xlu0 %v8775_v14, %s11610_s7  ;;  %426 = vrot.lane.b32.xlu1 %v8783_v17, %s11610_s7 }
 0x16c   :  { %v8789_v18 = vpop.permute.xlu0 %193  ;;  %v8795_v19 = vpop.permute.xlu1 %195 }
 0x16d   :  { %578 = vrot.lane.b32.xlu1 %v8781_v16, %s11610_s7  ;;  %654 = vrot.lane.b32.xlu0 %v8789_v18, %s11610_s7 }
 0x170   :  { %v198_v20 = vpop.permute.xlu0 %197  ;;  %v275_v21 = vpop.permute.xlu1 %274 }
 0x171   :  { %730 = vrot.lane.b32.xlu1 %v8795_v19, %s11610_s7  ;;  %7597 = vmatpush3.xpose.msk.msra.mxu1 %vm199_vm2, %v198_v20  ;;  %s11636_s7 = sld [smem:[#allocation11_spill]] }
 0x172   :  { %7601 = vmatprep.subr.mxu1 %v8569_v10 }
 0x174   :  { %7599 = vmatmul.mubr.msk.f32.vlgmr.msra.gmra.mrb[0].mxu1 %vm199_vm2, %v8751_v12 }
 0x175   :  { %7602 = vmatpush3.xpose.msk.msra.mxu1 %vm199_vm2, %v275_v21  ;;  %7603 = vmatprep.mubr.msk.f32.mxu1 %vm8572_vm1, %v8569_v10 }
 0x176   :  { %7611 = vmatprep.subr.mxu1 %v8569_v10 }
 0x178   :  { %7604 = vmatmul.mubr.msk.f32.vlgmr.msra.gmra.mrb[2].mxu1 %vm199_vm2, %v8761_v13 }
 0x179   :  { %7613 = vmatprep.mubr.msk.f32.mxu1 %vm8572_vm1, %v8569_v10 }
 0x1d7   :  { %v351_v22 = vpop.permute.xlu0 %350 }
 0x1d8   :  { %7607 = vmatpush3.xpose.msk.msra.mxu0 %vm199_vm2, %v351_v22 }
 0x1d9   :  { %7616 = vmatprep.subr.mxu0 %v8569_v10 }
 0x1db   :  { %v427_v23 = vpop.permute.xlu1 %426  ;;  %7609 = vmatmul.mubr.msk.f32.vlgmr.msra.gmra.mrb[2].mxu0 %vm199_vm2, %v8777_v15  ;;  %v503_v24 = vpop.permute.xlu0 %502 }
 0x1dc   :  { %7612 = vmatpush3.xpose.msk.msra.mxu1 %vm199_vm2, %v427_v23  ;;  %7617 = vmatpush3.xpose.msk.msra.mxu0 %vm199_vm2, %v503_v24 }
 0x1dd   :  { %7618 = vmatprep.mubr.msk.f32.mxu0 %vm8572_vm1, %v8569_v10  ;;  %7621 = vmatprep.subr.mxu1 %v8569_v10 }
 0x1de   :  { %7626 = vmatprep.subr.mxu0 %v8569_v10 }
 0x1df   :  { %v579_v25 = vpop.permute.xlu1 %578  ;;  %7614 = vmatmul.mubr.msk.f32.vlgmr.msra.gmra.mrb[4].mxu1 %vm199_vm2, %v8783_v17  ;;  %7619 = vmatmul.mubr.msk.f32.vlgmr.msra.gmra.mrb[4].mxu0 %vm199_vm2, %v8775_v14  ;;  %v655_v26 = vpop.permute.xlu0 %654 }
 0x1e0   :  { %7622 = vmatpush3.xpose.msk.msra.mxu1 %vm199_vm2, %v579_v25  ;;  %7627 = vmatpush3.xpose.msk.msra.mxu0 %vm199_vm2, %v655_v26 }
 0x1e1   :  { %7623 = vmatprep.mubr.msk.f32.mxu1 %vm8572_vm1, %v8569_v10  ;;  %7628 = vmatprep.mubr.msk.f32.mxu0 %vm8572_vm1, %v8569_v10 }
 0x1e2   :  { %7631 = vmatprep.subr.mxu1 %v8569_v10  ;;  %7636 = vmatprep.subr.mxu0 %v8569_v10 }
 0x1e3   :  { %v731_v27 = vpop.permute.xlu1 %730  ;;  %7624 = vmatmul.mubr.msk.f32.vlgmr.msra.gmra.mrb[6].mxu1 %vm199_vm2, %v8781_v16  ;;  %7629 = vmatmul.mubr.msk.f32.vlgmr.msra.gmra.mrb[6].mxu0 %vm199_vm2, %v8789_v18 }
 0x1e4   :  { %7632 = vmatpush3.xpose.msk.msra.mxu1 %vm199_vm2, %v731_v27  ;;  %7633 = vmatprep.mubr.msk.f32.mxu1 %vm8572_vm1, %v8569_v10 }
 0x1e5   :  { %7641 = vmatprep.subr.mxu1 %v8569_v10  ;;  %7638 = vmatprep.mubr.msk.f32.mxu0 %vm8572_vm1, %v8569_v10 }
 0x1e7   :  { %7634 = vmatmul.mubr.msk.f32.vlgmr.msra.gmra.mrb[8].mxu1 %vm199_vm2, %v8795_v19 }
 0x1e8   :  { %7643 = vmatprep.mubr.msk.f32.mxu1 %vm8572_vm1, %v8569_v10 }
 0x247   :  { %v270_v28 = vpop.f32.mrb[0].mxu1 }
 0x248   :  { %v7600_v29 = vpop.f32.mrb[1].mxu1  ;;  %v806_v30 = vsel %vm199_vm2, %v270_v28, -inf }
 0x249   :  { %807 = vmax.xlane.f32.xlu0 %v806_v30 }
 0x24b   :  { %v346_v31 = vpop.f32.mrb[2].mxu1 }
 0x24c   :  { %v7605_v32 = vpop.f32.mrb[3].mxu1  ;;  %v809_v33 = vsel %vm199_vm2, %v346_v31, -inf }
 0x24d   :  { %810 = vmax.xlane.f32.xlu1 %v809_v33 }
 0x2ae   :  { %v422_v34 = vpop.f32.mrb[2].mxu0 }
 0x2af   :  { %v7610_v35 = vpop.f32.mrb[3].mxu0  ;;  %v812_v36 = vsel %vm199_vm2, %v422_v34, -inf }
 0x2b0   :  { %813 = vmax.xlane.f32.xlu0 %v812_v36 }
 0x2b2   :  { %v498_v37 = vpop.f32.mrb[4].mxu1  ;;  %v574_v38 = vpop.f32.mrb[4].mxu0 }
 0x2b3   :  { %v7615_v39 = vpop.f32.mrb[5].mxu1  ;;  %v7620_v40 = vpop.f32.mrb[5].mxu0  ;;  %v815_v41 = vsel %vm199_vm2, %v498_v37, -inf  ;;  %v818_v42 = vsel %vm199_vm2, %v574_v38, -inf }
 0x2b4   :  { %816 = vmax.xlane.f32.xlu0 %v815_v41  ;;  %819 = vmax.xlane.f32.xlu1 %v818_v42 }
 0x2b6   :  { %v650_v43 = vpop.f32.mrb[6].mxu1  ;;  %v726_v44 = vpop.f32.mrb[6].mxu0 }
 0x2b7   :  { %v7625_v45 = vpop.f32.mrb[7].mxu1  ;;  %v7630_v46 = vpop.f32.mrb[7].mxu0  ;;  %v821_v47 = vsel %vm199_vm2, %v650_v43, -inf  ;;  %v824_v48 = vsel %vm199_vm2, %v726_v44, -inf }
 0x2b8   :  { %822 = vmax.xlane.f32.xlu0 %v821_v47  ;;  %825 = vmax.xlane.f32.xlu1 %v824_v48 }
 0x2ba   :  { %v802_v49 = vpop.f32.mrb[8].mxu1 }
 0x2bb   :  { %v7635_v50 = vpop.f32.mrb[9].mxu1  ;;  %v827_v51 = vsel %vm199_vm2, %v802_v49, -inf }
 0x2bc   :  { %828 = vmax.xlane.f32.xlu0 %v827_v51 }
 0x2c9   :  { %894 = vrot.lane.b32.xlu1 %v8751_v12, %s11608_s28 }
 0x2cd   :  { %1046 = vrot.lane.b32.xlu1 %v8777_v15, %s11608_s28 }
 0x2d1   :  { %1122 = vrot.lane.b32.xlu1 %v8783_v17, %s11608_s28 }
 0x2d2   :  { %970 = vrot.lane.b32.xlu0 %v8761_v13, %s11608_s28 }
 0x2d5   :  { %1274 = vrot.lane.b32.xlu1 %v8781_v16, %s11608_s28 }
 0x2d6   :  { %1198 = vrot.lane.b32.xlu0 %v8775_v14, %s11608_s28  ;;  %v808_v54 = vpop.xlane.xlu0 %807 }
 0x2d7   :  { %v830_v55 = vsub.f32 %v270_v28, %v808_v54 }
 0x2d9   :  { %v838_v57 = vmul.f32 1.442695, %v830_v55 }
 0x2da   :  { %v811_v52 = vpop.xlane.xlu1 %810 }
 0x2db   :  { %v831_v53 = vsub.f32 %v346_v31, %v811_v52 }
 0x2dd   :  { %v840_v56 = vmul.f32 1.442695, %v831_v53 }
 0x2df   :  { %8489 = vpow2.f32 %v840_v56 }
 0x2e0   :  { %8491 = vpow2.f32 %v838_v57 }
 0x2e9   :  { %v8867_v58 = vpop.eup %8489 }
 0x2ea   :  { %v857_v59 = vsel %vm199_vm2, %v8867_v58, 0.0  ;;  %v8871_v60 = vpop.eup %8491 }
 0x2eb   :  { %v854_v61 = vsel %vm199_vm2, %v8871_v60, 0.0 }
 0x2f5   :  { %858 = vadd.xlane.f32.xlu0 %v857_v59 }
 0x2f9   :  { %855 = vadd.xlane.f32.xlu1 %v854_v61 }
 0x33d   :  { %v814_v62 = vpop.xlane.xlu0 %813 }
 0x33e   :  { %v832_v63 = vsub.f32 %v422_v34, %v814_v62 }
 0x340   :  { %v842_v0 = vmul.f32 1.442695, %v832_v63 }
 0x341   :  { %v820_v1 = vpop.xlane.xlu1 %819  ;;  %v817_v2 = vpop.xlane.xlu0 %816 }
 0x342   :  { %8493 = vpow2.f32 %v842_v0  ;;  %v834_v3 = vsub.f32 %v574_v38, %v820_v1  ;;  %v833_v4 = vsub.f32 %v498_v37, %v817_v2 }
 0x344   :  { %v846_v6 = vmul.f32 1.442695, %v834_v3  ;;  %v844_v8 = vmul.f32 1.442695, %v833_v4  ;;  %v1534_v3 = vld [vmem:[%s11631_s29] sm:$0xff]  ;;  %v1535_v4 = vld [vmem:[%s11631_s29 + $0x8] sm:$0xff] }
 0x345   :  { %v826_v9 = vpop.xlane.xlu1 %825  ;;  %v823_v11 = vpop.xlane.xlu0 %822 }
 0x346   :  { %8495 = vpow2.f32 %v846_v6  ;;  %v836_v12 = vsub.f32 %v726_v44, %v826_v9  ;;  %v835_v13 = vsub.f32 %v650_v43, %v823_v11  ;;  %v7808_v6 = vpack.c.bf16 %v1535_v4, %v1534_v3  ;;  %v1537_v9 = vld [vmem:[%s11631_s29 + $0x18] sm:$0xff] }
 0x347   :  { %8497 = vpow2.f32 %v844_v8  ;;  %v1536_v8 = vld [vmem:[%s11631_s29 + $0x10] sm:$0xff]  ;;  %v1708_v3 = vld [vmem:[%s11633_s3 + $0x118] sm:$0xff] }
 0x348   :  { %v850_v14 = vmul.f32 1.442695, %v836_v12  ;;  %v848_v15 = vmul.f32 1.442695, %v835_v13  ;;  %v7812_v11 = vpack.c.bf16 %v1537_v9, %v1536_v8  ;;  %v1705_v8 = vld [vmem:[%s11633_s3 + $0x100] sm:$0xff] }
 0x349   :  { %v895_v16 = vpop.permute.xlu1 %894  ;;  %v829_v17 = vpop.xlane.xlu0 %828  ;;  %v1721_v9 = vld [vmem:[%s11633_s3 + $0x180] sm:$0xff] }
 0x34a   :  { %8499 = vpow2.f32 %v850_v14  ;;  %v837_v20 = vsub.f32 %v802_v49, %v829_v17  ;;  %7637 = vmatpush3.msra.mxu0 %v895_v16 }
 0x34b   :  { %8501 = vpow2.f32 %v848_v15  ;;  %7646 = vmatprep.subr.mxu0 %v8569_v10 }
 0x34c   :  { %v8494_v21 = vpop.eup %8493  ;;  %v852_v22 = vmul.f32 1.442695, %v837_v20 }
 0x34d   :  { %v971_v23 = vpop.permute.xlu0 %970  ;;  %v860_v24 = vsel %vm199_vm2, %v8494_v21, 0.0  ;;  %v1047_v35 = vpop.permute.xlu1 %1046 }
 0x34e   :  { %8503 = vpow2.f32 %v852_v22  ;;  %861 = vadd.xlane.f32.xlu1 %v860_v24  ;;  %7642 = vmatpush3.msra.mxu1 %v971_v23 }
 0x34f   :  { %7651 = vmatprep.subr.mxu1 %v8569_v10 }
 0x350   :  { %v8496_v25 = vpop.eup %8495 }
 0x351   :  { %v8498_v26 = vpop.eup %8497  ;;  %v866_v27 = vsel %vm199_vm2, %v8496_v25, 0.0  ;;  %v1123_v36 = vpop.permute.xlu1 %1122 }
 0x352   :  { %867 = vadd.xlane.f32.xlu1 %v866_v27  ;;  %v863_v28 = vsel %vm199_vm2, %v8498_v26, 0.0  ;;  %v1199_v37 = vpop.permute.xlu0 %1198 }
 0x353   :  { %864 = vadd.xlane.f32.xlu0 %v863_v28 }
 0x354   :  { %v8500_v29 = vpop.eup %8499 }
 0x355   :  { %v8502_v30 = vpop.eup %8501  ;;  %v872_v31 = vsel %vm199_vm2, %v8500_v29, 0.0  ;;  %v1275_v38 = vpop.permute.xlu1 %1274 }
 0x356   :  { %873 = vadd.xlane.f32.xlu1 %v872_v31  ;;  %v869_v32 = vsel %vm199_vm2, %v8502_v30, 0.0 }
 0x357   :  { %870 = vadd.xlane.f32.xlu0 %v869_v32 }
 0x358   :  { %v8882_v33 = vpop.eup %8503 }
 0x359   :  { %v875_v34 = vsel %vm199_vm2, %v8882_v33, 0.0 }
 0x35b   :  { %876 = vadd.xlane.f32.xlu0 %v875_v34 }
 0x367   :  { %1426 = vrot.lane.b32.xlu1 %v8795_v19, %s11608_s28 }
 0x371   :  { %1350 = vrot.lane.b32.xlu0 %v8789_v18, %s11608_s28  ;;  %s11645_s28 = smov 16  }
 0x382   :  { %v859_v39 = vpop.xlane.xlu0 %858 }
 0x383   :  { %8505 = vrcp.f32 %v859_v39 }
 0x386   :  { %v856_v40 = vpop.xlane.xlu1 %855 }
 0x387   :  { %8507 = vrcp.f32 %v856_v40 }
 0x38d   :  { %v8506_v41 = vpop.eup %8505 }
 0x38e   :  { %v887_v42 = vmul.f32 %v8506_v41, %v8867_v58 }
 0x390   :  { %7644 = vmatmul.mubr.msk.f32.vlgmr.msra.gmra.mrb[10].mxu1 %vm199_vm2, %v887_v42 }
 0x391   :  { %v8508_v43 = vpop.eup %8507  ;;  %7652 = vmatpush3.msra.mxu1 %v1123_v36  ;;  %7653 = vmatprep.mubr.msk.f32.mxu1 %vm8572_vm1, %v8569_v10 }
 0x392   :  { %v886_v18 = vmul.f32 %v8508_v43, %v8871_v60  ;;  %7661 = vmatprep.subr.mxu1 %v8569_v10 }
 0x394   :  { %7639 = vmatmul.mubr.msk.f32.vlgmr.msra.gmra.mrb[8].mxu0 %vm199_vm2, %v886_v18 }
 0x395   :  { %7647 = vmatpush3.msra.mxu0 %v1047_v35  ;;  %7648 = vmatprep.mubr.msk.f32.mxu0 %vm8572_vm1, %v8569_v10 }
 0x396   :  { %7656 = vmatprep.subr.mxu0 %v8569_v10 }
 0x3db   :  { %v862_v19 = vpop.xlane.xlu1 %861 }
 0x3dc   :  { %8509 = vrcp.f32 %v862_v19 }
 0x3df   :  { %v868_v44 = vpop.xlane.xlu1 %867 }
 0x3e0   :  { %8511 = vrcp.f32 %v868_v44  ;;  %v865_v45 = vpop.xlane.xlu0 %864 }
 0x3e1   :  { %8513 = vrcp.f32 %v865_v45 }
 0x3e3   :  { %v874_v46 = vpop.xlane.xlu1 %873 }
 0x3e4   :  { %8515 = vrcp.f32 %v874_v46  ;;  %v871_v47 = vpop.xlane.xlu0 %870 }
 0x3e5   :  { %8517 = vrcp.f32 %v871_v47 }
 0x3e6   :  { %v8510_v48 = vpop.eup %8509 }
 0x3e7   :  { %v888_v49 = vmul.f32 %v8510_v48, %v8494_v21  ;;  %v1427_v60 = vpop.permute.xlu1 %1426 }
 0x3e8   :  { %v877_v50 = vpop.xlane.xlu0 %876 }
 0x3e9   :  { %8519 = vrcp.f32 %v877_v50  ;;  %7649 = vmatmul.mubr.msk.f32.vlgmr.msra.gmra.mrb[10].mxu0 %vm199_vm2, %v888_v49 }
 0x3ea   :  { %v8512_v51 = vpop.eup %8511  ;;  %7657 = vmatpush3.msra.mxu0 %v1199_v37  ;;  %7658 = vmatprep.mubr.msk.f32.mxu0 %vm8572_vm1, %v8569_v10 }
 0x3eb   :  { %v8514_v52 = vpop.eup %8513  ;;  %v890_v53 = vmul.f32 %v8512_v51, %v8496_v25  ;;  %7666 = vmatprep.subr.mxu0 %v8569_v10 }
 0x3ec   :  { %v889_v54 = vmul.f32 %v8514_v52, %v8498_v26  ;;  %v1351_v55 = vpop.permute.xlu0 %1350 }
 0x3ed   :  { %7659 = vmatmul.mubr.msk.f32.vlgmr.msra.gmra.mrb[12].mxu0 %vm199_vm2, %v890_v53  ;;  %v1674_v53 = vld [vmem:[%s11633_s3 + $0x8] sm:$0xff] }
 0x3ee   :  { %v8516_v56 = vpop.eup %8515  ;;  %7654 = vmatmul.mubr.msk.f32.vlgmr.msra.gmra.mrb[12].mxu1 %vm199_vm2, %v889_v54  ;;  %7667 = vmatpush3.msra.mxu0 %v1351_v55  ;;  %v1690_v54 = vld [vmem:[%s11633_s3 + $0x88] sm:$0xff]  ;;  %v1676_v55 = vld [vmem:[%s11633_s3 + $0x18] sm:$0xff] }
 0x3ef   :  { %v8518_v57 = vpop.eup %8517  ;;  %v892_v58 = vmul.f32 %v8516_v56, %v8500_v29  ;;  %7662 = vmatpush3.msra.mxu1 %v1275_v38  ;;  %7663 = vmatprep.mubr.msk.f32.mxu1 %vm8572_vm1, %v8569_v10  ;;  %v6807_v38 = vld [vmem:[%s11632_s5] ss:$0 sm:$0xff]  ;;  %v7816_v56 = vpack.c.bf16 %v1690_v54, %v1674_v53  ;;  %v1684_v53 = vld [vmem:[%s11633_s3 + $0x58] sm:$0xff] }
 0x3f0   :  { %v891_v59 = vmul.f32 %v8518_v57, %v8502_v30  ;;  %7668 = vmatprep.mubr.msk.f32.mxu0 %vm8572_vm1, %v8569_v10  ;;  %7671 = vmatprep.subr.mxu1 %v8569_v10  ;;  %v1692_v57 = vld [vmem:[%s11633_s3 + $0x98] sm:$0xff] }
 0x3f1   :  { %7669 = vmatmul.mubr.msk.f32.vlgmr.msra.gmra.mrb[14].mxu0 %vm199_vm2, %v892_v58  ;;  %7809 = vmatprep.subr.bf16.mxu0 %v7808_v6  ;;  %v1673_v58 = vld [vmem:[%s11633_s3] sm:$0xff]  ;;  %v1700_v54 = vld [vmem:[%s11633_s3 + $0xd8] sm:$0xff] }
 0x3f2   :  { %7664 = vmatmul.mubr.msk.f32.vlgmr.msra.gmra.mrb[14].mxu1 %vm199_vm2, %v891_v59  ;;  %7811 = vmatpush3.bf16.msra.mxu0 %v7808_v6  ;;  %v1689_v59 = vld [vmem:[%s11633_s3 + $0x80] sm:$0xff]  ;;  %v1724_v6 = vld [vmem:[%s11633_s3 + $0x198] sm:$0xff] }
 0x3f3   :  { %v8520_v61 = vpop.eup %8519  ;;  %7672 = vmatpush3.msra.mxu1 %v1427_v60  ;;  %7673 = vmatprep.mubr.msk.f32.mxu1 %vm8572_vm1, %v8569_v10  ;;  %v7824_v60 = vpack.c.bf16 %v1692_v57, %v1676_v55  ;;  %v1681_v57 = vld [vmem:[%s11633_s3 + $0x40] sm:$0xff] }
 0x3f4   :  { %v893_v62 = vmul.f32 %v8520_v61, %v8882_v33  ;;  %7813 = vmatprep.subr.bf16.mxu0 %v7812_v11  ;;  %v7818_v61 = vpack.c.bf16 %v1689_v59, %v1673_v58  ;;  %7817 = vmatprep.subr.bf16.mxu1 %v7816_v56  ;;  %v1697_v59 = vld [vmem:[%s11633_s3 + $0xc0] sm:$0xff] }
 0x3f6   :  { %7674 = vmatmul.mubr.msk.f32.vlgmr.msra.gmra.mrb[16].mxu1 %vm199_vm2, %v893_v62  ;;  %7815 = vmatpush3.bf16.msra.mxu0 %v7812_v11  ;;  %v1675_v62 = vld [vmem:[%s11633_s3 + $0x10] sm:$0xff]  ;;  %v7828_v11 = vpack.c.bf16 %v1724_v6, %v1708_v3  ;;  %v1732_v3 = vld [vmem:[%s11633_s3 + $0x1d8] sm:$0xff] }
 0x3f7   :  { %1891 = vmatprep.mubr.f32.mxu1 %v8569_v10  ;;  %7825 = vmatprep.subr.bf16.mxu0 %v7824_v60  ;;  %v1683_v60 = vld [vmem:[%s11633_s3 + $0x50] sm:$0xff] }
 0x3f8   :  { %7819 = vmatpush1.bf16.msra.mxu1 %v7818_v61  ;;  %v1699_v61 = vld [vmem:[%s11633_s3 + $0xd0] sm:$0xff] }
 0x3f9   :  { %v7858_v6 = vpack.c.bf16 %v1699_v61, %v1683_v60  ;;  %v2509_v61 = vld [vmem:[%s11636_s7 + $0x110] sm:$0xff] }
 0x463   :  { %v1042_v63 = vpop.f32.mrb[10].mxu1 }
 0x464   :  { %v7645_v0 = vpop.f32.mrb[11].mxu1 }
 0x467   :  { %v966_v1 = vpop.f32.mrb[8].mxu0 }
 0x468   :  { %v7640_v2 = vpop.f32.mrb[9].mxu0 }
 0x469   :  { %v1722_v2 = vld [vmem:[%s11633_s3 + $0x188] sm:$0xff] }
 0x4bc   :  { %v1118_v12 = vpop.f32.mrb[10].mxu0 }
 0x4bd   :  { %v7650_v13 = vpop.f32.mrb[11].mxu0  ;;  %1504 = vrot.lane.b32.xlu0 %v1118_v12, %s11606_s4  ;;  %v7822_v12 = vpack.c.bf16 %v1721_v9, %v1705_v8  ;;  %v1713_v8 = vld [vmem:[%s11633_s3 + $0x140] sm:$0xff] }
 0x4be   :  { %v1707_v13 = vld [vmem:[%s11633_s3 + $0x110] sm:$0xff]  ;;  %v1729_v9 = vld [vmem:[%s11633_s3 + $0x1c0] sm:$0xff] }
 0x4c0   :  { %v1270_v14 = vpop.f32.mrb[12].mxu0 }
 0x4c1   :  { %v1194_v15 = vpop.f32.mrb[12].mxu1  ;;  %1512 = vrot.lane.b32.xlu0 %v1270_v14, %s11604_s0  ;;  %v7660_v16 = vpop.f32.mrb[13].mxu0  ;;  %v1723_v14 = vld [vmem:[%s11633_s3 + $0x190] sm:$0xff] }
 0x4c2   :  { %1506 = vrot.lane.b32.xlu1 %v1194_v15, %s11606_s4  ;;  %v7655_v17 = vpop.f32.mrb[13].mxu1  ;;  %v7830_v15 = vpack.c.bf16 %v1723_v14, %v1707_v13  ;;  %v1678_v16 = vld [vmem:[%s11633_s3 + $0x28] sm:$0xff]  ;;  %s11641_s4 = smov 112  }
 0x4c3   :  { %v1694_v17 = vld [vmem:[%s11633_s3 + $0xa8] sm:$0xff] }
 0x4c4   :  { %v1422_v20 = vpop.f32.mrb[14].mxu0 }
 0x4c5   :  { %v1346_v21 = vpop.f32.mrb[14].mxu1  ;;  %1520 = vrot.lane.b32.xlu0 %v1422_v20, %s11602_s10  ;;  %v7670_v22 = vpop.f32.mrb[15].mxu0  ;;  %v1680_v20 = vld [vmem:[%s11633_s3 + $0x38] sm:$0xff] }
 0x4c6   :  { %1514 = vrot.lane.b32.xlu1 %v1346_v21, %s11604_s0  ;;  %v7665_v23 = vpop.f32.mrb[15].mxu1  ;;  %v7832_v21 = vpack.c.bf16 %v1694_v17, %v1678_v16  ;;  %v1696_v22 = vld [vmem:[%s11633_s3 + $0xb8] sm:$0xff]  ;;  %s11635_s0 = sld [smem:[#allocation10_spill]]  ;;  %v1702_v16 = vld [vmem:[%s11633_s3 + $0xe8] sm:$0xff] }
 0x4c7   :  { %v7840_v23 = vpack.c.bf16 %v1696_v22, %v1680_v20  ;;  %v1688_v17 = vld [vmem:[%s11633_s3 + $0x78] sm:$0xff] }
 0x4c8   :  { %v1704_v20 = vld [vmem:[%s11633_s3 + $0xf8] sm:$0xff] }
 0x4c9   :  { %v1498_v24 = vpop.f32.mrb[16].mxu1 }
 0x4ca   :  { %1522 = vrot.lane.b32.xlu1 %v1498_v24, %s11602_s10  ;;  %v7675_v25 = vpop.f32.mrb[17].mxu1  ;;  %s11634_s10 = sld [smem:[#allocation9_spill]] }
 0x52f   :  { %v1505_v26 = vpop.permute.xlu0 %1504 }
 0x530   :  { %v1526_v29 = vsel %vm199_vm2, %v966_v1, %v1505_v26  ;;  %v1706_v1 = vld [vmem:[%s11633_s3 + $0x108] sm:$0xff] }
 0x531   :  { %v7820_v4 = vpack.c.bf16 %v1722_v2, %v1706_v1  ;;  %v1730_v1 = vld [vmem:[%s11633_s3 + $0x1c8] sm:$0xff]  ;;  %v1716_v2 = vld [vmem:[%s11633_s3 + $0x158] sm:$0xff] }
 0x532   :  { %v7860_v14 = vpack.c.bf16 %v1732_v3, %v1716_v2  ;;  %v2528_v2 = vld [vmem:[%s11636_s7 + $0x1a8] sm:$0xff] }
 0x533   :  { %v1513_v27 = vpop.permute.xlu0 %1512  ;;  %7821 = vmatprep.subr.bf16.mxu1 %v7820_v4  ;;  %v7850_v4 = vpack.c.bf16 %v1697_v59, %v1681_v57  ;;  %v2478_v57 = vld [vmem:[%s11636_s7 + $0x18] sm:$0xff] }
 0x534   :  { %v1507_v28 = vpop.permute.xlu1 %1506  ;;  %v1529_v30 = vsel %vm1528_vm3, %v1526_v29, %v1513_v27  ;;  %7823 = vmatpush1.bf16.msra.mxu1 %v7822_v12  ;;  %v1731_v12 = vld [vmem:[%s11633_s3 + $0x1d0] sm:$0xff] }
 0x535   :  { %v1527_v34 = vsel %vm199_vm2, %v1042_v63, %v1507_v28  ;;  %v1691_v63 = vld [vmem:[%s11633_s3 + $0x90] sm:$0xff]  ;;  %7833 = vmatprep.subr.bf16.mxu1 %v7832_v21  ;;  %v7854_v21 = vpack.c.bf16 %v1729_v9, %v1713_v8  ;;  %v2480_v8 = vld [vmem:[%s11636_s7 + $0x28] sm:$0xff] }
 0x536   :  { %v7826_v0 = vpack.c.bf16 %v1691_v63, %v1675_v62  ;;  %v7856_v63 = vpack.c.bf16 %v1700_v54, %v1684_v53  ;;  %v2526_v53 = vld [vmem:[%s11636_s7 + $0x198] sm:$0xff] }
 0x537   :  { %v1521_v31 = vpop.permute.xlu0 %1520 }
 0x538   :  { %v1515_v32 = vpop.permute.xlu1 %1514  ;;  %v1532_v33 = vsel %vm1531_vm4, %v1529_v30, %v1521_v31  ;;  %v6810_v31 = vld [vmem:[%s11634_s10] ss:$0 sm:$0xff]  ;;  %s11639_s10 = sld [smem:[#allocation14_spill]] }
 0x539   :  { %7684 = vmatprep.mubr.msk.f32.mxu0 %vm101_vm0, %v1532_v33  ;;  %v1530_v35 = vsel %vm1528_vm3, %v1527_v34, %v1515_v32  ;;  %v1677_v32 = vld [vmem:[%s11633_s3 + $0x20] sm:$0xff] }
 0x53a   :  { %v1693_v34 = vld [vmem:[%s11633_s3 + $0xa0] sm:$0xff] }
 0x53c   :  { %v1523_v36 = vpop.permute.xlu1 %1522 }
 0x53d   :  { %v1533_v37 = vsel %vm1531_vm4, %v1530_v35, %v1523_v36  ;;  %v1679_v35 = vld [vmem:[%s11633_s3 + $0x30] sm:$0xff] }
 0x53e   :  { %7685 = vmatmul.mubr.msk.f32.vlgmr.msra.gmra.mrb[16].mxu0 %vm101_vm0, %v1533_v37  ;;  %v1695_v36 = vld [vmem:[%s11633_s3 + $0xb0] sm:$0xff]  ;;  %v6811_v37 = vld [vmem:[%s11635_s0] ss:$0 sm:$0xff]  ;;  %s11642_s0 = smov 96  }
 0x53f   :  { %1968 = vmatprep.mubr.f32.mxu0 %v8569_v10  ;;  %7827 = vmatpush1.bf16.msra.mxu0 %v7826_v0  ;;  %v1714_v0 = vld [vmem:[%s11633_s3 + $0x148] sm:$0xff] }
 0x540   :  { %7829 = vmatprep.subr.bf16.mxu0 %v7828_v11  ;;  %v1715_v11 = vld [vmem:[%s11633_s3 + $0x150] sm:$0xff]  ;;  %v7852_v13 = vpack.c.bf16 %v1730_v1, %v1714_v0  ;;  %v2496_v0 = vld [vmem:[%s11636_s7 + $0xa8] sm:$0xff]  ;;  %v2527_v1 = vld [vmem:[%s11636_s7 + $0x1a0] sm:$0xff] }
 0x541   :  { %v7862_v22 = vpack.c.bf16 %v1731_v12, %v1715_v11  ;;  %v7920_v11 = vpack.c.bf16 %v2528_v2, %v2527_v1  ;;  %v2511_v12 = vld [vmem:[%s11636_s7 + $0x120] sm:$0xff]  ;;  %v2506_v1 = vld [vmem:[%s11636_s7 + $0xf8] sm:$0xff]  ;;  %v2537_v2 = vld [vmem:[%s11636_s7 + $0x1f0] sm:$0xff] }
 0x543   :  { %7831 = vmatpush1.bf16.msra.mxu0 %v7830_v15  ;;  %v1686_v15 = vld [vmem:[%s11633_s3 + $0x68] sm:$0xff] }
 0x544   :  { %7841 = vmatprep.subr.bf16.mxu0 %v7840_v23  ;;  %v1685_v23 = vld [vmem:[%s11633_s3 + $0x60] sm:$0xff] }
 0x611   :  { %v7686_v39 = vpop.f32.mrb[16].mxu0 }
 0x612   :  { %v1623_v40 = vadd.f32 %v7686_v39, %v6807_v38  ;;  %v1617_v41 = vpop.f32.mrb[17].mxu0 }
 0x613   :  { %v1618_v42 = vadd.f32 %v6807_v38, %v1617_v41  ;;  %v1710_v38 = vld [vmem:[%s11633_s3 + $0x128] sm:$0xff]  ;;  %v1712_v41 = vld [vmem:[%s11633_s3 + $0x138] sm:$0xff] }
 0x614   :  { %v1627_v43 = vadd.f32 %v1623_v40, %v8742_v7  ;;  %v1726_v40 = vld [vmem:[%s11633_s3 + $0x1a8] sm:$0xff] }
 0x615   :  { %v1626_v18 = vadd.f32 %v1618_v42, %v8735_v5  ;;  %v1728_v42 = vld [vmem:[%s11633_s3 + $0x1b8] sm:$0xff] }
 0x616   :  { %v1633_v19 = vsel %vm101_vm0, %v1627_v43, 0.0 }
 0x617   :  { %1634 = vadd.xlane.f32.xlu1 %v1633_v19  ;;  %v1630_v44 = vsel %vm101_vm0, %v1626_v18, 0.0  ;;  %v7842_v19 = vpack.c.bf16 %v1695_v36, %v1679_v35  ;;  %v1717_v35 = vld [vmem:[%s11633_s3 + $0x160] sm:$0xff] }
 0x618   :  { %1631 = vadd.xlane.f32.xlu0 %v1630_v44  ;;  %v1709_v44 = vld [vmem:[%s11633_s3 + $0x120] sm:$0xff] }
 0x619   :  { %v1733_v36 = vld [vmem:[%s11633_s3 + $0x1e0] sm:$0xff] }
 0x6a4   :  { %v1635_v45 = vpop.xlane.xlu1 %1634 }
 0x6a5   :  { %v1638_v46 = vmul.f32 0.03125, %v1635_v45  ;;  %v1632_v47 = vpop.xlane.xlu0 %1631 }
 0x6a6   :  { %v1637_v48 = vmul.f32 0.03125, %v1632_v47  ;;  %v1725_v47 = vld [vmem:[%s11633_s3 + $0x1a0] sm:$0xff] }
 0x6a7   :  { %v8952_v49 = vsub.f32 %v1627_v43, %v1638_v46  ;;  %v7838_v55 = vpack.c.bf16 %v1725_v47, %v1709_v44  ;;  %v2476_v47 = vld [vmem:[%s11636_s7 + $0x8] sm:$0xff] }
 0x6a8   :  { %v1639_v50 = vsub.f32 %v1626_v18, %v1637_v48  ;;  %v7834_v18 = vpack.c.bf16 %v1693_v34, %v1677_v32  ;;  %v1711_v48 = vld [vmem:[%s11633_s3 + $0x130] sm:$0xff]  ;;  %v1736_v32 = vld [vmem:[%s11633_s3 + $0x1f8] sm:$0xff] }
 0x6a9   :  { %v1642_v7 = vmul.f32 %v8952_v49, %v8952_v49 }
 0x6aa   :  { %v1641_v51 = vmul.f32 %v1639_v50, %v1639_v50 }
 0x6ab   :  { %v1646_v5 = vsel %vm101_vm0, %v1642_v7, 0.0  ;;  %v1682_v7 = vld [vmem:[%s11633_s3 + $0x48] sm:$0xff] }
 0x6ac   :  { %v1643_v52 = vsel %vm101_vm0, %v1641_v51, 0.0  ;;  %v7836_v51 = vpack.c.bf16 %v1726_v40, %v1710_v38  ;;  %v1735_v38 = vld [vmem:[%s11633_s3 + $0x1f0] sm:$0xff] }
 0x6ad   :  { %1644 = vadd.xlane.f32.xlu0 %v1643_v52  ;;  %v7844_v52 = vpack.c.bf16 %v1728_v42, %v1712_v41  ;;  %v2491_v41 = vld [vmem:[%s11636_s7 + $0x80] sm:$0xff]  ;;  %v2492_v42 = vld [vmem:[%s11636_s7 + $0x88] sm:$0xff] }
 0x6b1   :  { %1647 = vadd.xlane.f32.xlu0 %v1646_v5 }
 0x73a   :  { %v1645_v24 = vpop.xlane.xlu0 %1644 }
 0x73b   :  { %v1649_v25 = vmul.f32 0.03125, %v1645_v24  ;;  %v1701_v24 = vld [vmem:[%s11633_s3 + $0xe0] sm:$0xff] }
 0x73d   :  { %v1651_v26 = vadd.f32 1e-05, %v1649_v25  ;;  %v1687_v25 = vld [vmem:[%s11633_s3 + $0x70] sm:$0xff] }
 0x73e   :  { %v1648_v27 = vpop.xlane.xlu0 %1647 }
 0x73f   :  { %8521 = vrsqrt.f32 %v1651_v26  ;;  %v1650_v28 = vmul.f32 0.03125, %v1648_v27  ;;  %v1703_v26 = vld [vmem:[%s11633_s3 + $0xf0] sm:$0xff]  ;;  %v7864_v27 = vpack.c.bf16 %v1702_v16, %v1686_v15  ;;  %v2498_v15 = vld [vmem:[%s11636_s7 + $0xb8] sm:$0xff] }
 0x740   :  { %v7874_v34 = vpack.c.bf16 %v1703_v26, %v1687_v25  ;;  %v2529_v16 = vld [vmem:[%s11636_s7 + $0x1b0] sm:$0xff] }
 0x741   :  { %v1652_v29 = vadd.f32 1e-05, %v1650_v28  ;;  %v7872_v28 = vpack.c.bf16 %v1704_v20, %v1688_v17  ;;  %v2530_v17 = vld [vmem:[%s11636_s7 + $0x1b8] sm:$0xff]  ;;  %v2513_v26 = vld [vmem:[%s11636_s7 + $0x130] sm:$0xff] }
 0x742   :  { %v7924_v25 = vpack.c.bf16 %v2530_v17, %v2529_v16  ;;  %v2556_v16 = vld [vmem:[%s11636_s7 + $0x288] sm:$0xff]  ;;  %v2587_v17 = vld [vmem:[%s11636_s7 + $0x380] sm:$0xff] }
 0x743   :  { %8523 = vrsqrt.f32 %v1652_v29  ;;  %v1718_v29 = vld [vmem:[%s11633_s3 + $0x168] sm:$0xff] }
 0x749   :  { %v8522_v30 = vpop.eup %8521 }
 0x74a   :  { %v1655_v33 = vmul.f32 %v8522_v30, %v1639_v50  ;;  %v1727_v50 = vld [vmem:[%s11633_s3 + $0x1b0] sm:$0xff]  ;;  %v1734_v30 = vld [vmem:[%s11633_s3 + $0x1e8] sm:$0xff] }
 0x74b   :  { %v7846_v56 = vpack.c.bf16 %v1727_v50, %v1711_v48  ;;  %v7880_v48 = vpack.c.bf16 %v2492_v42, %v2491_v41  ;;  %v2502_v41 = vld [vmem:[%s11636_s7 + $0xd8] sm:$0xff]  ;;  %v2533_v42 = vld [vmem:[%s11636_s7 + $0x1d0] sm:$0xff] }
 0x74c   :  { %v1663_v39 = vmul.f32 %v6810_v31, %v1655_v33  ;;  %v7866_v33 = vpack.c.bf16 %v1701_v24, %v1685_v23  ;;  %v2482_v23 = vld [vmem:[%s11636_s7 + $0x38] sm:$0xff] }
 0x74d   :  { %v8524_v43 = vpop.eup %8523 }
 0x74e   :  { %v9051_v45 = vadd.f32 %v6811_v37, %v1663_v39  ;;  %v1656_v46 = vmul.f32 %v8524_v43, %v8952_v49  ;;  %v1698_v49 = vld [vmem:[%s11633_s3 + $0xc8] sm:$0xff]  ;;  %v7868_v39 = vpack.c.bf16 %v1734_v30, %v1718_v29  ;;  %v2523_v43 = vld [vmem:[%s11636_s7 + $0x180] sm:$0xff] }
 0x74f   :  { %v7848_v62 = vpack.c.bf16 %v1698_v49, %v1682_v7  ;;  %v2493_v7 = vld [vmem:[%s11636_s7 + $0x90] sm:$0xff]  ;;  %v2500_v29 = vld [vmem:[%s11636_s7 + $0xc8] sm:$0xff]  ;;  %v2531_v30 = vld [vmem:[%s11636_s7 + $0x1c0] sm:$0xff] }
 0x750   :  { %v1664_v5 = vmul.f32 %v6810_v31, %v1656_v46  ;;  %6812 = vmatmul.mubr.msk.f32.vlgmr.msra.gmra.mrb[18].mxu1 %vm101_vm0, %v9051_v45  ;;  %6814 = vmatmul.mubr.msk.f32.vlgmr.msra.gmra.mrb[18].mxu0 %vm101_vm0, %v9051_v45  ;;  %v1720_v31 = vld [vmem:[%s11633_s3 + $0x178] sm:$0xff]  ;;  %v2475_v46 = vld [vmem:[%s11636_s7] sm:$0xff]  ;;  %v2525_v49 = vld [vmem:[%s11636_s7 + $0x190] sm:$0xff] }
 0x751   :  { %7835 = vmatpush1.bf16.msra.mxu1 %v7834_v18  ;;  %7843 = vmatpush1.bf16.msra.mxu0 %v7842_v19  ;;  %v7876_v40 = vpack.c.bf16 %v1736_v32, %v1720_v31  ;;  %v2524_v18 = vld [vmem:[%s11636_s7 + $0x188] sm:$0xff]  ;;  %v7870_v19 = vpack.c.bf16 %v1733_v36, %v1717_v35  ;;  %v7882_v54 = vpack.c.bf16 %v2476_v47, %v2475_v46  ;;  %v2486_v46 = vld [vmem:[%s11636_s7 + $0x58] sm:$0xff] }
 0x752   :  { %v9082_v58 = vadd.f32 %v6811_v37, %v1664_v5  ;;  %1897 = vmatprep.mubr.f32.mxu1 %v8569_v10  ;;  %1974 = vmatprep.mubr.f32.mxu0 %v8569_v10  ;;  %v1719_v37 = vld [vmem:[%s11633_s3 + $0x170] sm:$0xff]  ;;  %v7912_v50 = vpack.c.bf16 %v2524_v18, %v2523_v43  ;;  %v2494_v5 = vld [vmem:[%s11636_s7 + $0x98] sm:$0xff]  ;;  %v7916_v60 = vpack.c.bf16 %v2526_v53, %v2525_v49  ;;  %v2532_v31 = vld [vmem:[%s11636_s7 + $0x1c8] sm:$0xff] }
 0x753   :  { %7837 = vmatprep.subr.bf16.mxu1 %v7836_v51  ;;  %7845 = vmatprep.subr.bf16.mxu0 %v7844_v52  ;;  %v7878_v44 = vpack.c.bf16 %v1735_v38, %v1719_v37  ;;  %v2507_v51 = vld [vmem:[%s11636_s7 + $0x100] sm:$0xff]  ;;  %v2508_v52 = vld [vmem:[%s11636_s7 + $0x108] sm:$0xff]  ;;  %v7884_v59 = vpack.c.bf16 %v2494_v5, %v2493_v7  ;;  %v7928_v37 = vpack.c.bf16 %v2532_v31, %v2531_v30  ;;  %v2534_v43 = vld [vmem:[%s11636_s7 + $0x1d8] sm:$0xff] }
 0x754   :  { %6813 = vmatmul.mubr.msk.f32.gmra.mrb[20].mxu1 %vm101_vm0, %v9082_v58  ;;  %6815 = vmatmul.mubr.msk.f32.gmra.mrb[20].mxu0 %vm101_vm0, %v9082_v58  ;;  %v2484_v35 = vld [vmem:[%s11636_s7 + $0x48] sm:$0xff]  ;;  %v2515_v38 = vld [vmem:[%s11636_s7 + $0x140] sm:$0xff] }
 0x755   :  { %7839 = vmatpush1.bf16.msra.mxu1 %v7838_v55  ;;  %7847 = vmatpush1.bf16.msra.mxu0 %v7846_v56  ;;  %v7914_v55 = vpack.c.bf16 %v2508_v52, %v2507_v51  ;;  %v2477_v56 = vld [vmem:[%s11636_s7 + $0x10] sm:$0xff]  ;;  %v2518_v51 = vld [vmem:[%s11636_s7 + $0x158] sm:$0xff]  ;;  %v2503_v52 = vld [vmem:[%s11636_s7 + $0xe0] sm:$0xff] }
 0x756   :  { %2045 = vmatprep.mubr.f32.mxu1 %v8569_v10  ;;  %2122 = vmatprep.mubr.f32.mxu0 %v8569_v10  ;;  %v7886_v3 = vpack.c.bf16 %v2478_v57, %v2477_v56  ;;  %v2504_v7 = vld [vmem:[%s11636_s7 + $0xe8] sm:$0xff]  ;;  %v2535_v5 = vld [vmem:[%s11636_s7 + $0x1e0] sm:$0xff] }
 0x757   :  { %7849 = vmatprep.subr.bf16.mxu1 %v7848_v62  ;;  %7857 = vmatprep.subr.bf16.mxu0 %v7856_v63  ;;  %v2510_v62 = vld [vmem:[%s11636_s7 + $0x118] sm:$0xff]  ;;  %v2495_v63 = vld [vmem:[%s11636_s7 + $0xa0] sm:$0xff]  ;;  %v2536_v49 = vld [vmem:[%s11636_s7 + $0x1e8] sm:$0xff]  ;;  %v7904_v56 = vpack.c.bf16 %v2504_v7, %v2503_v52 }
 0x758   :  { %6816 = vmatmul.mubr.msk.f32.vlgmr.msra.gmra.mrb[22].mxu1 %vm101_vm0, %v9051_v45  ;;  %6818 = vmatmul.mubr.msk.f32.vlgmr.msra.gmra.mrb[22].mxu0 %vm101_vm0, %v9051_v45  ;;  %v7888_v9 = vpack.c.bf16 %v2496_v0, %v2495_v63  ;;  %v7936_v57 = vpack.c.bf16 %v2536_v49, %v2535_v5  ;;  %v2505_v0 = vld [vmem:[%s11636_s7 + $0xf0] sm:$0xff] }
 0x759   :  { %7851 = vmatpush1.bf16.msra.mxu1 %v7850_v4  ;;  %7859 = vmatpush1.bf16.msra.mxu0 %v7858_v6  ;;  %v7918_v4 = vpack.c.bf16 %v2510_v62, %v2509_v61  ;;  %v2479_v6 = vld [vmem:[%s11636_s7 + $0x20] sm:$0xff]  ;;  %v2520_v61 = vld [vmem:[%s11636_s7 + $0x168] sm:$0xff]  ;;  %v2541_v49 = vld [vmem:[%s11636_s7 + $0x210] sm:$0xff] }
 0x75a   :  { %2051 = vmatprep.mubr.f32.mxu1 %v8569_v10  ;;  %2128 = vmatprep.mubr.f32.mxu0 %v8569_v10  ;;  %v7890_v20 = vpack.c.bf16 %v2480_v8, %v2479_v6  ;;  %v2489_v6 = vld [vmem:[%s11636_s7 + $0x70] sm:$0xff]  ;;  %v2490_v8 = vld [vmem:[%s11636_s7 + $0x78] sm:$0xff] }
 0x75b   :  { %7853 = vmatprep.subr.bf16.mxu1 %v7852_v13  ;;  %7861 = vmatprep.subr.bf16.mxu0 %v7860_v14  ;;  %v2512_v13 = vld [vmem:[%s11636_s7 + $0x128] sm:$0xff]  ;;  %v2497_v14 = vld [vmem:[%s11636_s7 + $0xb0] sm:$0xff] }
 0x75c   :  { %6817 = vmatmul.mubr.msk.f32.gmra.mrb[24].mxu1 %vm101_vm0, %v9082_v58  ;;  %6819 = vmatmul.mubr.msk.f32.gmra.mrb[24].mxu0 %vm101_vm0, %v9082_v58  ;;  %v7892_v24 = vpack.c.bf16 %v2498_v15, %v2497_v14  ;;  %v2555_v15 = vld [vmem:[%s11636_s7 + $0x280] sm:$0xff] }
 0x75d   :  { %7855 = vmatpush1.bf16.msra.mxu1 %v7854_v21  ;;  %7863 = vmatpush1.bf16.msra.mxu0 %v7862_v22  ;;  %v7922_v21 = vpack.c.bf16 %v2512_v13, %v2511_v12  ;;  %v2481_v22 = vld [vmem:[%s11636_s7 + $0x30] sm:$0xff]  ;;  %v2522_v13 = vld [vmem:[%s11636_s7 + $0x178] sm:$0xff] }
 0x75e   :  { %2199 = vmatprep.mubr.f32.mxu1 %v8569_v10  ;;  %2276 = vmatprep.mubr.f32.mxu0 %v8569_v10  ;;  %v7894_v32 = vpack.c.bf16 %v2482_v23, %v2481_v22  ;;  %v2521_v12 = vld [vmem:[%s11636_s7 + $0x170] sm:$0xff]  ;;  %v1741_v23 = vlaneseq }
 0x75f   :  { %7865 = vmatprep.subr.bf16.mxu1 %v7864_v27  ;;  %7873 = vmatprep.subr.bf16.mxu0 %v7872_v28  ;;  %v2514_v27 = vld [vmem:[%s11636_s7 + $0x138] sm:$0xff]  ;;  %v2499_v28 = vld [vmem:[%s11636_s7 + $0xc0] sm:$0xff]  ;;  %v7942_v14 = vpack.c.bf16 %v2522_v13, %v2521_v12  ;;  %v2560_v12 = vld [vmem:[%s11636_s7 + $0x2a8] sm:$0xff] }
 0x760   :  { %6820 = vmatmul.mubr.msk.f32.vlgmr.msra.gmra.mrb[26].mxu1 %vm101_vm0, %v9051_v45  ;;  %6822 = vmatmul.mubr.msk.f32.vlgmr.msra.gmra.mrb[26].mxu0 %vm101_vm0, %v9051_v45  ;;  %v7896_v36 = vpack.c.bf16 %v2500_v29, %v2499_v28  ;;  %v2591_v13 = vld [vmem:[%s11636_s7 + $0x3a0] sm:$0xff] }
 0x761   :  { %7867 = vmatpush1.bf16.msra.mxu1 %v7866_v33  ;;  %7875 = vmatpush1.bf16.msra.mxu0 %v7874_v34  ;;  %v7926_v33 = vpack.c.bf16 %v2514_v27, %v2513_v26  ;;  %v2483_v34 = vld [vmem:[%s11636_s7 + $0x40] sm:$0xff] }
 0x762   :  { %2205 = vmatprep.mubr.f32.mxu1 %v8569_v10  ;;  %2282 = vmatprep.mubr.f32.mxu0 %v8569_v10  ;;  %v7898_v18 = vpack.c.bf16 %v2484_v35, %v2483_v34  ;;  %v9422_v27 = vld [vmem:[%s11637_s13] sm:$0xff]  ;;  %v2540_v35 = vld [vmem:[%s11636_s7 + $0x208] sm:$0xff] }
 0x763   :  { %7869 = vmatprep.subr.bf16.mxu1 %v7868_v39  ;;  %7877 = vmatprep.subr.bf16.mxu0 %v7876_v40  ;;  %v2516_v39 = vld [vmem:[%s11636_s7 + $0x148] sm:$0xff]  ;;  %v2501_v40 = vld [vmem:[%s11636_s7 + $0xd0] sm:$0xff]  ;;  %v2539_v34 = vld [vmem:[%s11636_s7 + $0x200] sm:$0xff] }
 0x764   :  { %6821 = vmatmul.mubr.msk.f32.gmra.mrb[28].mxu1 %vm101_vm0, %v9082_v58  ;;  %6823 = vmatmul.mubr.msk.f32.gmra.mrb[28].mxu0 %vm101_vm0, %v9082_v58  ;;  %v7900_v47 = vpack.c.bf16 %v2502_v41, %v2501_v40  ;;  %v2572_v40 = vld [vmem:[%s11636_s7 + $0x308] sm:$0xff]  ;;  %v2557_v41 = vld [vmem:[%s11636_s7 + $0x290] sm:$0xff]  ;;  %v7946_v52 = vpack.c.bf16 %v2540_v35, %v2539_v34 }
 0x765   :  { %7871 = vmatpush1.bf16.msra.mxu1 %v7870_v19  ;;  %7879 = vmatpush1.bf16.msra.mxu0 %v7878_v44  ;;  %v7930_v19 = vpack.c.bf16 %v2516_v39, %v2515_v38  ;;  %v2485_v44 = vld [vmem:[%s11636_s7 + $0x50] sm:$0xff]  ;;  %v2571_v39 = vld [vmem:[%s11636_s7 + $0x300] sm:$0xff] }
 0x766   :  { %2353 = vmatprep.mubr.f32.mxu1 %v8569_v10  ;;  %2430 = vmatprep.mubr.f32.mxu0 %v8569_v10  ;;  %v7902_v53 = vpack.c.bf16 %v2486_v46, %v2485_v44  ;;  %v2558_v44 = vld [vmem:[%s11636_s7 + $0x298] sm:$0xff]  ;;  %v2589_v46 = vld [vmem:[%s11636_s7 + $0x390] sm:$0xff]  ;;  %v7978_v7 = vpack.c.bf16 %v2572_v40, %v2571_v39  ;;  %v2576_v39 = vld [vmem:[%s11636_s7 + $0x328] sm:$0xff] }
 0x767   :  { %7881 = vmatprep.subr.bf16.mxu1 %v7880_v48  ;;  %7913 = vmatprep.subr.bf16.mxu0 %v7912_v50  ;;  %v7932_v48 = vpack.c.bf16 %v2534_v43, %v2533_v42  ;;  %v2517_v50 = vld [vmem:[%s11636_s7 + $0x150] sm:$0xff] }
 0x768   :  { %6824 = vmatmul.mubr.msk.f32.vlgmr.msra.gmra.mrb[30].mxu1 %vm101_vm0, %v9051_v45  ;;  %6826 = vmatmul.mubr.msk.f32.vlgmr.msra.gmra.mrb[30].mxu0 %vm101_vm0, %v9051_v45  ;;  %v2561_v40 = vld [vmem:[%s11636_s7 + $0x2b0] sm:$0xff] }
 0x769   :  { %2359 = vmatprep.mubr.f32.mxu1 %v8569_v10  ;;  %2436 = vmatprep.mubr.f32.mxu0 %v8569_v10 }
 0x76a   :  { %7883 = vmatpush3.bf16.msra.mxu1 %v7882_v54  ;;  %7915 = vmatpush3.bf16.msra.mxu0 %v7914_v55  ;;  %v7934_v54 = vpack.c.bf16 %v2518_v51, %v2517_v50  ;;  %v2487_v55 = vld [vmem:[%s11636_s7 + $0x60] sm:$0xff] }
 0x76b   :  { %7885 = vmatprep.subr.bf16.mxu1 %v7884_v59  ;;  %7917 = vmatprep.subr.bf16.mxu0 %v7916_v60  ;;  %v2488_v59 = vld [vmem:[%s11636_s7 + $0x68] sm:$0xff]  ;;  %v2519_v60 = vld [vmem:[%s11636_s7 + $0x160] sm:$0xff] }
 0x76c   :  { %6825 = vmatmul.mubr.msk.f32.gmra.mrb[32].mxu1 %vm101_vm0, %v9082_v58  ;;  %6827 = vmatmul.mubr.msk.f32.gmra.mrb[32].mxu0 %vm101_vm0, %v9082_v58  ;;  %v7906_v62 = vpack.c.bf16 %v2488_v59, %v2487_v55  ;;  %v7938_v63 = vpack.c.bf16 %v2520_v61, %v2519_v60  ;;  %v2542_v60 = vld [vmem:[%s11636_s7 + $0x218] sm:$0xff]  ;;  %v2573_v61 = vld [vmem:[%s11636_s7 + $0x310] sm:$0xff] }
 0x76e   :  { %7887 = vmatpush3.bf16.msra.mxu1 %v7886_v3  ;;  %7919 = vmatpush3.bf16.msra.mxu0 %v7918_v4  ;;  %v7908_v3 = vpack.c.bf16 %v2506_v1, %v2505_v0  ;;  %v2538_v4 = vld [vmem:[%s11636_s7 + $0x1f8] sm:$0xff] }
 0x76f   :  { %7889 = vmatprep.subr.bf16.mxu1 %v7888_v9  ;;  %7921 = vmatprep.subr.bf16.mxu0 %v7920_v11  ;;  %v7940_v9 = vpack.c.bf16 %v2538_v4, %v2537_v2  ;;  %v7910_v11 = vpack.c.bf16 %v2490_v8, %v2489_v6  ;;  %v2574_v4 = vld [vmem:[%s11636_s7 + $0x318] sm:$0xff]  ;;  %v2559_v6 = vld [vmem:[%s11636_s7 + $0x2a0] sm:$0xff] }
 0x772   :  { %7891 = vmatpush3.bf16.msra.mxu1 %v7890_v20  ;;  %7923 = vmatpush3.bf16.msra.mxu0 %v7922_v21  ;;  %v7944_v20 = vpack.c.bf16 %v2556_v16, %v2555_v15  ;;  %v2588_v21 = vld [vmem:[%s11636_s7 + $0x388] sm:$0xff]  ;;  %v2543_v15 = vld [vmem:[%s11636_s7 + $0x220] sm:$0xff] }
 0x773   :  { %7893 = vmatprep.subr.bf16.mxu1 %v7892_v24  ;;  %7925 = vmatprep.subr.bf16.mxu0 %v7924_v25  ;;  %v7976_v22 = vpack.c.bf16 %v2588_v21, %v2587_v17  ;;  %v9411_v24 = vshrl.u32 %v1741_v23, 7  ;;  %v7982_v23 = vpack.c.bf16 %v2574_v4, %v2573_v61  ;;  %v2564_v61 = vld [vmem:[%s11636_s7 + $0x2c8] sm:$0xff]  ;;  %v2547_v4 = vld [vmem:[%s11636_s7 + $0x240] sm:$0xff] }
 0x775   :  { %v9414_v25 = vsub.s32 0, %v9411_v24  ;;  %v9417_v26 = vsub.s32 2, %v9411_v24  ;;  %v9425_v28 = vsub.s32 1, %v9411_v24  ;;  %v9428_v29 = vsub.s32 3, %v9411_v24 }
 0x776   :  { %7895 = vmatpush3.bf16.msra.mxu1 %v7894_v32  ;;  %7927 = vmatpush3.bf16.msra.mxu0 %v7926_v33  ;;  %v9466_v51 = vsub.s32 7, %v9411_v24 }
 0x777   :  { %7897 = vmatprep.subr.bf16.mxu1 %v7896_v36  ;;  %7929 = vmatprep.subr.bf16.mxu0 %v7928_v37  ;;  %v1744_v30 = vrot.slane %v9422_v27, %v9414_v25  ;;  %v1752_v31 = vrot.slane %v9422_v27, %v9417_v26  ;;  %v1748_v32 = vrot.slane %v9422_v27, %v9425_v28  ;;  %v9445_v36 = vsub.s32 5, %v9411_v24 }
 0x778   :  { %v1756_v33 = vrot.slane %v9422_v27, %v9428_v29 }
 0x779   :  { %v9470_v5 = vrot.slane %v9422_v27, %v9445_v36 }
 0x77a   :  { %7899 = vmatpush3.bf16.msra.mxu1 %v7898_v18  ;;  %7931 = vmatpush3.bf16.msra.mxu0 %v7930_v19 }
 0x77b   :  { %7901 = vmatprep.subr.bf16.mxu1 %v7900_v47  ;;  %7933 = vmatprep.subr.bf16.mxu0 %v7932_v48  ;;  %v2590_v47 = vld [vmem:[%s11636_s7 + $0x398] sm:$0xff] }
 0x77c   :  { %v7980_v59 = vpack.c.bf16 %v2590_v47, %v2589_v46 }
 0x77e   :  { %7903 = vmatpush3.bf16.msra.mxu1 %v7902_v53  ;;  %7935 = vmatpush3.bf16.msra.mxu0 %v7934_v54 }
 0x77f   :  { %7905 = vmatprep.subr.bf16.mxu1 %v7904_v56  ;;  %7937 = vmatprep.subr.bf16.mxu0 %v7936_v57  ;;  %v7948_v57 = vpack.c.bf16 %v2558_v44, %v2557_v41 }
 0x782   :  { %7907 = vmatpush3.bf16.msra.mxu1 %v7906_v62  ;;  %7939 = vmatpush3.bf16.msra.mxu0 %v7938_v63 }
 0x783   :  { %7909 = vmatprep.subr.bf16.mxu1 %v7908_v3  ;;  %7941 = vmatprep.subr.bf16.mxu0 %v7940_v9 }
 0x786   :  { %7911 = vmatpush3.bf16.msra.mxu1 %v7910_v11  ;;  %7943 = vmatpush3.bf16.msra.mxu0 %v7942_v14  ;;  %v9489_v11 = vrot.slane %v9422_v27, %v9466_v51  ;;  %v2592_v14 = vld [vmem:[%s11636_s7 + $0x3a8] sm:$0xff] }
 0x787   :  { %7945 = vmatprep.subr.bf16.mxu1 %v7944_v20  ;;  %7977 = vmatprep.subr.bf16.mxu0 %v7976_v22  ;;  %v7950_v22 = vpack.c.bf16 %v2542_v60, %v2541_v49  ;;  %v2546_v49 = vld [vmem:[%s11636_s7 + $0x238] sm:$0xff]  ;;  %v2563_v60 = vld [vmem:[%s11636_s7 + $0x2c0] sm:$0xff] }
 0x823   :  { %v1893_v37 = vpop.f32.mrb[18].mxu1  ;;  %v1970_v38 = vpop.f32.mrb[18].mxu0 }
 0x824   :  { %v1894_v42 = vadd.f32 %v1893_v37, %v1744_v30  ;;  %v1971_v43 = vadd.f32 %v1970_v38, %v1752_v31  ;;  %v1895_v18 = vpop.f32.mrb[19].mxu1  ;;  %v1972_v19 = vpop.f32.mrb[19].mxu0  ;;  %v7952_v37 = vpack.c.bf16 %v2560_v12, %v2559_v6  ;;  %v7984_v38 = vpack.c.bf16 %v2592_v14, %v2591_v13  ;;  %v2548_v6 = vld [vmem:[%s11636_s7 + $0x248] sm:$0xff]  ;;  %v2579_v14 = vld [vmem:[%s11636_s7 + $0x340] sm:$0xff] }
 0x825   :  { %v1896_v48 = vadd.f32 %v1895_v18, %v1748_v32  ;;  %v1973_v50 = vadd.f32 %v1972_v19, %v1756_v33  ;;  %v2593_v18 = vld [vmem:[%s11636_s7 + $0x3b0] sm:$0xff]  ;;  %v2594_v19 = vld [vmem:[%s11636_s7 + $0x3b8] sm:$0xff]  ;;  %v7960_v12 = vpack.c.bf16 %v2564_v61, %v2563_v60 }
 0x826   :  { %v2443_v62 = vmax.f32 %v1894_v42, 0.0  ;;  %v2445_v63 = vmax.f32 %v1971_v43, 0.0  ;;  %v2562_v43 = vld [vmem:[%s11636_s7 + $0x2b8] sm:$0xff] }
 0x827   :  { %v2444_v53 = vmax.f32 %v1896_v48, 0.0  ;;  %v2446_v54 = vmax.f32 %v1973_v50, 0.0  ;;  %v1899_v55 = vpop.f32.mrb[20].mxu1  ;;  %v1976_v56 = vpop.f32.mrb[20].mxu0 }
 0x828   :  { %v1900_v0 = vadd.f32 %v1899_v55, %v1744_v30  ;;  %v1977_v1 = vadd.f32 %v1976_v56, %v1752_v31  ;;  %v1901_v2 = vpop.f32.mrb[21].mxu1  ;;  %v1978_v3 = vpop.f32.mrb[21].mxu0  ;;  %v2544_v30 = vld [vmem:[%s11636_s7 + $0x228] sm:$0xff]  ;;  %v2575_v31 = vld [vmem:[%s11636_s7 + $0x320] sm:$0xff]  ;;  %v7956_v55 = vpack.c.bf16 %v2562_v43, %v2561_v40  ;;  %v7988_v56 = vpack.c.bf16 %v2594_v19, %v2593_v18 }
 0x829   :  { %v1902_v8 = vadd.f32 %v1901_v2, %v1748_v32  ;;  %v1979_v9 = vadd.f32 %v1978_v3, %v1756_v33  ;;  %2802 = vmatprep.mubr.f32.mxu1 %v2444_v53  ;;  %2877 = vmatprep.mubr.f32.mxu0 %v2446_v54  ;;  %v7954_v50 = vpack.c.bf16 %v2544_v30, %v2543_v15  ;;  %v2580_v15 = vld [vmem:[%s11636_s7 + $0x348] sm:$0xff]  ;;  %v2567_v43 = vld [vmem:[%s11636_s7 + $0x2e0] sm:$0xff] }
 0x82a   :  { %2803 = vmatmul.mubr.f32.vlgmr.msra.gmra.mrb[34].mxu1 %v2443_v62  ;;  %2878 = vmatmul.mubr.f32.vlgmr.msra.gmra.mrb[34].mxu0 %v2445_v63  ;;  %v2459_v32 = vmax.f32 %v1900_v0, 0.0  ;;  %v2461_v33 = vmax.f32 %v1977_v1, 0.0  ;;  %v2595_v62 = vld [vmem:[%s11636_s7 + $0x3c0] sm:$0xff]  ;;  %v2596_v63 = vld [vmem:[%s11636_s7 + $0x3c8] sm:$0xff] }
 0x82b   :  { %v2460_v16 = vmax.f32 %v1902_v8, 0.0  ;;  %v2462_v17 = vmax.f32 %v1979_v9, 0.0  ;;  %7947 = vmatpush3.bf16.msra.mxu1 %v7946_v52  ;;  %7979 = vmatpush3.bf16.msra.mxu0 %v7978_v7  ;;  %v9503_v20 = vpop.f32.mrb[22].mxu1  ;;  %v9505_v21 = vpop.f32.mrb[22].mxu0  ;;  %v7986_v52 = vpack.c.bf16 %v2576_v39, %v2575_v31  ;;  %v2545_v7 = vld [vmem:[%s11636_s7 + $0x230] sm:$0xff]  ;;  %v7992_v13 = vpack.c.bf16 %v2596_v63, %v2595_v62  ;;  %v2568_v18 = vld [vmem:[%s11636_s7 + $0x2e8] sm:$0xff] }
 0x82c   :  { %v2049_v34 = vpop.f32.mrb[23].mxu1  ;;  %v2126_v35 = vpop.f32.mrb[23].mxu0  ;;  %7949 = vmatprep.subr.bf16.mxu1 %v7948_v57  ;;  %7981 = vmatprep.subr.bf16.mxu0 %v7980_v59  ;;  %v2577_v57 = vld [vmem:[%s11636_s7 + $0x330] sm:$0xff]  ;;  %v2578_v59 = vld [vmem:[%s11636_s7 + $0x338] sm:$0xff]  ;;  %v7958_v2 = vpack.c.bf16 %v2546_v49, %v2545_v7  ;;  %v2599_v19 = vld [vmem:[%s11636_s7 + $0x3e0] sm:$0xff]  ;;  %v7968_v61 = vpack.c.bf16 %v2568_v18, %v2567_v43 }
 0x82d   :  { %v2050_v41 = vadd.f32 %v2049_v34, %v9470_v5  ;;  %v2127_v42 = vadd.f32 %v2126_v35, %v9489_v11  ;;  %2807 = vmatprep.mubr.f32.mxu1 %v2460_v16  ;;  %2882 = vmatprep.mubr.f32.mxu0 %v2462_v17  ;;  %v7990_v3 = vpack.c.bf16 %v2578_v59, %v2577_v57  ;;  %v2565_v16 = vld [vmem:[%s11636_s7 + $0x2d0] sm:$0xff]  ;;  %v2566_v17 = vld [vmem:[%s11636_s7 + $0x2d8] sm:$0xff]  ;;  %v9640_v57 = vsub.s32 6, %v9411_v24  ;;  %v2583_v63 = vld [vmem:[%s11636_s7 + $0x360] sm:$0xff] }
 0x82e   :  { %2808 = vmatmul.mubr.f32.gmra.mrb[36].mxu1 %v2459_v32  ;;  %2883 = vmatmul.mubr.f32.gmra.mrb[36].mxu0 %v2461_v33  ;;  %v7962_v32 = vpack.c.bf16 %v2548_v6, %v2547_v4  ;;  %v7994_v33 = vpack.c.bf16 %v2580_v15, %v2579_v14  ;;  %v2549_v34 = vld [vmem:[%s11636_s7 + $0x250] sm:$0xff]  ;;  %v2550_v35 = vld [vmem:[%s11636_s7 + $0x258] sm:$0xff]  ;;  %v7964_v39 = vpack.c.bf16 %v2566_v17, %v2565_v16  ;;  %v2652_v43 = vld [vmem:[%s11636_s7 + $0x588] sm:$0xff] }
 0x82f   :  { %v2448_v44 = vmax.f32 %v2050_v41, 0.0  ;;  %v2450_v46 = vmax.f32 %v2127_v42, 0.0  ;;  %7951 = vmatpush3.bf16.msra.mxu1 %v7950_v22  ;;  %7983 = vmatpush3.bf16.msra.mxu0 %v7982_v23  ;;  %v9530_v47 = vpop.f32.mrb[24].mxu1  ;;  %v9532_v48 = vpop.f32.mrb[24].mxu0  ;;  %v2597_v22 = vld [vmem:[%s11636_s7 + $0x3d0] sm:$0xff]  ;;  %v2598_v23 = vld [vmem:[%s11636_s7 + $0x3d8] sm:$0xff]  ;;  %v7966_v7 = vpack.c.bf16 %v2550_v35, %v2549_v34 }
 0x830   :  { %v9540_v53 = vpop.f32.mrb[25].mxu1  ;;  %v9542_v54 = vpop.f32.mrb[25].mxu0  ;;  %7953 = vmatprep.subr.bf16.mxu1 %v7952_v37  ;;  %7985 = vmatprep.subr.bf16.mxu0 %v7984_v38  ;;  %v7996_v40 = vpack.c.bf16 %v2598_v23, %v2597_v22  ;;  %v2581_v41 = vld [vmem:[%s11636_s7 + $0x350] sm:$0xff]  ;;  %v2582_v42 = vld [vmem:[%s11636_s7 + $0x358] sm:$0xff]  ;;  %v9703_v18 = vld [vmem:[%s11637_s13 + $0x8] sm:$0xff] }
 0x831   :  { %2952 = vmatprep.mubr.f32.mxu1 %v2448_v44  ;;  %3027 = vmatprep.mubr.f32.mxu0 %v2450_v46  ;;  %v2600_v44 = vld [vmem:[%s11636_s7 + $0x3e8] sm:$0xff]  ;;  %v9627_v46 = vsub.s32 4, %v9411_v24  ;;  %v7998_v49 = vpack.c.bf16 %v2582_v42, %v2581_v41  ;;  %v2569_v24 = vld [vmem:[%s11636_s7 + $0x2f0] sm:$0xff]  ;;  %v2602_v6 = vld [vmem:[%s11636_s7 + $0x3f8] sm:$0xff] }
 0x832   :  { %v8000_v62 = vpack.c.bf16 %v2600_v44, %v2599_v19  ;;  %v2601_v4 = vld [vmem:[%s11636_s7 + $0x3f0] sm:$0xff]  ;;  %v2554_v22 = vld [vmem:[%s11636_s7 + $0x278] sm:$0xff]  ;;  %v2619_v41 = vld [vmem:[%s11636_s7 + $0x480] sm:$0xff] }
 0x833   :  { %7955 = vmatpush3.bf16.msra.mxu1 %v7954_v50  ;;  %7987 = vmatpush3.bf16.msra.mxu0 %v7986_v52  ;;  %v9562_v0 = vpop.f32.mrb[26].mxu1  ;;  %v9564_v1 = vpop.f32.mrb[26].mxu0  ;;  %v2553_v17 = vld [vmem:[%s11636_s7 + $0x270] sm:$0xff]  ;;  %v2651_v42 = vld [vmem:[%s11636_s7 + $0x580] sm:$0xff]  ;;  %v2604_v44 = vld [vmem:[%s11636_s7 + $0x408] sm:$0xff] }
 0x834   :  { %v9572_v8 = vpop.f32.mrb[27].mxu1  ;;  %v9574_v9 = vpop.f32.mrb[27].mxu0  ;;  %7957 = vmatprep.subr.bf16.mxu1 %v7956_v55  ;;  %7989 = vmatprep.subr.bf16.mxu0 %v7988_v56  ;;  %v2551_v55 = vld [vmem:[%s11636_s7 + $0x260] sm:$0xff]  ;;  %v2552_v56 = vld [vmem:[%s11636_s7 + $0x268] sm:$0xff]  ;;  %v2585_v23 = vld [vmem:[%s11636_s7 + $0x370] sm:$0xff] }
 0x835   :  { %v7970_v15 = vpack.c.bf16 %v2552_v56, %v2551_v55  ;;  %v2603_v19 = vld [vmem:[%s11636_s7 + $0x400] sm:$0xff] }
 0x836   :  { %v2635_v56 = vld [vmem:[%s11636_s7 + $0x500] sm:$0xff] }
 0x837   :  { %7959 = vmatpush3.bf16.msra.mxu1 %v7958_v2  ;;  %7991 = vmatpush3.bf16.msra.mxu0 %v7990_v3  ;;  %v9594_v30 = vpop.f32.mrb[28].mxu1  ;;  %v9596_v31 = vpop.f32.mrb[28].mxu0  ;;  %v2584_v2 = vld [vmem:[%s11636_s7 + $0x368] sm:$0xff]  ;;  %v2570_v3 = vld [vmem:[%s11636_s7 + $0x2f8] sm:$0xff] }
 0x838   :  { %v9604_v37 = vpop.f32.mrb[29].mxu1  ;;  %v9606_v38 = vpop.f32.mrb[29].mxu0  ;;  %7961 = vmatprep.subr.bf16.mxu1 %v7960_v12  ;;  %7993 = vmatprep.subr.bf16.mxu0 %v7992_v13  ;;  %v1760_v12 = vrot.slane %v9422_v27, %v9627_v46  ;;  %v8002_v16 = vpack.c.bf16 %v2584_v2, %v2583_v63  ;;  %v7972_v35 = vpack.c.bf16 %v2570_v3, %v2569_v24  ;;  %v2622_v3 = vld [vmem:[%s11636_s7 + $0x498] sm:$0xff] }
 0x839   :  { %v8040_v24 = vpack.c.bf16 %v2652_v43, %v2651_v42  ;;  %v2656_v43 = vld [vmem:[%s11636_s7 + $0x5a8] sm:$0xff] }
 0x83a   :  { %v2048_v63 = vadd.f32 %v9503_v20, %v1760_v12  ;;  %v2056_v20 = vadd.f32 %v9540_v53, %v9470_v5  ;;  %v2054_v5 = vadd.f32 %v9530_v47, %v1760_v12  ;;  %v2605_v53 = vld [vmem:[%s11636_s7 + $0x410] sm:$0xff]  ;;  %v2638_v12 = vld [vmem:[%s11636_s7 + $0x518] sm:$0xff] }
 0x83b   :  { %7963 = vmatpush3.bf16.msra.mxu1 %v7962_v32  ;;  %7995 = vmatpush3.bf16.msra.mxu0 %v7994_v33  ;;  %v9629_v50 = vpop.f32.mrb[30].mxu1  ;;  %v9631_v52 = vpop.f32.mrb[30].mxu0  ;;  %v1768_v32 = vrot.slane %v9422_v27, %v9640_v57  ;;  %v2620_v27 = vld [vmem:[%s11636_s7 + $0x488] sm:$0xff] }
 0x83c   :  { %v9642_v59 = vpop.f32.mrb[31].mxu1  ;;  %v9644_v60 = vpop.f32.mrb[31].mxu0  ;;  %7965 = vmatprep.subr.bf16.mxu1 %v7964_v39  ;;  %7997 = vmatprep.subr.bf16.mxu0 %v7996_v40  ;;  %v8004_v39 = vpack.c.bf16 %v2602_v6, %v2601_v4  ;;  %v2586_v40 = vld [vmem:[%s11636_s7 + $0x378] sm:$0xff]  ;;  %v8008_v55 = vpack.c.bf16 %v2620_v27, %v2619_v41  ;;  %v2653_v4 = vld [vmem:[%s11636_s7 + $0x590] sm:$0xff]  ;;  %v2464_v41 = vmax.f32 %v2056_v20, 0.0 }
 0x83d   :  { %v2125_v2 = vadd.f32 %v9505_v21, %v1768_v32  ;;  %v2654_v6 = vld [vmem:[%s11636_s7 + $0x598] sm:$0xff]  ;;  %v2133_v21 = vadd.f32 %v9542_v54, %v9489_v11  ;;  %v2131_v11 = vadd.f32 %v9532_v48, %v1768_v32  ;;  %v2637_v48 = vld [vmem:[%s11636_s7 + $0x510] sm:$0xff]  ;;  %v2623_v32 = vld [vmem:[%s11636_s7 + $0x4a0] sm:$0xff] }
 0x83e   :  { %v2606_v54 = vld [vmem:[%s11636_s7 + $0x418] sm:$0xff]  ;;  %v2657_v20 = vld [vmem:[%s11636_s7 + $0x5b0] sm:$0xff] }
 0x83f   :  { %7967 = vmatpush3.bf16.msra.mxu1 %v7966_v7  ;;  %7999 = vmatpush3.bf16.msra.mxu0 %v7998_v49  ;;  %v9666_v13 = vpop.f32.mrb[32].mxu1  ;;  %v9668_v14 = vpop.f32.mrb[32].mxu0  ;;  %v7974_v7 = vpack.c.bf16 %v2554_v22, %v2553_v17  ;;  %v8006_v49 = vpack.c.bf16 %v2586_v40, %v2585_v23  ;;  %v8010_v17 = vpack.c.bf16 %v2604_v44, %v2603_v19  ;;  %v2449_v40 = vmax.f32 %v2125_v2, 0.0 }
 0x840   :  { %v9681_v33 = vpop.f32.mrb[33].mxu1  ;;  %v9683_v34 = vpop.f32.mrb[33].mxu0  ;;  %7969 = vmatprep.subr.bf16.mxu1 %v7968_v61  ;;  %8001 = vmatprep.subr.bf16.mxu0 %v8000_v62  ;;  %v2636_v61 = vld [vmem:[%s11636_s7 + $0x508] sm:$0xff]  ;;  %v2621_v62 = vld [vmem:[%s11636_s7 + $0x490] sm:$0xff]  ;;  %v2466_v27 = vmax.f32 %v2133_v21, 0.0  ;;  %v2463_v19 = vmax.f32 %v2054_v5, 0.0 }
 0x841   :  { %v8042_v22 = vpack.c.bf16 %v2636_v61, %v2635_v56  ;;  %v8012_v23 = vpack.c.bf16 %v2622_v3, %v2621_v62  ;;  %v2465_v44 = vmax.f32 %v2131_v11, 0.0  ;;  %v2608_v56 = vld [vmem:[%s11636_s7 + $0x428] sm:$0xff]  ;;  %v2658_v21 = vld [vmem:[%s11636_s7 + $0x5b8] sm:$0xff]  ;;  %v2641_v5 = vld [vmem:[%s11636_s7 + $0x530] sm:$0xff] }
 0x842   :  { %v2640_v3 = vld [vmem:[%s11636_s7 + $0x528] sm:$0xff]  ;;  %v2642_v11 = vld [vmem:[%s11636_s7 + $0x538] sm:$0xff] }
 0x843   :  { %7971 = vmatpush3.bf16.msra.mxu1 %v7970_v15  ;;  %8003 = vmatpush3.bf16.msra.mxu0 %v8002_v16  ;;  %v9737_v15 = vrot.slane %v9703_v18, %v9425_v28  ;;  %v9741_v16 = vrot.slane %v9703_v18, %v9428_v29 }
 0x844   :  { %7973 = vmatprep.subr.bf16.mxu1 %v7972_v35  ;;  %8005 = vmatprep.subr.bf16.mxu0 %v8004_v39  ;;  %v8044_v35 = vpack.c.bf16 %v2654_v6, %v2653_v4  ;;  %v2447_v39 = vmax.f32 %v2048_v63, 0.0  ;;  %v2625_v4 = vld [vmem:[%s11636_s7 + $0x4b0] sm:$0xff]  ;;  %v2626_v6 = vld [vmem:[%s11636_s7 + $0x4b8] sm:$0xff] }
 0x845   :  { %v2204_v42 = vadd.f32 %v9572_v8, %v9737_v15  ;;  %v2281_v47 = vadd.f32 %v9574_v9, %v9741_v16  ;;  %v2624_v8 = vld [vmem:[%s11636_s7 + $0x4a8] sm:$0xff]  ;;  %v2655_v9 = vld [vmem:[%s11636_s7 + $0x5a0] sm:$0xff] }
 0x846   :  { %v8016_v63 = vpack.c.bf16 %v2624_v8, %v2623_v32  ;;  %v8048_v2 = vpack.c.bf16 %v2656_v43, %v2655_v9  ;;  %v2643_v9 = vld [vmem:[%s11636_s7 + $0x540] sm:$0xff]  ;;  %v2644_v43 = vld [vmem:[%s11636_s7 + $0x548] sm:$0xff] }
 0x847   :  { %7975 = vmatpush3.bf16.msra.mxu1 %v7974_v7  ;;  %8007 = vmatpush3.bf16.msra.mxu0 %v8006_v49  ;;  %v8014_v7 = vpack.c.bf16 %v2606_v54, %v2605_v53  ;;  %v8046_v49 = vpack.c.bf16 %v2638_v12, %v2637_v48  ;;  %v2452_v61 = vmax.f32 %v2204_v42, 0.0  ;;  %v2454_v62 = vmax.f32 %v2281_v47, 0.0  ;;  %v2627_v53 = vld [vmem:[%s11636_s7 + $0x4c0] sm:$0xff]  ;;  %v2628_v54 = vld [vmem:[%s11636_s7 + $0x4c8] sm:$0xff] }
 0x848   :  { %8009 = vmatprep.subr.bf16.mxu1 %v8008_v55  ;;  %8041 = vmatprep.subr.bf16.mxu0 %v8040_v24  ;;  %v2607_v55 = vld [vmem:[%s11636_s7 + $0x420] sm:$0xff]  ;;  %v8054_v47 = vpack.c.bf16 %v2642_v11, %v2641_v5  ;;  %v2612_v12 = vld [vmem:[%s11636_s7 + $0x448] sm:$0xff]  ;;  %v8024_v32 = vpack.c.bf16 %v2628_v54, %v2627_v53  ;;  %v2633_v53 = vld [vmem:[%s11636_s7 + $0x4f0] sm:$0xff] }
 0x849   :  { %v2639_v24 = vld [vmem:[%s11636_s7 + $0x520] sm:$0xff]  ;;  %v2648_v11 = vld [vmem:[%s11636_s7 + $0x568] sm:$0xff]  ;;  %v2634_v54 = vld [vmem:[%s11636_s7 + $0x4f8] sm:$0xff] }
 0x84a   :  { %2953 = vmatmul.mubr.f32.vlgmr.msra.gmra.mrb[38].mxu1 %v2447_v39  ;;  %3028 = vmatmul.mubr.f32.vlgmr.msra.gmra.mrb[38].mxu0 %v2449_v40  ;;  %v8020_v39 = vpack.c.bf16 %v2626_v6, %v2625_v4  ;;  %v8052_v40 = vpack.c.bf16 %v2658_v21, %v2657_v20  ;;  %v2611_v48 = vld [vmem:[%s11636_s7 + $0x440] sm:$0xff]  ;;  %v2632_v6 = vld [vmem:[%s11636_s7 + $0x4e8] sm:$0xff] }
 0x84b   :  { %2957 = vmatprep.mubr.f32.mxu1 %v2464_v41  ;;  %3032 = vmatprep.mubr.f32.mxu0 %v2466_v27  ;;  %v2659_v41 = vld [vmem:[%s11636_s7 + $0x5c0] sm:$0xff]  ;;  %v2660_v27 = vld [vmem:[%s11636_s7 + $0x5c8] sm:$0xff] }
 0x84c   :  { %8011 = vmatpush3.bf16.msra.mxu1 %v8010_v17  ;;  %8043 = vmatpush3.bf16.msra.mxu0 %v8042_v22  ;;  %v8018_v17 = vpack.c.bf16 %v2608_v56, %v2607_v55  ;;  %v8050_v22 = vpack.c.bf16 %v2640_v3, %v2639_v24  ;;  %v8056_v8 = vpack.c.bf16 %v2660_v27, %v2659_v41  ;;  %v2645_v24 = vld [vmem:[%s11636_s7 + $0x550] sm:$0xff]  ;;  %v2646_v3 = vld [vmem:[%s11636_s7 + $0x558] sm:$0xff]  ;;  %v2631_v4 = vld [vmem:[%s11636_s7 + $0x4e0] sm:$0xff] }
 0x84d   :  { %8013 = vmatprep.subr.bf16.mxu1 %v8012_v23  ;;  %8045 = vmatprep.subr.bf16.mxu0 %v8044_v35  ;;  %v2609_v23 = vld [vmem:[%s11636_s7 + $0x430] sm:$0xff]  ;;  %v2610_v35 = vld [vmem:[%s11636_s7 + $0x438] sm:$0xff]  ;;  %v8026_v55 = vpack.c.bf16 %v2612_v12, %v2611_v48  ;;  %v8058_v56 = vpack.c.bf16 %v2644_v43, %v2643_v9  ;;  %v2663_v20 = vld [vmem:[%s11636_s7 + $0x5e0] sm:$0xff]  ;;  %v1784_v9 = vrot.slane %v9703_v18, %v9417_v26 }
 0x84e   :  { %2958 = vmatmul.mubr.f32.gmra.mrb[40].mxu1 %v2463_v19  ;;  %3033 = vmatmul.mubr.f32.gmra.mrb[40].mxu0 %v2465_v44  ;;  %v8022_v42 = vpack.c.bf16 %v2610_v35, %v2609_v23  ;;  %v2629_v19 = vld [vmem:[%s11636_s7 + $0x4d0] sm:$0xff]  ;;  %v2630_v44 = vld [vmem:[%s11636_s7 + $0x4d8] sm:$0xff]  ;;  %v2664_v21 = vld [vmem:[%s11636_s7 + $0x5e8] sm:$0xff]  ;;  %v8036_v43 = vpack.c.bf16 %v2634_v54, %v2633_v53 }
 0x84f   :  { %3102 = vmatprep.mubr.f32.mxu1 %v2452_v61  ;;  %3177 = vmatprep.mubr.f32.mxu0 %v2454_v62  ;;  %v2613_v61 = vld [vmem:[%s11636_s7 + $0x450] sm:$0xff]  ;;  %v2614_v62 = vld [vmem:[%s11636_s7 + $0x458] sm:$0xff]  ;;  %v2615_v23 = vld [vmem:[%s11636_s7 + $0x460] sm:$0xff] }
 0x850   :  { %8015 = vmatpush3.bf16.msra.mxu1 %v8014_v7  ;;  %8047 = vmatpush3.bf16.msra.mxu0 %v8046_v49  ;;  %v2661_v7 = vld [vmem:[%s11636_s7 + $0x5d0] sm:$0xff]  ;;  %v2662_v49 = vld [vmem:[%s11636_s7 + $0x5d8] sm:$0xff]  ;;  %v2616_v35 = vld [vmem:[%s11636_s7 + $0x468] sm:$0xff] }
 0x851   :  { %8017 = vmatprep.subr.bf16.mxu1 %v8016_v63  ;;  %8049 = vmatprep.subr.bf16.mxu0 %v8048_v2  ;;  %v8028_v63 = vpack.c.bf16 %v2630_v44, %v2629_v19  ;;  %v8060_v2 = vpack.c.bf16 %v2662_v49, %v2661_v7  ;;  %v2647_v5 = vld [vmem:[%s11636_s7 + $0x560] sm:$0xff]  ;;  %v2665_v41 = vld [vmem:[%s11636_s7 + $0x5f0] sm:$0xff]  ;;  %v2666_v27 = vld [vmem:[%s11636_s7 + $0x5f8] sm:$0xff] }
 0x852   :  { %v8066_v48 = vpack.c.bf16 %v2648_v11, %v2647_v5  ;;  %v2617_v12 = vld [vmem:[%s11636_s7 + $0x470] sm:$0xff]  ;;  %v8068_v19 = vpack.c.bf16 %v2666_v27, %v2665_v41  ;;  %v2650_v44 = vld [vmem:[%s11636_s7 + $0x578] sm:$0xff]  ;;  %v2683_v7 = vld [vmem:[%s11636_s7 + $0x680] sm:$0xff] }
 0x853   :  { %v2684_v49 = vld [vmem:[%s11636_s7 + $0x688] sm:$0xff] }
 0x854   :  { %8019 = vmatpush3.bf16.msra.mxu1 %v8018_v17  ;;  %8051 = vmatpush3.bf16.msra.mxu0 %v8050_v22  ;;  %v8030_v17 = vpack.c.bf16 %v2614_v62, %v2613_v61  ;;  %v8062_v22 = vpack.c.bf16 %v2646_v3, %v2645_v24  ;;  %v2667_v61 = vld [vmem:[%s11636_s7 + $0x600] sm:$0xff]  ;;  %v2668_v62 = vld [vmem:[%s11636_s7 + $0x608] sm:$0xff]  ;;  %v8072_v24 = vpack.c.bf16 %v2684_v49, %v2683_v7 }
 0x855   :  { %8021 = vmatprep.subr.bf16.mxu1 %v8020_v39  ;;  %8053 = vmatprep.subr.bf16.mxu0 %v8052_v40  ;;  %v8032_v39 = vpack.c.bf16 %v2632_v6, %v2631_v4  ;;  %v8064_v40 = vpack.c.bf16 %v2664_v21, %v2663_v20  ;;  %v2699_v3 = vld [vmem:[%s11636_s7 + $0x700] sm:$0xff]  ;;  %v2700_v4 = vld [vmem:[%s11636_s7 + $0x708] sm:$0xff]  ;;  %v2685_v6 = vld [vmem:[%s11636_s7 + $0x690] sm:$0xff]  ;;  %v2279_v21 = vadd.f32 %v9564_v1, %v1784_v9 }
 0x856   :  { %v2287_v1 = vadd.f32 %v9606_v38, %v9741_v16  ;;  %v8074_v5 = vpack.c.bf16 %v2668_v62, %v2667_v61  ;;  %v8106_v11 = vpack.c.bf16 %v2700_v4, %v2699_v3  ;;  %v2285_v38 = vadd.f32 %v9596_v31, %v1784_v9  ;;  %v2670_v16 = vld [vmem:[%s11636_s7 + $0x618] sm:$0xff]  ;;  %v2701_v31 = vld [vmem:[%s11636_s7 + $0x710] sm:$0xff]  ;;  %v2671_v7 = vld [vmem:[%s11636_s7 + $0x620] sm:$0xff] }
 0x857   :  { %v2453_v27 = vmax.f32 %v2279_v21, 0.0  ;;  %v2672_v49 = vld [vmem:[%s11636_s7 + $0x628] sm:$0xff]  ;;  %v2690_v3 = vld [vmem:[%s11636_s7 + $0x6b8] sm:$0xff]  ;;  %v2721_v4 = vld [vmem:[%s11636_s7 + $0x7b0] sm:$0xff] }
 0x858   :  { %8023 = vmatpush3.bf16.msra.mxu1 %v8022_v42  ;;  %8055 = vmatpush3.bf16.msra.mxu0 %v8054_v47  ;;  %v1776_v42 = vrot.slane %v9703_v18, %v9414_v25  ;;  %v8034_v47 = vpack.c.bf16 %v2616_v35, %v2615_v23  ;;  %v2717_v23 = vld [vmem:[%s11636_s7 + $0x790] sm:$0xff]  ;;  %v2718_v35 = vld [vmem:[%s11636_s7 + $0x798] sm:$0xff] }
 0x859   :  { %8025 = vmatprep.subr.bf16.mxu1 %v8024_v32  ;;  %8057 = vmatprep.subr.bf16.mxu0 %v8056_v8  ;;  %v2618_v32 = vld [vmem:[%s11636_s7 + $0x478] sm:$0xff]  ;;  %v2649_v8 = vld [vmem:[%s11636_s7 + $0x570] sm:$0xff]  ;;  %v8108_v54 = vpack.c.bf16 %v2718_v35, %v2717_v23 }
 0x85a   :  { %v2202_v20 = vadd.f32 %v9562_v0, %v1776_v42  ;;  %v2210_v0 = vadd.f32 %v9604_v37, %v9737_v15  ;;  %v2208_v37 = vadd.f32 %v9594_v30, %v1776_v42  ;;  %v2669_v15 = vld [vmem:[%s11636_s7 + $0x610] sm:$0xff]  ;;  %v2702_v42 = vld [vmem:[%s11636_s7 + $0x718] sm:$0xff] }
 0x85c   :  { %8027 = vmatpush3.bf16.msra.mxu1 %v8026_v55  ;;  %8059 = vmatpush3.bf16.msra.mxu0 %v8058_v56  ;;  %v2715_v55 = vld [vmem:[%s11636_s7 + $0x780] sm:$0xff]  ;;  %v2716_v56 = vld [vmem:[%s11636_s7 + $0x788] sm:$0xff]  ;;  %v2451_v41 = vmax.f32 %v2202_v20, 0.0  ;;  %v2467_v9 = vmax.f32 %v2208_v37, 0.0  ;;  %v8082_v20 = vpack.c.bf16 %v2672_v49, %v2671_v7 }
 0x85d   :  { %8029 = vmatprep.subr.bf16.mxu1 %v8028_v63  ;;  %8061 = vmatprep.subr.bf16.mxu0 %v8060_v2  ;;  %v8038_v63 = vpack.c.bf16 %v2618_v32, %v2617_v12  ;;  %v8070_v2 = vpack.c.bf16 %v2650_v44, %v2649_v8  ;;  %v2687_v32 = vld [vmem:[%s11636_s7 + $0x6a0] sm:$0xff]  ;;  %v2720_v8 = vld [vmem:[%s11636_s7 + $0x7a8] sm:$0xff]  ;;  %v8110_v44 = vpack.c.bf16 %v2702_v42, %v2701_v31  ;;  %v2725_v31 = vld [vmem:[%s11636_s7 + $0x7d0] sm:$0xff] }
 0x85e   :  { %v2675_v37 = vld [vmem:[%s11636_s7 + $0x640] sm:$0xff]  ;;  %v2726_v42 = vld [vmem:[%s11636_s7 + $0x7d8] sm:$0xff]  ;;  %v2696_v49 = vld [vmem:[%s11636_s7 + $0x6e8] sm:$0xff] }
 0x85f   :  { %v2695_v7 = vld [vmem:[%s11636_s7 + $0x6e0] sm:$0xff] }
 0x860   :  { %8031 = vmatpush3.bf16.msra.mxu1 %v8030_v17  ;;  %8063 = vmatpush3.bf16.msra.mxu0 %v8062_v22  ;;  %v8104_v17 = vpack.c.bf16 %v2716_v56, %v2715_v55  ;;  %v2686_v22 = vld [vmem:[%s11636_s7 + $0x698] sm:$0xff] }
 0x861   :  { %8033 = vmatprep.subr.bf16.mxu1 %v8032_v39  ;;  %8065 = vmatprep.subr.bf16.mxu0 %v8064_v40  ;;  %v9953_v39 = vrot.slane %v9703_v18, %v9445_v36  ;;  %v9957_v40 = vrot.slane %v9703_v18, %v9466_v51  ;;  %v8076_v53 = vpack.c.bf16 %v2686_v22, %v2685_v6  ;;  %v2722_v6 = vld [vmem:[%s11636_s7 + $0x7b8] sm:$0xff] }
 0x862   :  { %v2674_v22 = vld [vmem:[%s11636_s7 + $0x638] sm:$0xff]  ;;  %v8116_v35 = vpack.c.bf16 %v2722_v6, %v2721_v4  ;;  %v2711_v4 = vld [vmem:[%s11636_s7 + $0x760] sm:$0xff]  ;;  %v2712_v6 = vld [vmem:[%s11636_s7 + $0x768] sm:$0xff] }
 0x863   :  { %v2358_v12 = vadd.f32 %v9642_v59, %v9953_v39  ;;  %v2435_v30 = vadd.f32 %v9644_v60, %v9957_v40  ;;  %v2688_v59 = vld [vmem:[%s11636_s7 + $0x6a8] sm:$0xff]  ;;  %v2719_v60 = vld [vmem:[%s11636_s7 + $0x7a0] sm:$0xff] }
 0x864   :  { %8035 = vmatpush3.bf16.msra.mxu1 %v8034_v47  ;;  %8067 = vmatpush3.bf16.msra.mxu0 %v8066_v48  ;;  %v2468_v47 = vmax.f32 %v2210_v0, 0.0  ;;  %v2470_v48 = vmax.f32 %v2287_v1, 0.0  ;;  %v8080_v61 = vpack.c.bf16 %v2688_v59, %v2687_v32  ;;  %v8112_v62 = vpack.c.bf16 %v2720_v8, %v2719_v60  ;;  %v2705_v0 = vld [vmem:[%s11636_s7 + $0x730] sm:$0xff]  ;;  %v2706_v1 = vld [vmem:[%s11636_s7 + $0x738] sm:$0xff] }
 0x865   :  { %8037 = vmatprep.subr.bf16.mxu1 %v8036_v43  ;;  %8069 = vmatprep.subr.bf16.mxu0 %v8068_v19  ;;  %v2469_v43 = vmax.f32 %v2285_v38, 0.0  ;;  %v8078_v19 = vpack.c.bf16 %v2670_v16, %v2669_v15  ;;  %v2456_v55 = vmax.f32 %v2358_v12, 0.0  ;;  %v2458_v56 = vmax.f32 %v2435_v30, 0.0  ;;  %v2676_v38 = vld [vmem:[%s11636_s7 + $0x648] sm:$0xff]  ;;  %v2693_v12 = vld [vmem:[%s11636_s7 + $0x6d0] sm:$0xff]  ;;  %v2694_v30 = vld [vmem:[%s11636_s7 + $0x6d8] sm:$0xff] }
 0x866   :  { %v8090_v32 = vpack.c.bf16 %v2676_v38, %v2675_v37  ;;  %v2677_v60 = vld [vmem:[%s11636_s7 + $0x650] sm:$0xff]  ;;  %v2678_v8 = vld [vmem:[%s11636_s7 + $0x658] sm:$0xff] }
 0x868   :  { %8039 = vmatpush3.bf16.msra.mxu1 %v8038_v63  ;;  %8071 = vmatpush3.bf16.msra.mxu0 %v8070_v2  ;;  %v2703_v63 = vld [vmem:[%s11636_s7 + $0x720] sm:$0xff]  ;;  %v2704_v2 = vld [vmem:[%s11636_s7 + $0x728] sm:$0xff] }
 0x869   :  { %8073 = vmatprep.subr.bf16.mxu1 %v8072_v24  ;;  %8105 = vmatprep.subr.bf16.mxu0 %v8104_v17  ;;  %v2689_v24 = vld [vmem:[%s11636_s7 + $0x6b0] sm:$0xff]  ;;  %v8114_v21 = vpack.c.bf16 %v2704_v2, %v2703_v63  ;;  %v2679_v63 = vld [vmem:[%s11636_s7 + $0x660] sm:$0xff]  ;;  %v2680_v2 = vld [vmem:[%s11636_s7 + $0x668] sm:$0xff] }
 0x86a   :  { %v2673_v17 = vld [vmem:[%s11636_s7 + $0x630] sm:$0xff]  ;;  %v8084_v23 = vpack.c.bf16 %v2690_v3, %v2689_v24  ;;  %v8096_v24 = vpack.c.bf16 %v2696_v49, %v2695_v7 }
 0x86b   :  { %3103 = vmatmul.mubr.f32.vlgmr.msra.gmra.mrb[42].mxu1 %v2451_v41  ;;  %3178 = vmatmul.mubr.f32.vlgmr.msra.gmra.mrb[42].mxu0 %v2453_v27  ;;  %v8086_v41 = vpack.c.bf16 %v2674_v22, %v2673_v17  ;;  %v8118_v27 = vpack.c.bf16 %v2706_v1, %v2705_v0  ;;  %v2729_v17 = vld [vmem:[%s11636_s7 + $0x7f0] sm:$0xff]  ;;  %v2730_v22 = vld [vmem:[%s11636_s7 + $0x7f8] sm:$0xff]  ;;  %v8130_v0 = vpack.c.bf16 %v2712_v6, %v2711_v4 }
 0x86c   :  { %3107 = vmatprep.mubr.f32.mxu1 %v2468_v47  ;;  %3182 = vmatprep.mubr.f32.mxu0 %v2470_v48  ;;  %v2707_v47 = vld [vmem:[%s11636_s7 + $0x740] sm:$0xff]  ;;  %v2708_v48 = vld [vmem:[%s11636_s7 + $0x748] sm:$0xff]  ;;  %v2681_v1 = vld [vmem:[%s11636_s7 + $0x670] sm:$0xff] }
 0x86d   :  { %8075 = vmatpush3.bf16.msra.mxu1 %v8074_v5  ;;  %8107 = vmatpush3.bf16.msra.mxu0 %v8106_v11  ;;  %v2691_v5 = vld [vmem:[%s11636_s7 + $0x6c0] sm:$0xff]  ;;  %v2692_v11 = vld [vmem:[%s11636_s7 + $0x6c8] sm:$0xff]  ;;  %v8122_v59 = vpack.c.bf16 %v2708_v48, %v2707_v47  ;;  %v2441_v47 = vadd.f32 %v9683_v34, %v9957_v40 }
 0x86e   :  { %8077 = vmatprep.subr.bf16.mxu1 %v8076_v53  ;;  %8109 = vmatprep.subr.bf16.mxu0 %v8108_v54  ;;  %v2723_v53 = vld [vmem:[%s11636_s7 + $0x7c0] sm:$0xff]  ;;  %v2724_v54 = vld [vmem:[%s11636_s7 + $0x7c8] sm:$0xff]  ;;  %v8088_v15 = vpack.c.bf16 %v2692_v11, %v2691_v5  ;;  %v1800_v5 = vrot.slane %v9703_v18, %v9640_v57 }
 0x86f   :  { %3108 = vmatmul.mubr.f32.gmra.mrb[44].mxu1 %v2467_v9  ;;  %3183 = vmatmul.mubr.f32.gmra.mrb[44].mxu0 %v2469_v43  ;;  %v8120_v16 = vpack.c.bf16 %v2724_v54, %v2723_v53  ;;  %v8092_v9 = vpack.c.bf16 %v2694_v30, %v2693_v12  ;;  %v8124_v43 = vpack.c.bf16 %v2726_v42, %v2725_v31  ;;  %v2682_v54 = vld [vmem:[%s11636_s7 + $0x678] sm:$0xff] }
 0x870   :  { %3252 = vmatprep.mubr.f32.mxu1 %v2456_v55  ;;  %3327 = vmatprep.mubr.f32.mxu0 %v2458_v56  ;;  %v2727_v55 = vld [vmem:[%s11636_s7 + $0x7e0] sm:$0xff]  ;;  %v2728_v56 = vld [vmem:[%s11636_s7 + $0x7e8] sm:$0xff]  ;;  %v8132_v53 = vpack.c.bf16 %v2730_v22, %v2729_v17  ;;  %v8102_v37 = vpack.c.bf16 %v2682_v54, %v2681_v1  ;;  %v2439_v31 = vadd.f32 %v9668_v14, %v1800_v5 }
 0x871   :  { %8079 = vmatpush3.bf16.msra.mxu1 %v8078_v19  ;;  %8111 = vmatpush3.bf16.msra.mxu0 %v8110_v44  ;;  %v2709_v19 = vld [vmem:[%s11636_s7 + $0x750] sm:$0xff]  ;;  %v2710_v44 = vld [vmem:[%s11636_s7 + $0x758] sm:$0xff]  ;;  %v8128_v3 = vpack.c.bf16 %v2728_v56, %v2727_v55 }
 0x872   :  { %8081 = vmatprep.subr.bf16.mxu1 %v8080_v61  ;;  %8113 = vmatprep.subr.bf16.mxu0 %v8112_v62  ;;  %v8094_v61 = vpack.c.bf16 %v2678_v8, %v2677_v60  ;;  %v8126_v62 = vpack.c.bf16 %v2710_v44, %v2709_v19 }
 0x875   :  { %8083 = vmatpush3.bf16.msra.mxu1 %v8082_v20  ;;  %8115 = vmatpush3.bf16.msra.mxu0 %v8114_v21  ;;  %v2697_v20 = vld [vmem:[%s11636_s7 + $0x6f0] sm:$0xff]  ;;  %v2698_v21 = vld [vmem:[%s11636_s7 + $0x6f8] sm:$0xff] }
 0x876   :  { %8085 = vmatprep.subr.bf16.mxu1 %v8084_v23  ;;  %8117 = vmatprep.subr.bf16.mxu0 %v8116_v35  ;;  %v1792_v23 = vrot.slane %v9703_v18, %v9627_v46  ;;  %v8098_v35 = vpack.c.bf16 %v2680_v2, %v2679_v63  ;;  %v8100_v11 = vpack.c.bf16 %v2698_v21, %v2697_v20 }
 0x878   :  { %v2356_v38 = vadd.f32 %v9629_v50, %v1792_v23  ;;  %v2362_v30 = vadd.f32 %v9666_v13, %v1792_v23  ;;  %v6828_v13 = vld [vmem:[%s11638_s8] ss:$0 sm:$0xff] }
 0x879   :  { %8087 = vmatpush3.bf16.msra.mxu1 %v8086_v41  ;;  %8119 = vmatpush3.bf16.msra.mxu0 %v8118_v27  ;;  %v2713_v41 = vld [vmem:[%s11636_s7 + $0x770] sm:$0xff]  ;;  %v2714_v27 = vld [vmem:[%s11636_s7 + $0x778] sm:$0xff] }
 0x87a   :  { %8089 = vmatprep.subr.bf16.mxu1 %v8088_v15  ;;  %8121 = vmatprep.subr.bf16.mxu0 %v8120_v16  ;;  %v8134_v18 = vpack.c.bf16 %v2714_v27, %v2713_v41  ;;  %v2433_v15 = vadd.f32 %v9631_v52, %v1800_v5  ;;  %v2364_v16 = vadd.f32 %v9681_v33, %v9953_v39  ;;  %v2455_v48 = vmax.f32 %v2356_v38, 0.0 }
 0x87b   :  { %v2474_v52 = vmax.f32 %v2441_v47, 0.0  ;;  %v2471_v33 = vmax.f32 %v2362_v30, 0.0  ;;  %v2473_v39 = vmax.f32 %v2439_v31, 0.0 }
 0x87c   :  { %v2457_v12 = vmax.f32 %v2433_v15, 0.0  ;;  %v2472_v50 = vmax.f32 %v2364_v16, 0.0 }
 0x87d   :  { %8091 = vmatpush3.bf16.msra.mxu1 %v8090_v32  ;;  %8123 = vmatpush3.bf16.msra.mxu0 %v8122_v59 }
 0x87e   :  { %8093 = vmatprep.subr.bf16.mxu1 %v8092_v9  ;;  %8125 = vmatprep.subr.bf16.mxu0 %v8124_v43 }
 0x881   :  { %8095 = vmatpush3.bf16.msra.mxu1 %v8094_v61  ;;  %8127 = vmatpush3.bf16.msra.mxu0 %v8126_v62 }
 0x882   :  { %8097 = vmatprep.subr.bf16.mxu1 %v8096_v24  ;;  %8129 = vmatprep.subr.bf16.mxu0 %v8128_v3 }
 0x885   :  { %8099 = vmatpush3.bf16.msra.mxu1 %v8098_v35  ;;  %8131 = vmatpush3.bf16.msra.mxu0 %v8130_v0 }
 0x886   :  { %8101 = vmatprep.subr.bf16.mxu1 %v8100_v11  ;;  %8133 = vmatprep.subr.bf16.mxu0 %v8132_v53 }
 0x889   :  { %8103 = vmatpush3.bf16.msra.mxu1 %v8102_v37  ;;  %8135 = vmatpush3.bf16.msra.mxu0 %v8134_v18 }
 0x88a   :  { %7703 = vmatprep.subr.mxu0 %v8569_v10 }
 0x88c   :  { %3253 = vmatmul.mubr.f32.vlgmr.msra.gmra.mrb[46].mxu1 %v2455_v48  ;;  %3328 = vmatmul.mubr.f32.vlgmr.msra.gmra.mrb[46].mxu0 %v2457_v12 }
 0x88d   :  { %3257 = vmatprep.mubr.f32.mxu1 %v2472_v50  ;;  %3332 = vmatprep.mubr.f32.mxu0 %v2474_v52 }
 0x890   :  { %3258 = vmatmul.mubr.f32.gmra.mrb[48].mxu1 %v2471_v33  ;;  %3333 = vmatmul.mubr.f32.gmra.mrb[48].mxu0 %v2473_v39 }
 0x891   :  { %7705 = vmatprep.mubr.msk.f32.mxu0 %vm8572_vm1, %v8569_v10 }
 0x8fd   :  { %v6960_v34 = vpop.f32.mrb[34].mxu1  ;;  %v6998_v40 = vpop.f32.mrb[34].mxu0 }
 0x8fe   :  { %v6961_v14 = vpop.f32.mrb[35].mxu1  ;;  %v6999_v42 = vpop.f32.mrb[35].mxu0 }
 0x8ff   :  { %v6962_v32 = vadd.f32 %v6961_v14, %v6960_v34  ;;  %v7000_v59 = vadd.f32 %v6999_v42, %v6998_v40 }
 0x901   :  { %v2805_v60 = vadd.f32 %v6962_v32, %v6828_v13  ;;  %v6963_v8 = vpop.f32.mrb[36].mxu1  ;;  %v7001_v9 = vpop.f32.mrb[36].mxu0 }
 0x902   :  { %v6964_v43 = vpop.f32.mrb[37].mxu1  ;;  %v7002_v19 = vpop.f32.mrb[37].mxu0 }
 0x903   :  { %v2880_v44 = vadd.f32 %v7000_v59, %v2805_v60  ;;  %v6965_v7 = vadd.f32 %v6964_v43, %v6963_v8  ;;  %v7003_v49 = vadd.f32 %v7002_v19, %v7001_v9 }
 0x905   :  { %v2810_v55 = vadd.f32 %v6965_v7, %v6828_v13 }
 0x907   :  { %v2885_v56 = vadd.f32 %v7003_v49, %v2810_v55 }
 0x91d   :  { %v7036_v61 = vpop.f32.mrb[38].mxu1  ;;  %v7074_v62 = vpop.f32.mrb[38].mxu0 }
 0x91e   :  { %v7037_v63 = vpop.f32.mrb[39].mxu1  ;;  %v7075_v2 = vpop.f32.mrb[39].mxu0 }
 0x91f   :  { %v7038_v24 = vadd.f32 %v7037_v63, %v7036_v61  ;;  %v7076_v3 = vadd.f32 %v7075_v2, %v7074_v62 }
 0x921   :  { %v2955_v4 = vadd.f32 %v7038_v24, %v2880_v44  ;;  %v7039_v6 = vpop.f32.mrb[40].mxu1  ;;  %v7077_v20 = vpop.f32.mrb[40].mxu0 }
 0x922   :  { %v7040_v21 = vpop.f32.mrb[41].mxu1  ;;  %v7078_v17 = vpop.f32.mrb[41].mxu0 }
 0x923   :  { %v3030_v22 = vadd.f32 %v7076_v3, %v2955_v4  ;;  %v7041_v23 = vadd.f32 %v7040_v21, %v7039_v6  ;;  %v7079_v35 = vadd.f32 %v7078_v17, %v7077_v20  ;;  %v3385_v20 = vld [vmem:[%s11639_s10 + $0x8] sm:$0xff]  ;;  %v3386_v17 = vld [vmem:[%s11639_s10 + $0x10] sm:$0xff] }
 0x925   :  { %v2960_v0 = vadd.f32 %v7041_v23, %v2885_v56 }
 0x927   :  { %v3035_v1 = vadd.f32 %v7079_v35, %v2960_v0 }
 0x93e   :  { %v7112_v5 = vpop.f32.mrb[42].mxu1  ;;  %v7150_v11 = vpop.f32.mrb[42].mxu0 }
 0x93f   :  { %v7113_v53 = vpop.f32.mrb[43].mxu1  ;;  %v7151_v54 = vpop.f32.mrb[43].mxu0 }
 0x940   :  { %v7114_v41 = vadd.f32 %v7113_v53, %v7112_v5  ;;  %v7152_v27 = vadd.f32 %v7151_v54, %v7150_v11 }
 0x942   :  { %v3105_v37 = vadd.f32 %v7114_v41, %v3030_v22  ;;  %v7115_v18 = vpop.f32.mrb[44].mxu1  ;;  %v7153_v38 = vpop.f32.mrb[44].mxu0  ;;  %v3387_v22 = vld [vmem:[%s11639_s10 + $0x18] sm:$0xff]  ;;  %v6829_v41 = vld [vmem:[%s11579_s11] ss:$0 sm:$0xff] }
 0x943   :  { %v7116_v15 = vpop.f32.mrb[45].mxu1  ;;  %v7154_v16 = vpop.f32.mrb[45].mxu0  ;;  %v8140_v23 = vpack.c.bf16 %v3387_v22, %v3386_v17 }
 0x944   :  { %v3180_v47 = vadd.f32 %v7152_v27, %v3105_v37  ;;  %v7117_v48 = vadd.f32 %v7116_v15, %v7115_v18  ;;  %v7155_v12 = vadd.f32 %v7154_v16, %v7153_v38  ;;  %v6830_v37 = vld [vmem:[%s11580_s12] ss:$0 sm:$0xff]  ;;  %s11640_s12 = smov 104  }
 0x946   :  { %v3110_v30 = vadd.f32 %v7117_v48, %v3035_v1 }
 0x948   :  { %v3185_v31 = vadd.f32 %v7155_v12, %v3110_v30  ;;  %v6831_v12 = vld [vmem:[%s11581_s14] ss:$0 sm:$0xff]  ;;  %s11643_s14 = smov 64  }
 0x95f   :  { %v7188_v50 = vpop.f32.mrb[46].mxu1  ;;  %v7226_v52 = vpop.f32.mrb[46].mxu0 }
 0x960   :  { %v7189_v33 = vpop.f32.mrb[47].mxu1  ;;  %v7227_v39 = vpop.f32.mrb[47].mxu0 }
 0x961   :  { %v7190_v34 = vadd.f32 %v7189_v33, %v7188_v50  ;;  %v7228_v40 = vadd.f32 %v7227_v39, %v7226_v52 }
 0x963   :  { %v3255_v13 = vadd.f32 %v7190_v34, %v3180_v47  ;;  %v7191_v14 = vpop.f32.mrb[48].mxu1  ;;  %v7229_v42 = vpop.f32.mrb[48].mxu0 }
 0x964   :  { %v7192_v32 = vpop.f32.mrb[49].mxu1  ;;  %v7230_v59 = vpop.f32.mrb[49].mxu0 }
 0x965   :  { %v3330_v60 = vadd.f32 %v7228_v40, %v3255_v13  ;;  %v7193_v8 = vadd.f32 %v7192_v32, %v7191_v14  ;;  %v7231_v9 = vadd.f32 %v7230_v59, %v7229_v42 }
 0x967   :  { %v3260_v43 = vadd.f32 %v7193_v8, %v3185_v31  ;;  %v3338_v19 = vadd.f32 %v3330_v60, %v9051_v45 }
 0x969   :  { %v3335_v44 = vadd.f32 %v7231_v9, %v3260_v43  ;;  %v3342_v7 = vsel %vm101_vm0, %v3338_v19, 0.0 }
 0x96a   :  { %3343 = vadd.xlane.f32.xlu1 %v3342_v7 }
 0x96b   :  { %v3339_v49 = vadd.f32 %v3335_v44, %v9082_v58  ;;  %v3384_v58 = vld [vmem:[%s11639_s10] sm:$0xff] }
 0x96c   :  { %v8136_v21 = vpack.c.bf16 %v3385_v20, %v3384_v58 }
 0x96d   :  { %v3345_v55 = vsel %vm101_vm0, %v3339_v49, 0.0 }
 0x96e   :  { %3346 = vadd.xlane.f32.xlu0 %v3345_v55  ;;  %8137 = vmatprep.subr.bf16.mxu1 %v8136_v21 }
 0x96f   :  { %8139 = vmatpush3.bf16.msra.mxu1 %v8136_v21 }
 0x970   :  { %8141 = vmatprep.subr.bf16.mxu1 %v8140_v23 }
 0x973   :  { %8143 = vmatpush3.bf16.msra.mxu1 %v8140_v23 }
 0x974   :  { %7698 = vmatprep.subr.mxu1 %v8569_v10 }
 0x9f7   :  { %v3344_v56 = vpop.xlane.xlu1 %3343 }
 0x9f8   :  { %v3348_v61 = vmul.f32 0.03125, %v3344_v56 }
 0x9fa   :  { %v3350_v62 = vsub.f32 %v3338_v19, %v3348_v61 }
 0x9fb   :  { %v3347_v63 = vpop.xlane.xlu0 %3346 }
 0x9fc   :  { %v3349_v2 = vmul.f32 0.03125, %v3347_v63  ;;  %v3352_v24 = vmul.f32 %v3350_v62, %v3350_v62 }
 0x9fe   :  { %v3351_v3 = vsub.f32 %v3339_v49, %v3349_v2  ;;  %v3354_v4 = vsel %vm101_vm0, %v3352_v24, 0.0 }
 0x9ff   :  { %3355 = vadd.xlane.f32.xlu1 %v3354_v4 }
 0xa00   :  { %v3353_v45 = vmul.f32 %v3351_v3, %v3351_v3 }
 0xa02   :  { %v3357_v6 = vsel %vm101_vm0, %v3353_v45, 0.0 }
 0xa03   :  { %3358 = vadd.xlane.f32.xlu0 %v3357_v6 }
 0xa8c   :  { %v3356_v35 = vpop.xlane.xlu1 %3355 }
 0xa8d   :  { %v3360_v0 = vmul.f32 0.03125, %v3356_v35 }
 0xa8f   :  { %v3362_v1 = vadd.f32 1e-05, %v3360_v0 }
 0xa90   :  { %v3359_v5 = vpop.xlane.xlu0 %3358 }
 0xa91   :  { %8525 = vrsqrt.f32 %v3362_v1  ;;  %v3361_v11 = vmul.f32 0.03125, %v3359_v5 }
 0xa93   :  { %v3363_v53 = vadd.f32 1e-05, %v3361_v11 }
 0xa95   :  { %8527 = vrsqrt.f32 %v3363_v53 }
 0xa9b   :  { %v8526_v54 = vpop.eup %8525 }
 0xa9c   :  { %v3366_v27 = vmul.f32 %v8526_v54, %v3350_v62 }
 0xa9e   :  { %v3374_v18 = vmul.f32 %v6829_v41, %v3366_v27 }
 0xa9f   :  { %v8528_v38 = vpop.eup %8527 }
 0xaa0   :  { %v3367_v15 = vmul.f32 %v8528_v38, %v3351_v3  ;;  %v10164_v16 = vadd.f32 %v6830_v37, %v3374_v18 }
 0xaa2   :  { %v3375_v47 = vmul.f32 %v6829_v41, %v3367_v15  ;;  %7695 = vmatprep.mubr.msk.f32.mxu1 %vm101_vm0, %v10164_v16 }
 0xaa4   :  { %v10168_v48 = vadd.f32 %v6830_v37, %v3375_v47 }
 0xaa6   :  { %7696 = vmatmul.mubr.msk.f32.vlgmr.msra.gmra.mrb[50].mxu1 %vm101_vm0, %v10168_v48 }
 0xaa7   :  { %7700 = vmatprep.mubr.msk.f32.mxu1 %vm8572_vm1, %v8569_v10 }
 0xb79   :  { %v7697_v30 = vpop.f32.mrb[50].mxu1 }
 0xb7a   :  { %v10177_v31 = vadd.f32 %v7697_v30, %v6831_v12  ;;  %v3467_v50 = vpop.f32.mrb[51].mxu1 }
 0xb7b   :  { %v10179_v52 = vadd.f32 %v6831_v12, %v3467_v50 }
 0xb7c   :  { %3480 = vrot.lane.b32.xlu0 %v10177_v31, %s8571_s30 }
 0xb7d   :  { %3478 = vrot.lane.b32.xlu1 %v10179_v52, %s8571_s30 }
 0xb80   :  { %3486 = vrot.lane.b32.xlu0 %v10179_v52, %s11640_s12 }
 0xb81   :  { %3482 = vrot.lane.b32.xlu1 %v10179_v52, %s11641_s4 }
 0xb84   :  { %3490 = vrot.lane.b32.xlu0 %v10179_v52, %s11642_s0 }
 0xb85   :  { %3484 = vrot.lane.b32.xlu1 %v10177_v31, %s11641_s4 }
 0xb89   :  { %3488 = vrot.lane.b32.xlu1 %v10177_v31, %s11640_s12 }
 0xb8d   :  { %3566 = vrot.lane.b32.xlu1 %v10177_v31, %s11642_s0 }
 0xbee   :  { %v10197_v33 = vpop.permute.xlu0 %3480 }
 0xbef   :  { %3718 = vrot.lane.b32.xlu1 %v10197_v33, %s11642_s0  ;;  %v10201_v39 = vpop.permute.xlu1 %3478 }
 0xbf0   :  { %3642 = vrot.lane.b32.xlu0 %v10201_v39, %s11642_s0 }
 0xbf2   :  { %v10205_v34 = vpop.permute.xlu0 %3486 }
 0xbf3   :  { %v10207_v40 = vpop.permute.xlu1 %3482 }
 0xbf4   :  { %3794 = vrot.lane.b32.xlu0 %v10207_v40, %s11642_s0 }
 0xbf6   :  { %v3491_v13 = vpop.permute.xlu0 %3490 }
 0xbf7   :  { %7699 = vmatpush3.xpose.msk.msra.mxu1 %vm199_vm2, %v3491_v13  ;;  %v10212_v14 = vpop.permute.xlu1 %3484 }
 0xbf8   :  { %3946 = vrot.lane.b32.xlu0 %v10205_v34, %s11642_s0  ;;  %3870 = vrot.lane.b32.xlu1 %v10212_v14, %s11642_s0 }
 0xbf9   :  { %7708 = vmatprep.subr.mxu1 %v8569_v10 }
 0xbfa   :  { %7701 = vmatmul.mubr.msk.f32.vlgmr.msra.gmra.mrb[52].mxu1 %vm199_vm2, %v10179_v52 }
 0xbfb   :  { %v10221_v42 = vpop.permute.xlu1 %3488  ;;  %7710 = vmatprep.mubr.msk.f32.mxu1 %vm8572_vm1, %v8569_v10 }
 0xbfc   :  { %4022 = vrot.lane.b32.xlu1 %v10221_v42, %s11642_s0 }
 0xbff   :  { %v3567_v32 = vpop.permute.xlu1 %3566 }
 0xc00   :  { %7704 = vmatpush3.xpose.msk.msra.mxu0 %vm199_vm2, %v3567_v32 }
 0xc01   :  { %7713 = vmatprep.subr.mxu0 %v8569_v10 }
 0xc03   :  { %7706 = vmatmul.mubr.msk.f32.vlgmr.msra.gmra.mrb[50].mxu0 %vm199_vm2, %v10177_v31 }
 0xc04   :  { %7715 = vmatprep.mubr.msk.f32.mxu0 %vm8572_vm1, %v8569_v10 }
 0xc61   :  { %v3719_v59 = vpop.permute.xlu1 %3718 }
 0xc62   :  { %v3643_v60 = vpop.permute.xlu0 %3642  ;;  %7714 = vmatpush3.xpose.msk.msra.mxu0 %vm199_vm2, %v3719_v59 }
 0xc63   :  { %7709 = vmatpush3.xpose.msk.msra.mxu1 %vm199_vm2, %v3643_v60  ;;  %7723 = vmatprep.subr.mxu0 %v8569_v10 }
 0xc64   :  { %7718 = vmatprep.subr.mxu1 %v8569_v10 }
 0xc65   :  { %7716 = vmatmul.mubr.msk.f32.vlgmr.msra.gmra.mrb[52].mxu0 %vm199_vm2, %v10197_v33 }
 0xc66   :  { %7711 = vmatmul.mubr.msk.f32.vlgmr.msra.gmra.mrb[54].mxu1 %vm199_vm2, %v10201_v39  ;;  %v3795_v8 = vpop.permute.xlu0 %3794  ;;  %7725 = vmatprep.mubr.msk.f32.mxu0 %vm8572_vm1, %v8569_v10 }
 0xc67   :  { %7719 = vmatpush3.xpose.msk.msra.mxu1 %vm199_vm2, %v3795_v8  ;;  %7720 = vmatprep.mubr.msk.f32.mxu1 %vm8572_vm1, %v8569_v10 }
 0xc68   :  { %7728 = vmatprep.subr.mxu1 %v8569_v10 }
 0xc6a   :  { %7721 = vmatmul.mubr.msk.f32.vlgmr.msra.gmra.mrb[56].mxu1 %vm199_vm2, %v10207_v40  ;;  %v3947_v9 = vpop.permute.xlu0 %3946  ;;  %v3871_v43 = vpop.permute.xlu1 %3870 }
 0xc6b   :  { %7724 = vmatpush3.xpose.msk.msra.mxu0 %vm199_vm2, %v3871_v43  ;;  %7729 = vmatpush3.xpose.msk.msra.mxu1 %vm199_vm2, %v3947_v9 }
 0xc6c   :  { %7730 = vmatprep.mubr.msk.f32.mxu1 %vm8572_vm1, %v8569_v10  ;;  %7733 = vmatprep.subr.mxu0 %v8569_v10 }
 0xc6d   :  { %7738 = vmatprep.subr.mxu1 %v8569_v10 }
 0xc6e   :  { %7726 = vmatmul.mubr.msk.f32.vlgmr.msra.gmra.mrb[54].mxu0 %vm199_vm2, %v10212_v14  ;;  %7731 = vmatmul.mubr.msk.f32.vlgmr.msra.gmra.mrb[58].mxu1 %vm199_vm2, %v10205_v34  ;;  %v4023_v19 = vpop.permute.xlu1 %4022 }
 0xc6f   :  { %7734 = vmatpush3.xpose.msk.msra.mxu0 %vm199_vm2, %v4023_v19  ;;  %7735 = vmatprep.mubr.msk.f32.mxu0 %vm8572_vm1, %v8569_v10 }
 0xc70   :  { %7743 = vmatprep.subr.mxu0 %v8569_v10  ;;  %7740 = vmatprep.mubr.msk.f32.mxu1 %vm8572_vm1, %v8569_v10 }
 0xc72   :  { %7736 = vmatmul.mubr.msk.f32.vlgmr.msra.gmra.mrb[56].mxu0 %vm199_vm2, %v10221_v42 }
 0xc73   :  { %7745 = vmatprep.mubr.msk.f32.mxu0 %vm8572_vm1, %v8569_v10 }
 0xccd   :  { %v3562_v44 = vpop.f32.mrb[52].mxu1 }
 0xcce   :  { %v7702_v7 = vpop.f32.mrb[53].mxu1  ;;  %v4098_v49 = vsel %vm199_vm2, %v3562_v44, -inf }
 0xccf   :  { %4099 = vmax.xlane.f32.xlu0 %v4098_v49 }
 0xcd6   :  { %v3638_v55 = vpop.f32.mrb[50].mxu0 }
 0xcd7   :  { %v7707_v56 = vpop.f32.mrb[51].mxu0  ;;  %v4101_v61 = vsel %vm199_vm2, %v3638_v55, -inf }
 0xcd8   :  { %4102 = vmax.xlane.f32.xlu1 %v4101_v61 }
 0xd38   :  { %v3790_v62 = vpop.f32.mrb[52].mxu0 }
 0xd39   :  { %v3714_v63 = vpop.f32.mrb[54].mxu1  ;;  %v7717_v2 = vpop.f32.mrb[53].mxu0  ;;  %v4107_v58 = vsel %vm199_vm2, %v3790_v62, -inf }
 0xd3a   :  { %v7712_v24 = vpop.f32.mrb[55].mxu1  ;;  %v4104_v3 = vsel %vm199_vm2, %v3714_v63, -inf }
 0xd3b   :  { %4105 = vmax.xlane.f32.xlu0 %v4104_v3 }
 0xd3d   :  { %v3866_v4 = vpop.f32.mrb[56].mxu1 }
 0xd3e   :  { %v7722_v45 = vpop.f32.mrb[57].mxu1  ;;  %v4110_v6 = vsel %vm199_vm2, %v3866_v4, -inf }
 0xd3f   :  { %4111 = vmax.xlane.f32.xlu1 %v4110_v6  ;;  %4108 = vmax.xlane.f32.xlu0 %v4107_v58 }
 0xd41   :  { %v3942_v20 = vpop.f32.mrb[54].mxu0  ;;  %v4018_v21 = vpop.f32.mrb[58].mxu1 }
 0xd42   :  { %v7727_v17 = vpop.f32.mrb[55].mxu0  ;;  %v7732_v22 = vpop.f32.mrb[59].mxu1  ;;  %v4116_v23 = vsel %vm199_vm2, %v4018_v21, -inf  ;;  %v4113_v35 = vsel %vm199_vm2, %v3942_v20, -inf }
 0xd43   :  { %4117 = vmax.xlane.f32.xlu1 %v4116_v23  ;;  %4114 = vmax.xlane.f32.xlu0 %v4113_v35 }
 0xd45   :  { %v4094_v0 = vpop.f32.mrb[56].mxu0 }
 0xd46   :  { %v7737_v1 = vpop.f32.mrb[57].mxu0  ;;  %v4119_v5 = vsel %vm199_vm2, %v4094_v0, -inf }
 0xd47   :  { %4120 = vmax.xlane.f32.xlu0 %v4119_v5 }
 0xd54   :  { %4186 = vrot.lane.b32.xlu1 %v10179_v52, %s11643_s14 }
 0xd58   :  { %4338 = vrot.lane.b32.xlu1 %v10201_v39, %s11643_s14 }
 0xd5c   :  { %4414 = vrot.lane.b32.xlu1 %v10197_v33, %s11643_s14  ;;  %v4100_v54 = vpop.xlane.xlu0 %4099 }
 0xd5d   :  { %4262 = vrot.lane.b32.xlu0 %v10177_v31, %s11643_s14  ;;  %v4122_v41 = vsub.f32 %v3562_v44, %v4100_v54 }
 0xd5f   :  { %v4130_v37 = vmul.f32 1.442695, %v4122_v41 }
 0xd60   :  { %4566 = vrot.lane.b32.xlu1 %v10212_v14, %s11643_s14 }
 0xd61   :  { %4490 = vrot.lane.b32.xlu0 %v10207_v40, %s11643_s14 }
 0xd65   :  { %v4103_v11 = vpop.xlane.xlu1 %4102 }
 0xd66   :  { %v4123_v53 = vsub.f32 %v3638_v55, %v4103_v11 }
 0xd68   :  { %v4132_v27 = vmul.f32 1.442695, %v4123_v53 }
 0xd6a   :  { %8529 = vpow2.f32 %v4132_v27 }
 0xd6b   :  { %8531 = vpow2.f32 %v4130_v37 }
 0xd74   :  { %v10289_v18 = vpop.eup %8529 }
 0xd75   :  { %v4149_v38 = vsel %vm199_vm2, %v10289_v18, 0.0  ;;  %v10293_v15 = vpop.eup %8531 }
 0xd76   :  { %v4146_v47 = vsel %vm199_vm2, %v10293_v15, 0.0 }
 0xd80   :  { %4150 = vadd.xlane.f32.xlu0 %v4149_v38 }
 0xd84   :  { %4147 = vadd.xlane.f32.xlu1 %v4146_v47 }
 0xdc8   :  { %v4106_v12 = vpop.xlane.xlu0 %4105 }
 0xdc9   :  { %v4124_v30 = vsub.f32 %v3714_v63, %v4106_v12 }
 0xdcb   :  { %v4134_v31 = vmul.f32 1.442695, %v4124_v30 }
 0xdcc   :  { %v4109_v50 = vpop.xlane.xlu0 %4108  ;;  %v4112_v52 = vpop.xlane.xlu1 %4111 }
 0xdcd   :  { %8533 = vpow2.f32 %v4134_v31  ;;  %v4125_v33 = vsub.f32 %v3790_v62, %v4109_v50  ;;  %v4126_v39 = vsub.f32 %v3866_v4, %v4112_v52 }
 0xdcf   :  { %v4136_v40 = vmul.f32 1.442695, %v4125_v33  ;;  %v4138_v13 = vmul.f32 1.442695, %v4126_v39 }
 0xdd0   :  { %v4115_v14 = vpop.xlane.xlu0 %4114  ;;  %v4118_v32 = vpop.xlane.xlu1 %4117 }
 0xdd1   :  { %8535 = vpow2.f32 %v4136_v40  ;;  %v4127_v59 = vsub.f32 %v3942_v20, %v4115_v14  ;;  %v4128_v60 = vsub.f32 %v4018_v21, %v4118_v32 }
 0xdd2   :  { %8537 = vpow2.f32 %v4138_v13 }
 0xdd3   :  { %v4140_v8 = vmul.f32 1.442695, %v4127_v59  ;;  %v4142_v9 = vmul.f32 1.442695, %v4128_v60 }
 0xdd4   :  { %v4121_v43 = vpop.xlane.xlu0 %4120  ;;  %v4187_v19 = vpop.permute.xlu1 %4186 }
 0xdd5   :  { %8539 = vpow2.f32 %v4140_v8  ;;  %v4129_v44 = vsub.f32 %v4094_v0, %v4121_v43  ;;  %7739 = vmatpush3.msra.mxu1 %v4187_v19  ;;  %v4824_v8 = vld [vmem:[%s11582_s15] sm:$0xff]  ;;  %v4826_v19 = vld [vmem:[%s11582_s15 + $0x10] sm:$0xff] }
 0xdd6   :  { %8541 = vpow2.f32 %v4142_v9  ;;  %7748 = vmatprep.subr.mxu1 %v8569_v10  ;;  %v4825_v9 = vld [vmem:[%s11582_s15 + $0x8] sm:$0xff] }
 0xdd7   :  { %v8534_v7 = vpop.eup %8533  ;;  %v4144_v49 = vmul.f32 1.442695, %v4129_v44  ;;  %v8144_v43 = vpack.c.bf16 %v4825_v9, %v4824_v8  ;;  %v4827_v44 = vld [vmem:[%s11582_s15 + $0x18] sm:$0xff]  ;;  %s11646_s15 = smov 24   ;;  %v4978_v8 = vld [vmem:[%s11584_s19 + $0x80] sm:$0xff] }
 0xdd8   :  { %v4263_v55 = vpop.permute.xlu0 %4262  ;;  %v4152_v56 = vsel %vm199_vm2, %v8534_v7, 0.0  ;;  %v4339_v20 = vpop.permute.xlu1 %4338 }
 0xdd9   :  { %8543 = vpow2.f32 %v4144_v49  ;;  %4153 = vadd.xlane.f32.xlu1 %v4152_v56  ;;  %7744 = vmatpush3.msra.mxu0 %v4263_v55 }
 0xdda   :  { %7753 = vmatprep.subr.mxu0 %v8569_v10 }
 0xddb   :  { %v8536_v61 = vpop.eup %8535 }
 0xddc   :  { %v8538_v62 = vpop.eup %8537  ;;  %v4155_v63 = vsel %vm199_vm2, %v8536_v61, 0.0  ;;  %v4415_v21 = vpop.permute.xlu1 %4414 }
 0xddd   :  { %4156 = vadd.xlane.f32.xlu0 %v4155_v63  ;;  %v4158_v2 = vsel %vm199_vm2, %v8538_v62, 0.0  ;;  %v4491_v17 = vpop.permute.xlu0 %4490 }
 0xdde   :  { %4159 = vadd.xlane.f32.xlu1 %v4158_v2 }
 0xddf   :  { %v8540_v24 = vpop.eup %8539 }
 0xde0   :  { %v8542_v3 = vpop.eup %8541  ;;  %v4161_v4 = vsel %vm199_vm2, %v8540_v24, 0.0  ;;  %v4567_v22 = vpop.permute.xlu1 %4566 }
 0xde1   :  { %4162 = vadd.xlane.f32.xlu0 %v4161_v4  ;;  %v4164_v45 = vsel %vm199_vm2, %v8542_v3, 0.0 }
 0xde2   :  { %4165 = vadd.xlane.f32.xlu1 %v4164_v45 }
 0xde3   :  { %v10304_v6 = vpop.eup %8543 }
 0xde4   :  { %v4167_v58 = vsel %vm199_vm2, %v10304_v6, 0.0 }
 0xde5   :  { %4168 = vadd.xlane.f32.xlu0 %v4167_v58 }
 0xdf3   :  { %4718 = vrot.lane.b32.xlu1 %v10221_v42, %s11643_s14 }
 0xdfb   :  { %4642 = vrot.lane.b32.xlu0 %v10205_v34, %s11643_s14 }
 0xe0d   :  { %v4151_v23 = vpop.xlane.xlu0 %4150 }
 0xe0e   :  { %8545 = vrcp.f32 %v4151_v23 }
 0xe11   :  { %v4148_v35 = vpop.xlane.xlu1 %4147 }
 0xe12   :  { %8547 = vrcp.f32 %v4148_v35 }
 0xe18   :  { %v8546_v0 = vpop.eup %8545 }
 0xe19   :  { %v4179_v1 = vmul.f32 %v8546_v0, %v10289_v18 }
 0xe1b   :  { %7746 = vmatmul.mubr.msk.f32.vlgmr.msra.gmra.mrb[58].mxu0 %vm199_vm2, %v4179_v1 }
 0xe1c   :  { %v8548_v5 = vpop.eup %8547  ;;  %7754 = vmatpush3.msra.mxu0 %v4415_v21  ;;  %7755 = vmatprep.mubr.msk.f32.mxu0 %vm8572_vm1, %v8569_v10 }
 0xe1d   :  { %v4178_v34 = vmul.f32 %v8548_v5, %v10293_v15  ;;  %7763 = vmatprep.subr.mxu0 %v8569_v10 }
 0xe1f   :  { %7741 = vmatmul.mubr.msk.f32.vlgmr.msra.gmra.mrb[60].mxu1 %vm199_vm2, %v4178_v34 }
 0xe20   :  { %7749 = vmatpush3.msra.mxu1 %v4339_v20  ;;  %7750 = vmatprep.mubr.msk.f32.mxu1 %vm8572_vm1, %v8569_v10 }
 0xe21   :  { %7758 = vmatprep.subr.mxu1 %v8569_v10 }
 0xe66   :  { %v4154_v42 = vpop.xlane.xlu1 %4153 }
 0xe67   :  { %8549 = vrcp.f32 %v4154_v42 }
 0xe6a   :  { %v4157_v11 = vpop.xlane.xlu0 %4156 }
 0xe6b   :  { %8551 = vrcp.f32 %v4157_v11  ;;  %v4160_v53 = vpop.xlane.xlu1 %4159  ;;  %v6858_v11 = vld [vmem:[%s11583_s16] ss:$0 sm:$0xff] }
 0xe6c   :  { %8553 = vrcp.f32 %v4160_v53 }
 0xe6e   :  { %v4163_v54 = vpop.xlane.xlu0 %4162 }
 0xe6f   :  { %8555 = vrcp.f32 %v4163_v54  ;;  %v4166_v41 = vpop.xlane.xlu1 %4165 }
 0xe70   :  { %8557 = vrcp.f32 %v4166_v41 }
 0xe71   :  { %v8550_v27 = vpop.eup %8549 }
 0xe72   :  { %v4180_v37 = vmul.f32 %v8550_v27, %v8534_v7  ;;  %v4169_v18 = vpop.xlane.xlu0 %4168  ;;  %v8148_v7 = vpack.c.bf16 %v4827_v44, %v4826_v19  ;;  %v4964_v19 = vld [vmem:[%s11584_s19 + $0x10] sm:$0xff] }
 0xe73   :  { %8559 = vrcp.f32 %v4169_v18  ;;  %v4719_v39 = vpop.permute.xlu1 %4718  ;;  %v4980_v44 = vld [vmem:[%s11584_s19 + $0x90] sm:$0xff] }
 0xe74   :  { %7751 = vmatmul.mubr.msk.f32.vlgmr.msra.gmra.mrb[62].mxu1 %vm199_vm2, %v4180_v37 }
 0xe75   :  { %v8552_v38 = vpop.eup %8551  ;;  %7759 = vmatpush3.msra.mxu1 %v4491_v17  ;;  %7760 = vmatprep.mubr.msk.f32.mxu1 %vm8572_vm1, %v8569_v10 }
 0xe76   :  { %v8554_v15 = vpop.eup %8553  ;;  %v4181_v47 = vmul.f32 %v8552_v38, %v8536_v61  ;;  %7768 = vmatprep.subr.mxu1 %v8569_v10  ;;  %v4643_v30 = vpop.permute.xlu0 %4642 }
 0xe77   :  { %v4182_v12 = vmul.f32 %v8554_v15, %v8538_v62 }
 0xe78   :  { %7756 = vmatmul.mubr.msk.f32.vlgmr.msra.gmra.mrb[60].mxu0 %vm199_vm2, %v4181_v47 }
 0xe79   :  { %v8556_v31 = vpop.eup %8555  ;;  %7761 = vmatmul.mubr.msk.f32.vlgmr.msra.gmra.mrb[64].mxu1 %vm199_vm2, %v4182_v12  ;;  %7764 = vmatpush3.msra.mxu0 %v4567_v22 }
 0xe7a   :  { %v8558_v50 = vpop.eup %8557  ;;  %v4183_v52 = vmul.f32 %v8556_v31, %v8540_v24  ;;  %7769 = vmatpush3.msra.mxu1 %v4643_v30  ;;  %7765 = vmatprep.mubr.msk.f32.mxu0 %vm8572_vm1, %v8569_v10 }
 0xe7b   :  { %v4184_v33 = vmul.f32 %v8558_v50, %v8542_v3  ;;  %7770 = vmatprep.mubr.msk.f32.mxu1 %vm8572_vm1, %v8569_v10  ;;  %7773 = vmatprep.subr.mxu0 %v8569_v10 }
 0xe7c   :  { %7766 = vmatmul.mubr.msk.f32.vlgmr.msra.gmra.mrb[62].mxu0 %vm199_vm2, %v4183_v52  ;;  %8145 = vmatprep.subr.bf16.mxu1 %v8144_v43 }
 0xe7d   :  { %v8560_v40 = vpop.eup %8559  ;;  %7771 = vmatmul.mubr.msk.f32.vlgmr.msra.gmra.mrb[66].mxu1 %vm199_vm2, %v4184_v33  ;;  %7774 = vmatpush3.msra.mxu0 %v4719_v39 }
 0xe7e   :  { %v4185_v13 = vmul.f32 %v8560_v40, %v10304_v6  ;;  %7775 = vmatprep.mubr.msk.f32.mxu0 %vm8572_vm1, %v8569_v10  ;;  %8147 = vmatpush3.bf16.msra.mxu1 %v8144_v43  ;;  %v4963_v40 = vld [vmem:[%s11584_s19 + $0x8] sm:$0xff] }
 0xe7f   :  { %8149 = vmatprep.subr.bf16.mxu1 %v8148_v7 }
 0xe80   :  { %7776 = vmatmul.mubr.msk.f32.vlgmr.msra.gmra.mrb[64].mxu0 %vm199_vm2, %v4185_v13  ;;  %v4979_v13 = vld [vmem:[%s11584_s19 + $0x88] sm:$0xff] }
 0xe81   :  { %5180 = vmatprep.mubr.f32.mxu0 %v8569_v10 }
 0xe82   :  { %8151 = vmatpush3.bf16.msra.mxu1 %v8148_v7  ;;  %v8162_v7 = vpack.c.bf16 %v4980_v44, %v4964_v19  ;;  %v4989_v19 = vld [vmem:[%s11584_s19 + $0xd8] sm:$0xff] }
 0xeee   :  { %v4334_v14 = vpop.f32.mrb[58].mxu0 }
 0xeef   :  { %v7747_v32 = vpop.f32.mrb[59].mxu0 }
 0xef0   :  { %v8152_v32 = vpack.c.bf16 %v4979_v13, %v4963_v40  ;;  %v5014_v13 = vld [vmem:[%s11584_s19 + $0x1a0] sm:$0xff] }
 0xef2   :  { %v4258_v59 = vpop.f32.mrb[60].mxu1  ;;  %8153 = vmatprep.subr.bf16.mxu0 %v8152_v32  ;;  %v5016_v32 = vld [vmem:[%s11584_s19 + $0x1b0] sm:$0xff] }
 0xef3   :  { %v7742_v60 = vpop.f32.mrb[61].mxu1 }
 0xef4   :  { %v4962_v60 = vld [vmem:[%s11584_s19] sm:$0xff] }
 0xef5   :  { %v8154_v43 = vpack.c.bf16 %v4978_v8, %v4962_v60  ;;  %v4971_v8 = vld [vmem:[%s11584_s19 + $0x48] sm:$0xff] }
 0xef7   :  { %8155 = vmatpush1.bf16.msra.mxu0 %v8154_v43  ;;  %v4973_v43 = vld [vmem:[%s11584_s19 + $0x58] sm:$0xff] }
 0xf47   :  { %v4410_v49 = vpop.f32.mrb[62].mxu1 }
 0xf48   :  { %4796 = vrot.lane.b32.xlu0 %v4410_v49, %s11644_s1  ;;  %v7752_v55 = vpop.f32.mrb[63].mxu1  ;;  %v4995_v49 = vld [vmem:[%s11584_s19 + $0x108] sm:$0xff] }
 0xf49   :  { %v5011_v55 = vld [vmem:[%s11584_s19 + $0x188] sm:$0xff] }
 0xf4b   :  { %v4486_v56 = vpop.f32.mrb[60].mxu0 }
 0xf4c   :  { %v4562_v61 = vpop.f32.mrb[64].mxu1  ;;  %4798 = vrot.lane.b32.xlu1 %v4486_v56, %s11644_s1  ;;  %v7757_v62 = vpop.f32.mrb[61].mxu0  ;;  %v4997_v56 = vld [vmem:[%s11584_s19 + $0x118] sm:$0xff] }
 0xf4d   :  { %4804 = vrot.lane.b32.xlu0 %v4562_v61, %s11645_s28  ;;  %v7762_v63 = vpop.f32.mrb[65].mxu1  ;;  %v8156_v61 = vpack.c.bf16 %v5011_v55, %v4995_v49  ;;  %v5013_v62 = vld [vmem:[%s11584_s19 + $0x198] sm:$0xff]  ;;  %v4970_v49 = vld [vmem:[%s11584_s19 + $0x40] sm:$0xff] }
 0xf4e   :  { %v4994_v63 = vld [vmem:[%s11584_s19 + $0x100] sm:$0xff] }
 0xf4f   :  { %v4638_v2 = vpop.f32.mrb[62].mxu0  ;;  %8157 = vmatprep.subr.bf16.mxu0 %v8156_v61  ;;  %v4972_v61 = vld [vmem:[%s11584_s19 + $0x50] sm:$0xff] }
 0xf50   :  { %v4714_v24 = vpop.f32.mrb[66].mxu1  ;;  %4806 = vrot.lane.b32.xlu1 %v4638_v2, %s11645_s28  ;;  %v7767_v3 = vpop.f32.mrb[63].mxu0  ;;  %v5010_v2 = vld [vmem:[%s11584_s19 + $0x180] sm:$0xff] }
 0xf51   :  { %4812 = vrot.lane.b32.xlu0 %v4714_v24, %s11646_s15  ;;  %v7772_v4 = vpop.f32.mrb[67].mxu1  ;;  %v8164_v24 = vpack.c.bf16 %v5013_v62, %v4997_v56  ;;  %v8158_v3 = vpack.c.bf16 %v5010_v2, %v4994_v63  ;;  %v4986_v56 = vld [vmem:[%s11584_s19 + $0xc0] sm:$0xff]  ;;  %v4988_v62 = vld [vmem:[%s11584_s19 + $0xd0] sm:$0xff]  ;;  %v8192_v2 = vpack.c.bf16 %v4989_v19, %v4973_v43  ;;  %v5765_v43 = vld [vmem:[%s11587_s21 + $0x8] sm:$0xff] }
 0xf52   :  { %v4996_v4 = vld [vmem:[%s11584_s19 + $0x110] sm:$0xff] }
 0xf53   :  { %v4790_v45 = vpop.f32.mrb[64].mxu0  ;;  %8159 = vmatpush1.bf16.msra.mxu0 %v8158_v3  ;;  %v5019_v3 = vld [vmem:[%s11584_s19 + $0x1c8] sm:$0xff] }
 0xf54   :  { %4814 = vrot.lane.b32.xlu1 %v4790_v45, %s11646_s15  ;;  %v7777_v6 = vpop.f32.mrb[65].mxu0  ;;  %v5012_v45 = vld [vmem:[%s11584_s19 + $0x190] sm:$0xff] }
 0xf55   :  { %v8166_v6 = vpack.c.bf16 %v5012_v45, %v4996_v4  ;;  %v5005_v4 = vld [vmem:[%s11584_s19 + $0x158] sm:$0xff] }
 0xf56   :  { %v5021_v45 = vld [vmem:[%s11584_s19 + $0x1d8] sm:$0xff] }
 0xfba   :  { %v4797_v58 = vpop.permute.xlu0 %4796 }
 0xfbb   :  { %v4818_v17 = vsel %vm199_vm2, %v4258_v59, %v4797_v58  ;;  %v4981_v59 = vld [vmem:[%s11584_s19 + $0x98] sm:$0xff]  ;;  %v4967_v58 = vld [vmem:[%s11584_s19 + $0x28] sm:$0xff] }
 0xfbe   :  { %v4799_v20 = vpop.permute.xlu1 %4798 }
 0xfbf   :  { %v4805_v21 = vpop.permute.xlu0 %4804  ;;  %v4819_v1 = vsel %vm199_vm2, %v4334_v14, %v4799_v20  ;;  %v4965_v14 = vld [vmem:[%s11584_s19 + $0x18] sm:$0xff]  ;;  %v4983_v20 = vld [vmem:[%s11584_s19 + $0xa8] sm:$0xff] }
 0xfc0   :  { %v4820_v23 = vsel %vm1528_vm3, %v4818_v17, %v4805_v21  ;;  %v8160_v9 = vpack.c.bf16 %v4981_v59, %v4965_v14  ;;  %v4969_v21 = vld [vmem:[%s11584_s19 + $0x38] sm:$0xff]  ;;  %v8168_v17 = vpack.c.bf16 %v4983_v20, %v4967_v58  ;;  %v5000_v14 = vld [vmem:[%s11584_s19 + $0x130] sm:$0xff]  ;;  %v8194_v58 = vpack.c.bf16 %v4988_v62, %v4972_v61  ;;  %v5002_v20 = vld [vmem:[%s11584_s19 + $0x140] sm:$0xff] }
 0xfc1   :  { %v5783_v61 = vld [vmem:[%s11587_s21 + $0x98] sm:$0xff]  ;;  %v5814_v62 = vld [vmem:[%s11587_s21 + $0x190] sm:$0xff] }
 0xfc2   :  { %v4807_v22 = vpop.permute.xlu1 %4806  ;;  %8161 = vmatprep.subr.bf16.mxu1 %v8160_v9  ;;  %8169 = vmatprep.subr.bf16.mxu0 %v8168_v17  ;;  %v5004_v17 = vld [vmem:[%s11584_s19 + $0x150] sm:$0xff] }
 0xfc3   :  { %v4813_v35 = vpop.permute.xlu0 %4812  ;;  %v4821_v5 = vsel %vm1528_vm3, %v4819_v1, %v4807_v22  ;;  %v4985_v22 = vld [vmem:[%s11584_s19 + $0xb8] sm:$0xff] }
 0xfc4   :  { %v4822_v0 = vsel %vm1531_vm4, %v4820_v23, %v4813_v35  ;;  %v8176_v23 = vpack.c.bf16 %v4985_v22, %v4969_v21  ;;  %v5018_v21 = vld [vmem:[%s11584_s19 + $0x1c0] sm:$0xff]  ;;  %v5020_v22 = vld [vmem:[%s11584_s19 + $0x1d0] sm:$0xff] }
 0xfc5   :  { %7786 = vmatprep.mubr.msk.f32.mxu1 %vm101_vm0, %v4822_v0 }
 0xfc6   :  { %v4815_v34 = vpop.permute.xlu1 %4814 }
 0xfc7   :  { %v4823_v42 = vsel %vm1531_vm4, %v4821_v5, %v4815_v34 }
 0xfc8   :  { %7787 = vmatmul.mubr.msk.f32.vlgmr.msra.gmra.mrb[68].mxu1 %vm101_vm0, %v4823_v42 }
 0xfc9   :  { %5257 = vmatprep.mubr.f32.mxu1 %v8569_v10  ;;  %8163 = vmatpush1.bf16.msra.mxu1 %v8162_v7  ;;  %v8182_v7 = vpack.c.bf16 %v5016_v32, %v5000_v14  ;;  %v5780_v14 = vld [vmem:[%s11587_s21 + $0x80] sm:$0xff]  ;;  %v5781_v32 = vld [vmem:[%s11587_s21 + $0x88] sm:$0xff] }
 0xfca   :  { %8165 = vmatprep.subr.bf16.mxu1 %v8164_v24  ;;  %v5003_v24 = vld [vmem:[%s11584_s19 + $0x148] sm:$0xff]  ;;  %v8216_v19 = vpack.c.bf16 %v5781_v32, %v5780_v14  ;;  %v5772_v32 = vld [vmem:[%s11587_s21 + $0x40] sm:$0xff] }
 0xfcd   :  { %8167 = vmatpush1.bf16.msra.mxu1 %v8166_v6  ;;  %v8186_v6 = vpack.c.bf16 %v4986_v56, %v4970_v49  ;;  %v5797_v49 = vld [vmem:[%s11587_s21 + $0x108] sm:$0xff]  ;;  %v5782_v56 = vld [vmem:[%s11587_s21 + $0x90] sm:$0xff] }
 0xfce   :  { %8177 = vmatprep.subr.bf16.mxu1 %v8176_v23  ;;  %v8188_v23 = vpack.c.bf16 %v5019_v3, %v5003_v24  ;;  %v5766_v3 = vld [vmem:[%s11587_s21 + $0x10] sm:$0xff] }
0x109b   :  { %v7788_v53 = vpop.f32.mrb[68].mxu1 }
0x109c   :  { %v4913_v54 = vadd.f32 %v7788_v53, %v6858_v11  ;;  %v4907_v41 = vpop.f32.mrb[69].mxu1  ;;  %v6861_v53 = vld [vmem:[%s11585_s17] ss:$0 sm:$0xff] }
0x109d   :  { %v4908_v27 = vadd.f32 %v6858_v11, %v4907_v41 }
0x109e   :  { %v4917_v37 = vadd.f32 %v4913_v54, %v10168_v48  ;;  %v4966_v54 = vld [vmem:[%s11584_s19 + $0x20] sm:$0xff] }
0x109f   :  { %v4916_v18 = vadd.f32 %v4908_v27, %v10164_v16  ;;  %v4982_v27 = vld [vmem:[%s11584_s19 + $0xa0] sm:$0xff] }
0x10a0   :  { %v4923_v38 = vsel %vm101_vm0, %v4917_v37, 0.0 }
0x10a1   :  { %4924 = vadd.xlane.f32.xlu1 %v4923_v38  ;;  %v4920_v15 = vsel %vm101_vm0, %v4916_v18, 0.0  ;;  %v6862_v38 = vld [vmem:[%s11586_s18] ss:$0 sm:$0xff] }
0x10a2   :  { %4921 = vadd.xlane.f32.xlu0 %v4920_v15  ;;  %v4999_v15 = vld [vmem:[%s11584_s19 + $0x128] sm:$0xff] }
0x112e   :  { %v4925_v47 = vpop.xlane.xlu1 %4924 }
0x112f   :  { %v4927_v12 = vmul.f32 0.03125, %v4925_v47  ;;  %v4922_v30 = vpop.xlane.xlu0 %4921 }
0x1130   :  { %v4926_v31 = vmul.f32 0.03125, %v4922_v30  ;;  %v5001_v30 = vld [vmem:[%s11584_s19 + $0x138] sm:$0xff] }
0x1131   :  { %v10374_v50 = vsub.f32 %v4917_v37, %v4927_v12  ;;  %v4968_v37 = vld [vmem:[%s11584_s19 + $0x30] sm:$0xff]  ;;  %v5015_v12 = vld [vmem:[%s11584_s19 + $0x1a8] sm:$0xff] }
0x1132   :  { %v4928_v52 = vsub.f32 %v4916_v18, %v4926_v31  ;;  %v4984_v18 = vld [vmem:[%s11584_s19 + $0xb0] sm:$0xff]  ;;  %v5017_v31 = vld [vmem:[%s11584_s19 + $0x1b8] sm:$0xff]  ;;  %v8172_v59 = vpack.c.bf16 %v5015_v12, %v4999_v15  ;;  %v5023_v15 = vld [vmem:[%s11584_s19 + $0x1e8] sm:$0xff] }
0x1133   :  { %v4931_v48 = vmul.f32 %v10374_v50, %v10374_v50  ;;  %v8180_v60 = vpack.c.bf16 %v5017_v31, %v5001_v30  ;;  %v5025_v12 = vld [vmem:[%s11584_s19 + $0x1f8] sm:$0xff] }
0x1134   :  { %v4930_v33 = vmul.f32 %v4928_v52, %v4928_v52 }
0x1135   :  { %v4935_v16 = vsel %vm101_vm0, %v4931_v48, 0.0  ;;  %v4998_v48 = vld [vmem:[%s11584_s19 + $0x120] sm:$0xff] }
0x1136   :  { %v4932_v39 = vsel %vm101_vm0, %v4930_v33, 0.0  ;;  %v8170_v33 = vpack.c.bf16 %v4982_v27, %v4966_v54  ;;  %v8174_v44 = vpack.c.bf16 %v5014_v13, %v4998_v48  ;;  %v4990_v54 = vld [vmem:[%s11584_s19 + $0xe0] sm:$0xff]  ;;  %v4992_v27 = vld [vmem:[%s11584_s19 + $0xf0] sm:$0xff] }
0x1137   :  { %4933 = vadd.xlane.f32.xlu0 %v4932_v39  ;;  %v8178_v39 = vpack.c.bf16 %v4984_v18, %v4968_v37  ;;  %v5024_v48 = vld [vmem:[%s11584_s19 + $0x1f0] sm:$0xff] }
0x113b   :  { %4936 = vadd.xlane.f32.xlu0 %v4935_v16 }
0x11c4   :  { %v4934_v35 = vpop.xlane.xlu0 %4933 }
0x11c5   :  { %v4938_v0 = vmul.f32 0.03125, %v4934_v35  ;;  %v8196_v35 = vpack.c.bf16 %v5021_v45, %v5005_v4  ;;  %v5767_v4 = vld [vmem:[%s11587_s21 + $0x18] sm:$0xff]  ;;  %v8220_v45 = vpack.c.bf16 %v5783_v61, %v5782_v56  ;;  %v5774_v61 = vld [vmem:[%s11587_s21 + $0x50] sm:$0xff] }
0x11c7   :  { %v4940_v1 = vadd.f32 1e-05, %v4938_v0  ;;  %v4975_v0 = vld [vmem:[%s11584_s19 + $0x68] sm:$0xff] }
0x11c8   :  { %v4937_v5 = vpop.xlane.xlu0 %4936 }
0x11c9   :  { %8561 = vrsqrt.f32 %v4940_v1  ;;  %v4939_v34 = vmul.f32 0.03125, %v4937_v5  ;;  %v4991_v1 = vld [vmem:[%s11584_s19 + $0xe8] sm:$0xff]  ;;  %v4977_v5 = vld [vmem:[%s11584_s19 + $0x78] sm:$0xff] }
0x11ca   :  { %v8200_v37 = vpack.c.bf16 %v4991_v1, %v4975_v0  ;;  %v5768_v1 = vld [vmem:[%s11587_s21 + $0x20] sm:$0xff] }
0x11cb   :  { %v4941_v42 = vadd.f32 1e-05, %v4939_v34  ;;  %v4993_v34 = vld [vmem:[%s11584_s19 + $0xf8] sm:$0xff] }
0x11cc   :  { %v8208_v18 = vpack.c.bf16 %v4993_v34, %v4977_v5  ;;  %v5769_v5 = vld [vmem:[%s11587_s21 + $0x28] sm:$0xff] }
0x11cd   :  { %8563 = vrsqrt.f32 %v4941_v42  ;;  %v8190_v42 = vpack.c.bf16 %v5018_v21, %v5002_v20  ;;  %v5799_v20 = vld [vmem:[%s11587_s21 + $0x118] sm:$0xff]  ;;  %v5784_v21 = vld [vmem:[%s11587_s21 + $0xa0] sm:$0xff] }
0x11d3   :  { %v8562_v11 = vpop.eup %8561 }
0x11d4   :  { %v4944_v41 = vmul.f32 %v8562_v11, %v4928_v52  ;;  %v8198_v11 = vpack.c.bf16 %v5020_v22, %v5004_v17  ;;  %v5785_v17 = vld [vmem:[%s11587_s21 + $0xa8] sm:$0xff]  ;;  %v5816_v22 = vld [vmem:[%s11587_s21 + $0x1a0] sm:$0xff] }
0x11d5   :  { %v8224_v34 = vpack.c.bf16 %v5785_v17, %v5784_v21  ;;  %v5776_v17 = vld [vmem:[%s11587_s21 + $0x60] sm:$0xff] }
0x11d6   :  { %v4952_v47 = vmul.f32 %v6861_v53, %v4944_v41  ;;  %v4976_v41 = vld [vmem:[%s11584_s19 + $0x70] sm:$0xff] }
0x11d7   :  { %v8564_v52 = vpop.eup %8563  ;;  %v8210_v31 = vpack.c.bf16 %v4992_v27, %v4976_v41  ;;  %v5787_v41 = vld [vmem:[%s11587_s21 + $0xb8] sm:$0xff]  ;;  %v5818_v27 = vld [vmem:[%s11587_s21 + $0x1b0] sm:$0xff] }
0x11d8   :  { %v10473_v16 = vadd.f32 %v6862_v38, %v4952_v47  ;;  %v4945_v40 = vmul.f32 %v8564_v52, %v10374_v50  ;;  %v4987_v50 = vld [vmem:[%s11584_s19 + $0xc8] sm:$0xff]  ;;  %v5009_v47 = vld [vmem:[%s11584_s19 + $0x178] sm:$0xff]  ;;  %v5006_v52 = vld [vmem:[%s11584_s19 + $0x160] sm:$0xff] }
0x11d9   :  { %v8184_v63 = vpack.c.bf16 %v4987_v50, %v4971_v8  ;;  %v8212_v13 = vpack.c.bf16 %v5025_v12, %v5009_v47  ;;  %v5764_v50 = vld [vmem:[%s11587_s21] sm:$0xff]  ;;  %v5771_v47 = vld [vmem:[%s11587_s21 + $0x38] sm:$0xff] }
0x11da   :  { %v4953_v9 = vmul.f32 %v6861_v53, %v4945_v40  ;;  %6863 = vmatmul.mubr.msk.f32.vlgmr.msra.gmra.mrb[66].mxu0 %vm101_vm0, %v10473_v16  ;;  %6865 = vmatmul.mubr.msk.f32.vlgmr.msra.gmra.mrb[70].mxu1 %vm101_vm0, %v10473_v16  ;;  %v4974_v53 = vld [vmem:[%s11584_s19 + $0x60] sm:$0xff] }
0x11db   :  { %8171 = vmatpush1.bf16.msra.mxu0 %v8170_v33  ;;  %8179 = vmatpush1.bf16.msra.mxu1 %v8178_v39  ;;  %v8202_v30 = vpack.c.bf16 %v4990_v54, %v4974_v53  ;;  %v5022_v33 = vld [vmem:[%s11584_s19 + $0x1e0] sm:$0xff]  ;;  %v5008_v39 = vld [vmem:[%s11584_s19 + $0x170] sm:$0xff]  ;;  %v5801_v53 = vld [vmem:[%s11587_s21 + $0x128] sm:$0xff] }
0x11dc   :  { %v10504_v55 = vadd.f32 %v6862_v38, %v4953_v9  ;;  %5186 = vmatprep.mubr.f32.mxu0 %v8569_v10  ;;  %5263 = vmatprep.mubr.f32.mxu1 %v8569_v10  ;;  %v5007_v38 = vld [vmem:[%s11584_s19 + $0x168] sm:$0xff]  ;;  %v8206_v8 = vpack.c.bf16 %v5022_v33, %v5006_v52  ;;  %v8214_v9 = vpack.c.bf16 %v5024_v48, %v5008_v39  ;;  %v5786_v54 = vld [vmem:[%s11587_s21 + $0xb0] sm:$0xff]  ;;  %v5803_v52 = vld [vmem:[%s11587_s21 + $0x138] sm:$0xff] }
0x11dd   :  { %8173 = vmatprep.subr.bf16.mxu0 %v8172_v59  ;;  %8181 = vmatprep.subr.bf16.mxu1 %v8180_v60  ;;  %v8204_v40 = vpack.c.bf16 %v5023_v15, %v5007_v38  ;;  %v5812_v59 = vld [vmem:[%s11587_s21 + $0x180] sm:$0xff]  ;;  %v5813_v60 = vld [vmem:[%s11587_s21 + $0x188] sm:$0xff]  ;;  %v5770_v15 = vld [vmem:[%s11587_s21 + $0x30] sm:$0xff]  ;;  %v8228_v12 = vpack.c.bf16 %v5787_v41, %v5786_v54 }
0x11de   :  { %6864 = vmatmul.mubr.msk.f32.gmra.mrb[68].mxu0 %vm101_vm0, %v10504_v55  ;;  %6866 = vmatmul.mubr.msk.f32.gmra.mrb[72].mxu1 %vm101_vm0, %v10504_v55  ;;  %v5788_v33 = vld [vmem:[%s11587_s21 + $0xc0] sm:$0xff]  ;;  %v5789_v39 = vld [vmem:[%s11587_s21 + $0xc8] sm:$0xff]  ;;  %v5827_v41 = vld [vmem:[%s11587_s21 + $0x1f8] sm:$0xff] }
0x11df   :  { %8175 = vmatpush1.bf16.msra.mxu0 %v8174_v44  ;;  %8183 = vmatpush1.bf16.msra.mxu1 %v8182_v7  ;;  %v8248_v44 = vpack.c.bf16 %v5813_v60, %v5812_v59  ;;  %v5796_v7 = vld [vmem:[%s11587_s21 + $0x100] sm:$0xff]  ;;  %v5773_v59 = vld [vmem:[%s11587_s21 + $0x48] sm:$0xff]  ;;  %v8232_v60 = vpack.c.bf16 %v5789_v39, %v5788_v33 }
0x11e0   :  { %5334 = vmatprep.mubr.f32.mxu0 %v8569_v10  ;;  %5411 = vmatprep.mubr.f32.mxu1 %v8569_v10  ;;  %v8250_v24 = vpack.c.bf16 %v5797_v49, %v5796_v7  ;;  %v5820_v48 = vld [vmem:[%s11587_s21 + $0x1c0] sm:$0xff]  ;;  %v5823_v7 = vld [vmem:[%s11587_s21 + $0x1d8] sm:$0xff]  ;;  %v8234_v49 = vpack.c.bf16 %v5773_v59, %v5772_v32  ;;  %v5877_v39 = vld [vmem:[%s11587_s21 + $0x388] sm:$0xff] }
0x11e1   :  { %8185 = vmatprep.subr.bf16.mxu0 %v8184_v63  ;;  %8193 = vmatprep.subr.bf16.mxu1 %v8192_v2  ;;  %v5815_v63 = vld [vmem:[%s11587_s21 + $0x198] sm:$0xff]  ;;  %v8218_v2 = vpack.c.bf16 %v5765_v43, %v5764_v50  ;;  %v5805_v50 = vld [vmem:[%s11587_s21 + $0x148] sm:$0xff]  ;;  %v5790_v43 = vld [vmem:[%s11587_s21 + $0xd0] sm:$0xff] }
0x11e2   :  { %6867 = vmatmul.mubr.msk.f32.vlgmr.msra.gmra.mrb[70].mxu0 %vm101_vm0, %v10473_v16  ;;  %6869 = vmatmul.mubr.msk.f32.vlgmr.msra.gmra.mrb[74].mxu1 %vm101_vm0, %v10473_v16 }
0x11e3   :  { %8187 = vmatpush1.bf16.msra.mxu0 %v8186_v6  ;;  %8195 = vmatpush1.bf16.msra.mxu1 %v8194_v58  ;;  %v8252_v6 = vpack.c.bf16 %v5815_v63, %v5814_v62  ;;  %v5798_v58 = vld [vmem:[%s11587_s21 + $0x110] sm:$0xff]  ;;  %v5775_v62 = vld [vmem:[%s11587_s21 + $0x58] sm:$0xff] }
0x11e4   :  { %5340 = vmatprep.mubr.f32.mxu0 %v8569_v10  ;;  %5417 = vmatprep.mubr.f32.mxu1 %v8569_v10  ;;  %v8254_v0 = vpack.c.bf16 %v5799_v20, %v5798_v58  ;;  %v5825_v58 = vld [vmem:[%s11587_s21 + $0x1e8] sm:$0xff]  ;;  %v8238_v20 = vpack.c.bf16 %v5775_v62, %v5774_v61  ;;  %v5847_v62 = vld [vmem:[%s11587_s21 + $0x298] sm:$0xff] }
0x11e5   :  { %8189 = vmatprep.subr.bf16.mxu0 %v8188_v23  ;;  %8197 = vmatprep.subr.bf16.mxu1 %v8196_v35  ;;  %v5817_v23 = vld [vmem:[%s11587_s21 + $0x1a8] sm:$0xff]  ;;  %v8222_v35 = vpack.c.bf16 %v5767_v4, %v5766_v3  ;;  %v5807_v3 = vld [vmem:[%s11587_s21 + $0x158] sm:$0xff]  ;;  %v5792_v4 = vld [vmem:[%s11587_s21 + $0xe0] sm:$0xff] }
0x11e6   :  { %6868 = vmatmul.mubr.msk.f32.gmra.mrb[72].mxu0 %vm101_vm0, %v10504_v55  ;;  %6870 = vmatmul.mubr.msk.f32.gmra.mrb[76].mxu1 %vm101_vm0, %v10504_v55 }
0x11e7   :  { %8191 = vmatpush1.bf16.msra.mxu0 %v8190_v42  ;;  %8199 = vmatpush1.bf16.msra.mxu1 %v8198_v11  ;;  %v8256_v42 = vpack.c.bf16 %v5817_v23, %v5816_v22  ;;  %v5800_v11 = vld [vmem:[%s11587_s21 + $0x120] sm:$0xff] }
0x11e8   :  { %5488 = vmatprep.mubr.f32.mxu0 %v8569_v10  ;;  %5565 = vmatprep.mubr.f32.mxu1 %v8569_v10  ;;  %v8258_v38 = vpack.c.bf16 %v5801_v53, %v5800_v11  ;;  %v5795_v11 = vld [vmem:[%s11587_s21 + $0xf8] sm:$0xff]  ;;  %v5826_v53 = vld [vmem:[%s11587_s21 + $0x1f0] sm:$0xff] }
0x11e9   :  { %8201 = vmatprep.subr.bf16.mxu0 %v8200_v37  ;;  %8209 = vmatprep.subr.bf16.mxu1 %v8208_v18  ;;  %v5819_v37 = vld [vmem:[%s11587_s21 + $0x1b8] sm:$0xff]  ;;  %v8226_v18 = vpack.c.bf16 %v5769_v5, %v5768_v1  ;;  %v5809_v1 = vld [vmem:[%s11587_s21 + $0x168] sm:$0xff] }
0x11ea   :  { %6871 = vmatmul.mubr.msk.f32.vlgmr.msra.gmra.mrb[74].mxu0 %vm101_vm0, %v10473_v16  ;;  %6873 = vmatmul.mubr.msk.f32.vlgmr.msra.gmra.mrb[78].mxu1 %vm101_vm0, %v10473_v16 }
0x11eb   :  { %8203 = vmatpush1.bf16.msra.mxu0 %v8202_v30  ;;  %8211 = vmatpush1.bf16.msra.mxu1 %v8210_v31  ;;  %v8260_v30 = vpack.c.bf16 %v5819_v37, %v5818_v27  ;;  %v5802_v31 = vld [vmem:[%s11587_s21 + $0x130] sm:$0xff]  ;;  %v5779_v37 = vld [vmem:[%s11587_s21 + $0x78] sm:$0xff] }
0x11ec   :  { %5494 = vmatprep.mubr.f32.mxu0 %v8569_v10  ;;  %5571 = vmatprep.mubr.f32.mxu1 %v8569_v10  ;;  %v8262_v14 = vpack.c.bf16 %v5803_v52, %v5802_v31  ;;  %v5778_v27 = vld [vmem:[%s11587_s21 + $0x70] sm:$0xff]  ;;  %v5845_v31 = vld [vmem:[%s11587_s21 + $0x288] sm:$0xff]  ;;  %v5876_v52 = vld [vmem:[%s11587_s21 + $0x380] sm:$0xff] }
0x11ed   :  { %8205 = vmatprep.subr.bf16.mxu0 %v8204_v40  ;;  %8213 = vmatprep.subr.bf16.mxu1 %v8212_v13  ;;  %v5821_v40 = vld [vmem:[%s11587_s21 + $0x1c8] sm:$0xff]  ;;  %v8230_v13 = vpack.c.bf16 %v5771_v47, %v5770_v15  ;;  %v5810_v15 = vld [vmem:[%s11587_s21 + $0x170] sm:$0xff]  ;;  %v5811_v47 = vld [vmem:[%s11587_s21 + $0x178] sm:$0xff] }
0x11ee   :  { %6872 = vmatmul.mubr.msk.f32.gmra.mrb[76].mxu0 %vm101_vm0, %v10504_v55  ;;  %6874 = vmatmul.mubr.msk.f32.gmra.mrb[80].mxu1 %vm101_vm0, %v10504_v55 }
0x11ef   :  { %8207 = vmatpush1.bf16.msra.mxu0 %v8206_v8  ;;  %8215 = vmatpush1.bf16.msra.mxu1 %v8214_v9  ;;  %v8264_v8 = vpack.c.bf16 %v5821_v40, %v5820_v48  ;;  %v5804_v9 = vld [vmem:[%s11587_s21 + $0x140] sm:$0xff]  ;;  %v8312_v48 = vpack.c.bf16 %v5877_v39, %v5876_v52 }
0x11f0   :  { %5642 = vmatprep.mubr.f32.mxu0 %v8569_v10  ;;  %5719 = vmatprep.mubr.f32.mxu1 %v8569_v10  ;;  %v8266_v56 = vpack.c.bf16 %v5805_v50, %v5804_v9  ;;  %v10836_v40 = vld [vmem:[%s11588_s20] sm:$0xff] }
0x11f1   :  { %8217 = vmatprep.subr.bf16.mxu0 %v8216_v19  ;;  %8249 = vmatprep.subr.bf16.mxu1 %v8248_v44  ;;  %v5791_v19 = vld [vmem:[%s11587_s21 + $0xd8] sm:$0xff]  ;;  %v5822_v44 = vld [vmem:[%s11587_s21 + $0x1d0] sm:$0xff]  ;;  %v5037_v32 = vrot.slane %v10836_v40, %v9425_v28  ;;  %v5045_v59 = vrot.slane %v10836_v40, %v9428_v29 }
0x11f2   :  { %6875 = vmatmul.mubr.msk.f32.vlgmr.msra.gmra.mrb[78].mxu0 %vm101_vm0, %v10473_v16  ;;  %6877 = vmatmul.mubr.msk.f32.vlgmr.msra.gmra.mrb[82].mxu1 %vm101_vm0, %v10473_v16  ;;  %v8236_v63 = vpack.c.bf16 %v5791_v19, %v5790_v43  ;;  %v5860_v43 = vld [vmem:[%s11587_s21 + $0x300] sm:$0xff]  ;;  %v5861_v19 = vld [vmem:[%s11587_s21 + $0x308] sm:$0xff] }
0x11f3   :  { %5648 = vmatprep.mubr.f32.mxu0 %v8569_v10  ;;  %5725 = vmatprep.mubr.f32.mxu1 %v8569_v10 }
0x11f4   :  { %8219 = vmatpush3.bf16.msra.mxu0 %v8218_v2  ;;  %8251 = vmatpush3.bf16.msra.mxu1 %v8250_v24  ;;  %v8268_v2 = vpack.c.bf16 %v5823_v7, %v5822_v44  ;;  %v5806_v24 = vld [vmem:[%s11587_s21 + $0x150] sm:$0xff] }
0x11f5   :  { %8221 = vmatprep.subr.bf16.mxu0 %v8220_v45  ;;  %8253 = vmatprep.subr.bf16.mxu1 %v8252_v6  ;;  %v5793_v45 = vld [vmem:[%s11587_s21 + $0xe8] sm:$0xff]  ;;  %v5824_v6 = vld [vmem:[%s11587_s21 + $0x1e0] sm:$0xff]  ;;  %v8270_v21 = vpack.c.bf16 %v5807_v3, %v5806_v24  ;;  %v5846_v44 = vld [vmem:[%s11587_s21 + $0x290] sm:$0xff] }
0x11f6   :  { %6876 = vmatmul.mubr.msk.f32.gmra.mrb[80].mxu0 %vm101_vm0, %v10504_v55  ;;  %6878 = vmatmul.mubr.msk.f32.gmra.mrb[84].mxu1 %vm101_vm0, %v10504_v55  ;;  %v8240_v22 = vpack.c.bf16 %v5793_v45, %v5792_v4  ;;  %v8272_v23 = vpack.c.bf16 %v5825_v58, %v5824_v6  ;;  %v8314_v45 = vpack.c.bf16 %v5861_v19, %v5860_v43  ;;  %v5830_v58 = vld [vmem:[%s11587_s21 + $0x210] sm:$0xff]  ;;  %v5865_v19 = vld [vmem:[%s11587_s21 + $0x328] sm:$0xff] }
0x11f7   :  { %v10872_v6 = vrot.slane %v10836_v40, %v9445_v36 }
0x11f8   :  { %8223 = vmatpush3.bf16.msra.mxu0 %v8222_v35  ;;  %8255 = vmatpush3.bf16.msra.mxu1 %v8254_v0  ;;  %v5777_v35 = vld [vmem:[%s11587_s21 + $0x68] sm:$0xff]  ;;  %v5808_v0 = vld [vmem:[%s11587_s21 + $0x160] sm:$0xff] }
0x11f9   :  { %8225 = vmatprep.subr.bf16.mxu0 %v8224_v34  ;;  %8257 = vmatprep.subr.bf16.mxu1 %v8256_v42  ;;  %v8242_v5 = vpack.c.bf16 %v5777_v35, %v5776_v17  ;;  %v8274_v34 = vpack.c.bf16 %v5809_v1, %v5808_v0  ;;  %v5794_v42 = vld [vmem:[%s11587_s21 + $0xf0] sm:$0xff]  ;;  %v5831_v0 = vld [vmem:[%s11587_s21 + $0x218] sm:$0xff] }
0x11fa   :  { %v8244_v54 = vpack.c.bf16 %v5795_v11, %v5794_v42  ;;  %v5862_v1 = vld [vmem:[%s11587_s21 + $0x310] sm:$0xff] }
0x11fc   :  { %8227 = vmatpush3.bf16.msra.mxu0 %v8226_v18  ;;  %8259 = vmatpush3.bf16.msra.mxu1 %v8258_v38  ;;  %v8276_v18 = vpack.c.bf16 %v5827_v41, %v5826_v53  ;;  %v8246_v38 = vpack.c.bf16 %v5779_v37, %v5778_v27  ;;  %v5863_v41 = vld [vmem:[%s11587_s21 + $0x318] sm:$0xff]  ;;  %v5848_v27 = vld [vmem:[%s11587_s21 + $0x2a0] sm:$0xff] }
0x11fd   :  { %8229 = vmatprep.subr.bf16.mxu0 %v8228_v12  ;;  %8261 = vmatprep.subr.bf16.mxu1 %v8260_v30  ;;  %v8278_v12 = vpack.c.bf16 %v5811_v47, %v5810_v15  ;;  %v5844_v30 = vld [vmem:[%s11587_s21 + $0x280] sm:$0xff]  ;;  %v5849_v15 = vld [vmem:[%s11587_s21 + $0x2a8] sm:$0xff] }
0x11fe   :  { %v8280_v33 = vpack.c.bf16 %v5845_v31, %v5844_v30  ;;  %v5880_v47 = vld [vmem:[%s11587_s21 + $0x3a0] sm:$0xff] }
0x11ff   :  { %v5832_v30 = vld [vmem:[%s11587_s21 + $0x220] sm:$0xff] }
0x1200   :  { %8231 = vmatpush3.bf16.msra.mxu0 %v8230_v13  ;;  %8263 = vmatpush3.bf16.msra.mxu1 %v8262_v14  ;;  %v5033_v13 = vrot.slane %v10836_v40, %v9414_v25  ;;  %v5041_v14 = vrot.slane %v10836_v40, %v9417_v26 }
0x1201   :  { %8233 = vmatprep.subr.bf16.mxu0 %v8232_v60  ;;  %8265 = vmatprep.subr.bf16.mxu1 %v8264_v8  ;;  %v5828_v60 = vld [vmem:[%s11587_s21 + $0x200] sm:$0xff]  ;;  %v5829_v8 = vld [vmem:[%s11587_s21 + $0x208] sm:$0xff] }
0x1202   :  { %v8282_v4 = vpack.c.bf16 %v5829_v8, %v5828_v60 }
0x1204   :  { %8235 = vmatpush3.bf16.msra.mxu0 %v8234_v49  ;;  %8267 = vmatpush3.bf16.msra.mxu1 %v8266_v56 }
0x1205   :  { %8237 = vmatprep.subr.bf16.mxu0 %v8236_v63  ;;  %8269 = vmatprep.subr.bf16.mxu1 %v8268_v2  ;;  %v5878_v63 = vld [vmem:[%s11587_s21 + $0x390] sm:$0xff]  ;;  %v5879_v2 = vld [vmem:[%s11587_s21 + $0x398] sm:$0xff] }
0x1206   :  { %v8316_v35 = vpack.c.bf16 %v5879_v2, %v5878_v63 }
0x1208   :  { %8239 = vmatpush3.bf16.msra.mxu0 %v8238_v20  ;;  %8271 = vmatpush3.bf16.msra.mxu1 %v8270_v21 }
0x1209   :  { %8241 = vmatprep.subr.bf16.mxu0 %v8240_v22  ;;  %8273 = vmatprep.subr.bf16.mxu1 %v8272_v23  ;;  %v8284_v23 = vpack.c.bf16 %v5847_v62, %v5846_v44  ;;  %v5850_v44 = vld [vmem:[%s11587_s21 + $0x2b0] sm:$0xff]  ;;  %v5883_v62 = vld [vmem:[%s11587_s21 + $0x3b8] sm:$0xff] }
0x120c   :  { %8243 = vmatpush3.bf16.msra.mxu0 %v8242_v5  ;;  %8275 = vmatpush3.bf16.msra.mxu1 %v8274_v34 }
0x120d   :  { %8245 = vmatprep.subr.bf16.mxu0 %v8244_v54  ;;  %8277 = vmatprep.subr.bf16.mxu1 %v8276_v18 }
0x1210   :  { %8247 = vmatpush3.bf16.msra.mxu0 %v8246_v38  ;;  %8279 = vmatpush3.bf16.msra.mxu1 %v8278_v12  ;;  %v10891_v38 = vrot.slane %v10836_v40, %v9466_v51  ;;  %v5881_v12 = vld [vmem:[%s11587_s21 + $0x3a8] sm:$0xff] }
0x1211   :  { %8281 = vmatprep.subr.bf16.mxu0 %v8280_v33  ;;  %8313 = vmatprep.subr.bf16.mxu1 %v8312_v48  ;;  %v8286_v48 = vpack.c.bf16 %v5831_v0, %v5830_v58  ;;  %v8320_v43 = vpack.c.bf16 %v5881_v12, %v5880_v47  ;;  %v5834_v58 = vld [vmem:[%s11587_s21 + $0x230] sm:$0xff]  ;;  %v5867_v0 = vld [vmem:[%s11587_s21 + $0x338] sm:$0xff] }
0x12ad   :  { %v5182_v9 = vpop.f32.mrb[66].mxu0  ;;  %v5259_v50 = vpop.f32.mrb[70].mxu1 }
0x12ae   :  { %v5183_v7 = vadd.f32 %v5182_v9, %v5033_v13  ;;  %v5260_v49 = vadd.f32 %v5259_v50, %v5041_v14  ;;  %v5184_v56 = vpop.f32.mrb[67].mxu0  ;;  %v5261_v61 = vpop.f32.mrb[71].mxu1  ;;  %v8288_v50 = vpack.c.bf16 %v5849_v15, %v5848_v27  ;;  %v5836_v27 = vld [vmem:[%s11587_s21 + $0x240] sm:$0xff] }
0x12af   :  { %v5185_v24 = vadd.f32 %v5184_v56, %v5037_v32  ;;  %v5262_v3 = vadd.f32 %v5261_v61, %v5045_v59  ;;  %v5851_v56 = vld [vmem:[%s11587_s21 + $0x2b8] sm:$0xff]  ;;  %v5882_v61 = vld [vmem:[%s11587_s21 + $0x3b0] sm:$0xff] }
0x12b0   :  { %v5732_v5 = vmax.f32 %v5183_v7, 0.0  ;;  %v5734_v34 = vmax.f32 %v5260_v49, 0.0 }
0x12b1   :  { %v5733_v20 = vmax.f32 %v5185_v24, 0.0  ;;  %v5735_v21 = vmax.f32 %v5262_v3, 0.0  ;;  %v5188_v17 = vpop.f32.mrb[68].mxu0  ;;  %v5265_v22 = vpop.f32.mrb[72].mxu1 }
0x12b2   :  { %v5189_v42 = vadd.f32 %v5188_v17, %v5033_v13  ;;  %v5266_v11 = vadd.f32 %v5265_v22, %v5041_v14  ;;  %v5190_v53 = vpop.f32.mrb[69].mxu0  ;;  %v5267_v54 = vpop.f32.mrb[73].mxu1  ;;  %v8318_v13 = vpack.c.bf16 %v5863_v41, %v5862_v1  ;;  %v5833_v14 = vld [vmem:[%s11587_s21 + $0x228] sm:$0xff]  ;;  %v8292_v22 = vpack.c.bf16 %v5851_v56, %v5850_v44  ;;  %v5852_v1 = vld [vmem:[%s11587_s21 + $0x2c0] sm:$0xff]  ;;  %v5871_v56 = vld [vmem:[%s11587_s21 + $0x358] sm:$0xff] }
0x12b3   :  { %v5191_v37 = vadd.f32 %v5190_v53, %v5037_v32  ;;  %v5268_v18 = vadd.f32 %v5267_v54, %v5045_v59  ;;  %6091 = vmatprep.mubr.f32.mxu0 %v5733_v20  ;;  %6166 = vmatprep.mubr.f32.mxu1 %v5735_v21  ;;  %v5864_v32 = vld [vmem:[%s11587_s21 + $0x320] sm:$0xff]  ;;  %v5835_v20 = vld [vmem:[%s11587_s21 + $0x238] sm:$0xff] }
0x12b4   :  { %6092 = vmatmul.mubr.f32.vlgmr.msra.gmra.mrb[82].mxu0 %v5732_v5  ;;  %6167 = vmatmul.mubr.f32.vlgmr.msra.gmra.mrb[86].mxu1 %v5734_v34  ;;  %v5748_v59 = vmax.f32 %v5189_v42, 0.0  ;;  %v5750_v60 = vmax.f32 %v5266_v11, 0.0  ;;  %v5853_v5 = vld [vmem:[%s11587_s21 + $0x2c8] sm:$0xff]  ;;  %v5884_v34 = vld [vmem:[%s11587_s21 + $0x3c0] sm:$0xff]  ;;  %v8294_v54 = vpack.c.bf16 %v5835_v20, %v5834_v58 }
0x12b5   :  { %v5749_v31 = vmax.f32 %v5191_v37, 0.0  ;;  %v5751_v52 = vmax.f32 %v5268_v18, 0.0  ;;  %8283 = vmatpush3.bf16.msra.mxu0 %v8282_v4  ;;  %8315 = vmatpush3.bf16.msra.mxu1 %v8314_v45  ;;  %v10905_v33 = vpop.f32.mrb[70].mxu0  ;;  %v10907_v39 = vpop.f32.mrb[74].mxu1  ;;  %v8290_v4 = vpack.c.bf16 %v5833_v14, %v5832_v30  ;;  %v8322_v45 = vpack.c.bf16 %v5865_v19, %v5864_v32  ;;  %v5885_v42 = vld [vmem:[%s11587_s21 + $0x3c8] sm:$0xff]  ;;  %v5868_v30 = vld [vmem:[%s11587_s21 + $0x340] sm:$0xff] }
0x12b6   :  { %v5338_v8 = vpop.f32.mrb[71].mxu0  ;;  %v5415_v9 = vpop.f32.mrb[75].mxu1  ;;  %8285 = vmatprep.subr.bf16.mxu0 %v8284_v23  ;;  %8317 = vmatprep.subr.bf16.mxu1 %v8316_v35  ;;  %v8324_v23 = vpack.c.bf16 %v5883_v62, %v5882_v61  ;;  %v5866_v35 = vld [vmem:[%s11587_s21 + $0x330] sm:$0xff]  ;;  %v5837_v37 = vld [vmem:[%s11587_s21 + $0x248] sm:$0xff]  ;;  %v8296_v47 = vpack.c.bf16 %v5853_v5, %v5852_v1  ;;  %v8328_v12 = vpack.c.bf16 %v5885_v42, %v5884_v34  ;;  %v5887_v14 = vld [vmem:[%s11587_s21 + $0x3d8] sm:$0xff] }
0x12b7   :  { %v5339_v7 = vadd.f32 %v5338_v8, %v10872_v6  ;;  %v5416_v49 = vadd.f32 %v5415_v9, %v10891_v38  ;;  %6096 = vmatprep.mubr.f32.mxu0 %v5749_v31  ;;  %6171 = vmatprep.mubr.f32.mxu1 %v5751_v52  ;;  %v8326_v41 = vpack.c.bf16 %v5867_v0, %v5866_v35  ;;  %v5869_v31 = vld [vmem:[%s11587_s21 + $0x348] sm:$0xff]  ;;  %v5854_v52 = vld [vmem:[%s11587_s21 + $0x2d0] sm:$0xff]  ;;  %v5856_v61 = vld [vmem:[%s11587_s21 + $0x2e0] sm:$0xff] }
0x12b8   :  { %6097 = vmatmul.mubr.f32.gmra.mrb[84].mxu0 %v5748_v59  ;;  %6172 = vmatmul.mubr.f32.gmra.mrb[88].mxu1 %v5750_v60  ;;  %v8298_v60 = vpack.c.bf16 %v5837_v37, %v5836_v27  ;;  %v8330_v8 = vpack.c.bf16 %v5869_v31, %v5868_v30  ;;  %v5838_v9 = vld [vmem:[%s11587_s21 + $0x250] sm:$0xff]  ;;  %v5857_v62 = vld [vmem:[%s11587_s21 + $0x2e8] sm:$0xff]  ;;  %v5872_v34 = vld [vmem:[%s11587_s21 + $0x360] sm:$0xff] }
0x12b9   :  { %v5737_v63 = vmax.f32 %v5339_v7, 0.0  ;;  %v5739_v2 = vmax.f32 %v5416_v49, 0.0  ;;  %8287 = vmatpush3.bf16.msra.mxu0 %v8286_v48  ;;  %8319 = vmatpush3.bf16.msra.mxu1 %v8318_v13  ;;  %v10932_v24 = vpop.f32.mrb[72].mxu0  ;;  %v10934_v3 = vpop.f32.mrb[76].mxu1  ;;  %v5855_v48 = vld [vmem:[%s11587_s21 + $0x2d8] sm:$0xff]  ;;  %v5886_v13 = vld [vmem:[%s11587_s21 + $0x3d0] sm:$0xff]  ;;  %v8304_v1 = vpack.c.bf16 %v5857_v62, %v5856_v61 }
0x12ba   :  { %v10942_v21 = vpop.f32.mrb[73].mxu0  ;;  %v10944_v17 = vpop.f32.mrb[77].mxu1  ;;  %8289 = vmatprep.subr.bf16.mxu0 %v8288_v50  ;;  %8321 = vmatprep.subr.bf16.mxu1 %v8320_v43  ;;  %v5839_v50 = vld [vmem:[%s11587_s21 + $0x258] sm:$0xff]  ;;  %v8300_v44 = vpack.c.bf16 %v5855_v48, %v5854_v52  ;;  %v8332_v7 = vpack.c.bf16 %v5887_v14, %v5886_v13  ;;  %v5870_v49 = vld [vmem:[%s11587_s21 + $0x350] sm:$0xff]  ;;  %v5873_v42 = vld [vmem:[%s11587_s21 + $0x368] sm:$0xff] }
0x12bb   :  { %6241 = vmatprep.mubr.f32.mxu0 %v5737_v63  ;;  %6316 = vmatprep.mubr.f32.mxu1 %v5739_v2  ;;  %v5888_v63 = vld [vmem:[%s11587_s21 + $0x3e0] sm:$0xff]  ;;  %v5889_v2 = vld [vmem:[%s11587_s21 + $0x3e8] sm:$0xff]  ;;  %v8302_v58 = vpack.c.bf16 %v5839_v50, %v5838_v9  ;;  %v8334_v20 = vpack.c.bf16 %v5871_v56, %v5870_v49  ;;  %v5890_v27 = vld [vmem:[%s11587_s21 + $0x3f0] sm:$0xff]  ;;  %v8338_v52 = vpack.c.bf16 %v5873_v42, %v5872_v34 }
0x12bc   :  { %v8336_v5 = vpack.c.bf16 %v5889_v2, %v5888_v63  ;;  %v5891_v37 = vld [vmem:[%s11587_s21 + $0x3f8] sm:$0xff]  ;;  %v5842_v48 = vld [vmem:[%s11587_s21 + $0x270] sm:$0xff]  ;;  %v5908_v49 = vld [vmem:[%s11587_s21 + $0x480] sm:$0xff] }
0x12bd   :  { %8291 = vmatpush3.bf16.msra.mxu0 %v8290_v4  ;;  %8323 = vmatpush3.bf16.msra.mxu1 %v8322_v45  ;;  %v10964_v11 = vpop.f32.mrb[74].mxu0  ;;  %v10966_v53 = vpop.f32.mrb[78].mxu1  ;;  %v5843_v13 = vld [vmem:[%s11587_s21 + $0x278] sm:$0xff]  ;;  %v5874_v14 = vld [vmem:[%s11587_s21 + $0x370] sm:$0xff]  ;;  %v5940_v56 = vld [vmem:[%s11587_s21 + $0x580] sm:$0xff] }
0x12be   :  { %v10974_v18 = vpop.f32.mrb[75].mxu0  ;;  %v10976_v15 = vpop.f32.mrb[79].mxu1  ;;  %8293 = vmatprep.subr.bf16.mxu0 %v8292_v22  ;;  %8325 = vmatprep.subr.bf16.mxu1 %v8324_v23  ;;  %v5840_v22 = vld [vmem:[%s11587_s21 + $0x260] sm:$0xff]  ;;  %v5841_v23 = vld [vmem:[%s11587_s21 + $0x268] sm:$0xff] }
0x12bf   :  { %v8306_v31 = vpack.c.bf16 %v5841_v23, %v5840_v22  ;;  %v5941_v61 = vld [vmem:[%s11587_s21 + $0x588] sm:$0xff]  ;;  %v5892_v63 = vld [vmem:[%s11587_s21 + $0x400] sm:$0xff] }
0x12c0   :  { %v11099_v62 = vld [vmem:[%s11588_s20 + $0x8] sm:$0xff]  ;;  %v5924_v23 = vld [vmem:[%s11587_s21 + $0x500] sm:$0xff] }
0x12c1   :  { %8295 = vmatpush3.bf16.msra.mxu0 %v8294_v54  ;;  %8327 = vmatpush3.bf16.msra.mxu1 %v8326_v41  ;;  %v10996_v32 = vpop.f32.mrb[76].mxu0  ;;  %v10998_v59 = vpop.f32.mrb[80].mxu1  ;;  %v5858_v54 = vld [vmem:[%s11587_s21 + $0x2f0] sm:$0xff]  ;;  %v5859_v41 = vld [vmem:[%s11587_s21 + $0x2f8] sm:$0xff]  ;;  %v5893_v2 = vld [vmem:[%s11587_s21 + $0x408] sm:$0xff] }
0x12c2   :  { %v11006_v43 = vpop.f32.mrb[77].mxu0  ;;  %v11008_v19 = vpop.f32.mrb[81].mxu1  ;;  %8297 = vmatprep.subr.bf16.mxu0 %v8296_v47  ;;  %8329 = vmatprep.subr.bf16.mxu1 %v8328_v12  ;;  %v5049_v47 = vrot.slane %v10836_v40, %v9627_v46  ;;  %v8308_v50 = vpack.c.bf16 %v5859_v41, %v5858_v54  ;;  %v8376_v54 = vpack.c.bf16 %v5941_v61, %v5940_v56  ;;  %v5911_v41 = vld [vmem:[%s11587_s21 + $0x498] sm:$0xff] }
0x12c4   :  { %v5337_v34 = vadd.f32 %v10905_v33, %v5049_v47  ;;  %v5345_v33 = vadd.f32 %v10942_v21, %v10872_v6  ;;  %v5343_v6 = vadd.f32 %v10932_v24, %v5049_v47  ;;  %v5927_v47 = vld [vmem:[%s11587_s21 + $0x518] sm:$0xff] }
0x12c5   :  { %8299 = vmatpush3.bf16.msra.mxu0 %v8298_v60  ;;  %8331 = vmatpush3.bf16.msra.mxu1 %v8330_v8  ;;  %v11028_v4 = vpop.f32.mrb[78].mxu0  ;;  %v11030_v45 = vpop.f32.mrb[82].mxu1  ;;  %v5057_v60 = vrot.slane %v10836_v40, %v9640_v57  ;;  %v5909_v40 = vld [vmem:[%s11587_s21 + $0x488] sm:$0xff] }
0x12c6   :  { %v11038_v35 = vpop.f32.mrb[79].mxu0  ;;  %v11040_v0 = vpop.f32.mrb[83].mxu1  ;;  %8301 = vmatprep.subr.bf16.mxu0 %v8300_v44  ;;  %8333 = vmatprep.subr.bf16.mxu1 %v8332_v7  ;;  %v8340_v44 = vpack.c.bf16 %v5891_v37, %v5890_v27  ;;  %v5875_v7 = vld [vmem:[%s11587_s21 + $0x378] sm:$0xff]  ;;  %v8344_v22 = vpack.c.bf16 %v5909_v40, %v5908_v49  ;;  %v5942_v27 = vld [vmem:[%s11587_s21 + $0x590] sm:$0xff]  ;;  %v5753_v21 = vmax.f32 %v5345_v33, 0.0  ;;  %v5945_v40 = vld [vmem:[%s11587_s21 + $0x5a8] sm:$0xff] }
0x12c7   :  { %v5414_v42 = vadd.f32 %v10907_v39, %v5057_v60  ;;  %v5943_v37 = vld [vmem:[%s11587_s21 + $0x598] sm:$0xff]  ;;  %v5422_v39 = vadd.f32 %v10944_v17, %v10891_v38  ;;  %v5420_v38 = vadd.f32 %v10934_v3, %v5057_v60  ;;  %v5926_v3 = vld [vmem:[%s11587_s21 + $0x510] sm:$0xff]  ;;  %v5912_v60 = vld [vmem:[%s11587_s21 + $0x4a0] sm:$0xff]  ;;  %v5752_v56 = vmax.f32 %v5343_v6, 0.0 }
0x12c8   :  { %v5916_v6 = vld [vmem:[%s11587_s21 + $0x4c0] sm:$0xff] }
0x12c9   :  { %8303 = vmatpush3.bf16.msra.mxu0 %v8302_v58  ;;  %8335 = vmatpush3.bf16.msra.mxu1 %v8334_v20  ;;  %v11062_v12 = vpop.f32.mrb[80].mxu0  ;;  %v11064_v30 = vpop.f32.mrb[84].mxu1  ;;  %v8310_v58 = vpack.c.bf16 %v5843_v13, %v5842_v48  ;;  %v8342_v20 = vpack.c.bf16 %v5875_v7, %v5874_v14  ;;  %v8346_v48 = vpack.c.bf16 %v5893_v2, %v5892_v63  ;;  %v5738_v7 = vmax.f32 %v5414_v42, 0.0  ;;  %v5929_v42 = vld [vmem:[%s11587_s21 + $0x528] sm:$0xff] }
0x12ca   :  { %v11077_v8 = vpop.f32.mrb[81].mxu0  ;;  %v11079_v9 = vpop.f32.mrb[85].mxu1  ;;  %8305 = vmatprep.subr.bf16.mxu0 %v8304_v1  ;;  %8337 = vmatprep.subr.bf16.mxu1 %v8336_v5  ;;  %v5925_v1 = vld [vmem:[%s11587_s21 + $0x508] sm:$0xff]  ;;  %v5910_v5 = vld [vmem:[%s11587_s21 + $0x490] sm:$0xff]  ;;  %v5755_v17 = vmax.f32 %v5422_v39, 0.0  ;;  %v5754_v61 = vmax.f32 %v5420_v38, 0.0  ;;  %v8382_v2 = vpack.c.bf16 %v5927_v47, %v5926_v3 }
0x12cb   :  { %v8378_v13 = vpack.c.bf16 %v5925_v1, %v5924_v23  ;;  %v8348_v14 = vpack.c.bf16 %v5911_v41, %v5910_v5  ;;  %v5915_v41 = vld [vmem:[%s11587_s21 + $0x4b8] sm:$0xff]  ;;  %v5917_v38 = vld [vmem:[%s11587_s21 + $0x4c8] sm:$0xff] }
0x12cc   :  { %v8360_v3 = vpack.c.bf16 %v5917_v38, %v5916_v6  ;;  %v5954_v6 = vld [vmem:[%s11587_s21 + $0x5f0] sm:$0xff]  ;;  %v5955_v38 = vld [vmem:[%s11587_s21 + $0x5f8] sm:$0xff] }
0x12cd   :  { %8307 = vmatpush3.bf16.msra.mxu0 %v8306_v31  ;;  %8339 = vmatpush3.bf16.msra.mxu1 %v8338_v52  ;;  %v11133_v31 = vrot.slane %v11099_v62, %v9425_v28  ;;  %v11137_v52 = vrot.slane %v11099_v62, %v9428_v29  ;;  %v5894_v28 = vld [vmem:[%s11587_s21 + $0x410] sm:$0xff]  ;;  %v5895_v29 = vld [vmem:[%s11587_s21 + $0x418] sm:$0xff] }
0x12ce   :  { %8309 = vmatprep.subr.bf16.mxu0 %v8308_v50  ;;  %8341 = vmatprep.subr.bf16.mxu1 %v8340_v44  ;;  %v8380_v50 = vpack.c.bf16 %v5943_v37, %v5942_v27  ;;  %v5736_v44 = vmax.f32 %v5337_v34, 0.0  ;;  %v8350_v63 = vpack.c.bf16 %v5895_v29, %v5894_v28  ;;  %v5928_v34 = vld [vmem:[%s11587_s21 + $0x520] sm:$0xff]  ;;  %v5946_v27 = vld [vmem:[%s11587_s21 + $0x5b0] sm:$0xff]  ;;  %v5947_v37 = vld [vmem:[%s11587_s21 + $0x5b8] sm:$0xff] }
0x12cf   :  { %v5493_v49 = vadd.f32 %v10974_v18, %v11133_v31  ;;  %v5570_v24 = vadd.f32 %v10976_v15, %v11137_v52  ;;  %v5913_v18 = vld [vmem:[%s11587_s21 + $0x4a8] sm:$0xff]  ;;  %v5944_v15 = vld [vmem:[%s11587_s21 + $0x5a0] sm:$0xff]  ;;  %v8386_v39 = vpack.c.bf16 %v5929_v42, %v5928_v34 }
0x12d0   :  { %v8352_v1 = vpack.c.bf16 %v5913_v18, %v5912_v60  ;;  %v8384_v5 = vpack.c.bf16 %v5945_v40, %v5944_v15  ;;  %v5948_v28 = vld [vmem:[%s11587_s21 + $0x5c0] sm:$0xff]  ;;  %v5949_v29 = vld [vmem:[%s11587_s21 + $0x5c8] sm:$0xff]  ;;  %v5918_v15 = vld [vmem:[%s11587_s21 + $0x4d0] sm:$0xff] }
0x12d1   :  { %8311 = vmatpush3.bf16.msra.mxu0 %v8310_v58  ;;  %8343 = vmatpush3.bf16.msra.mxu1 %v8342_v20  ;;  %v5896_v58 = vld [vmem:[%s11587_s21 + $0x420] sm:$0xff]  ;;  %v5897_v20 = vld [vmem:[%s11587_s21 + $0x428] sm:$0xff]  ;;  %v5743_v23 = vmax.f32 %v5570_v24, 0.0  ;;  %v8392_v47 = vpack.c.bf16 %v5949_v29, %v5948_v28  ;;  %v5919_v40 = vld [vmem:[%s11587_s21 + $0x4d8] sm:$0xff]  ;;  %v5065_v28 = vrot.slane %v11099_v62, %v9414_v25 }
0x12d2   :  { %8345 = vmatprep.subr.bf16.mxu0 %v8344_v22  ;;  %8377 = vmatprep.subr.bf16.mxu1 %v8376_v54  ;;  %v5741_v22 = vmax.f32 %v5493_v49, 0.0  ;;  %v5914_v54 = vld [vmem:[%s11587_s21 + $0x4b0] sm:$0xff]  ;;  %v8354_v33 = vpack.c.bf16 %v5897_v20, %v5896_v58  ;;  %v5900_v49 = vld [vmem:[%s11587_s21 + $0x440] sm:$0xff]  ;;  %v5901_v24 = vld [vmem:[%s11587_s21 + $0x448] sm:$0xff] }
0x12d3   :  { %v5932_v60 = vld [vmem:[%s11587_s21 + $0x540] sm:$0xff]  ;;  %v5933_v18 = vld [vmem:[%s11587_s21 + $0x548] sm:$0xff]  ;;  %v5902_v58 = vld [vmem:[%s11587_s21 + $0x450] sm:$0xff] }
0x12d4   :  { %6242 = vmatmul.mubr.f32.vlgmr.msra.gmra.mrb[86].mxu0 %v5736_v44  ;;  %6317 = vmatmul.mubr.f32.vlgmr.msra.gmra.mrb[90].mxu1 %v5738_v7  ;;  %v5930_v44 = vld [vmem:[%s11587_s21 + $0x530] sm:$0xff]  ;;  %v5931_v7 = vld [vmem:[%s11587_s21 + $0x538] sm:$0xff]  ;;  %v5920_v34 = vld [vmem:[%s11587_s21 + $0x4e0] sm:$0xff] }
0x12d5   :  { %6246 = vmatprep.mubr.f32.mxu0 %v5753_v21  ;;  %6321 = vmatprep.mubr.f32.mxu1 %v5755_v17  ;;  %v8390_v17 = vpack.c.bf16 %v5931_v7, %v5930_v44  ;;  %v5903_v20 = vld [vmem:[%s11587_s21 + $0x458] sm:$0xff]  ;;  %v5921_v42 = vld [vmem:[%s11587_s21 + $0x4e8] sm:$0xff]  ;;  %v5922_v44 = vld [vmem:[%s11587_s21 + $0x4f0] sm:$0xff] }
0x12d6   :  { %8347 = vmatpush3.bf16.msra.mxu0 %v8346_v48  ;;  %8379 = vmatpush3.bf16.msra.mxu1 %v8378_v13  ;;  %v5898_v48 = vld [vmem:[%s11587_s21 + $0x430] sm:$0xff]  ;;  %v5899_v13 = vld [vmem:[%s11587_s21 + $0x438] sm:$0xff] }
0x12d7   :  { %8349 = vmatprep.subr.bf16.mxu0 %v8348_v14  ;;  %8381 = vmatprep.subr.bf16.mxu1 %v8380_v50  ;;  %v8356_v14 = vpack.c.bf16 %v5915_v41, %v5914_v54  ;;  %v8388_v50 = vpack.c.bf16 %v5947_v37, %v5946_v27  ;;  %v8358_v21 = vpack.c.bf16 %v5899_v13, %v5898_v48  ;;  %v5952_v54 = vld [vmem:[%s11587_s21 + $0x5e0] sm:$0xff]  ;;  %v5953_v41 = vld [vmem:[%s11587_s21 + $0x5e8] sm:$0xff]  ;;  %v5923_v7 = vld [vmem:[%s11587_s21 + $0x4f8] sm:$0xff] }
0x12d8   :  { %6247 = vmatmul.mubr.f32.gmra.mrb[88].mxu0 %v5752_v56  ;;  %6322 = vmatmul.mubr.f32.gmra.mrb[92].mxu1 %v5754_v61  ;;  %v5950_v56 = vld [vmem:[%s11587_s21 + $0x5d0] sm:$0xff]  ;;  %v5951_v61 = vld [vmem:[%s11587_s21 + $0x5d8] sm:$0xff]  ;;  %v8366_v27 = vpack.c.bf16 %v5903_v20, %v5902_v58  ;;  %v8368_v48 = vpack.c.bf16 %v5921_v42, %v5920_v34  ;;  %v8400_v13 = vpack.c.bf16 %v5953_v41, %v5952_v54  ;;  %v5988_v20 = vld [vmem:[%s11587_s21 + $0x700] sm:$0xff] }
0x12d9   :  { %6391 = vmatprep.mubr.f32.mxu0 %v5741_v22  ;;  %6466 = vmatprep.mubr.f32.mxu1 %v5743_v23  ;;  %v8364_v22 = vpack.c.bf16 %v5919_v40, %v5918_v15  ;;  %v8396_v23 = vpack.c.bf16 %v5951_v61, %v5950_v56  ;;  %v8372_v25 = vpack.c.bf16 %v5923_v7, %v5922_v44  ;;  %v5973_v15 = vld [vmem:[%s11587_s21 + $0x688] sm:$0xff]  ;;  %v5956_v56 = vld [vmem:[%s11587_s21 + $0x600] sm:$0xff]  ;;  %v5975_v42 = vld [vmem:[%s11587_s21 + $0x698] sm:$0xff] }
0x12da   :  { %8351 = vmatpush3.bf16.msra.mxu0 %v8350_v63  ;;  %8383 = vmatpush3.bf16.msra.mxu1 %v8382_v2  ;;  %v8362_v63 = vpack.c.bf16 %v5901_v24, %v5900_v49  ;;  %v8394_v2 = vpack.c.bf16 %v5933_v18, %v5932_v60  ;;  %v5907_v49 = vld [vmem:[%s11587_s21 + $0x478] sm:$0xff]  ;;  %v5938_v24 = vld [vmem:[%s11587_s21 + $0x570] sm:$0xff]  ;;  %v5972_v18 = vld [vmem:[%s11587_s21 + $0x680] sm:$0xff] }
0x12db   :  { %8353 = vmatprep.subr.bf16.mxu0 %v8352_v1  ;;  %8385 = vmatprep.subr.bf16.mxu1 %v8384_v5  ;;  %v5934_v1 = vld [vmem:[%s11587_s21 + $0x550] sm:$0xff]  ;;  %v5935_v5 = vld [vmem:[%s11587_s21 + $0x558] sm:$0xff]  ;;  %v6005_v40 = vld [vmem:[%s11587_s21 + $0x788] sm:$0xff]  ;;  %v8408_v58 = vpack.c.bf16 %v5973_v15, %v5972_v18 }
0x12dc   :  { %v8398_v37 = vpack.c.bf16 %v5935_v5, %v5934_v1  ;;  %v5939_v60 = vld [vmem:[%s11587_s21 + $0x578] sm:$0xff]  ;;  %v5957_v61 = vld [vmem:[%s11587_s21 + $0x608] sm:$0xff]  ;;  %v5491_v1 = vadd.f32 %v10964_v11, %v5065_v28  ;;  %v6006_v54 = vld [vmem:[%s11587_s21 + $0x790] sm:$0xff]  ;;  %v5499_v11 = vadd.f32 %v11006_v43, %v11133_v31  ;;  %v5497_v43 = vadd.f32 %v10996_v32, %v5065_v28 }
0x12dd   :  { %v6007_v41 = vld [vmem:[%s11587_s21 + $0x798] sm:$0xff]  ;;  %v5992_v18 = vld [vmem:[%s11587_s21 + $0x720] sm:$0xff]  ;;  %v5993_v15 = vld [vmem:[%s11587_s21 + $0x728] sm:$0xff] }
0x12de   :  { %8355 = vmatpush3.bf16.msra.mxu0 %v8354_v33  ;;  %8387 = vmatpush3.bf16.msra.mxu1 %v8386_v39  ;;  %v5904_v33 = vld [vmem:[%s11587_s21 + $0x460] sm:$0xff]  ;;  %v5905_v39 = vld [vmem:[%s11587_s21 + $0x468] sm:$0xff]  ;;  %v5757_v31 = vmax.f32 %v5499_v11, 0.0  ;;  %v5991_v7 = vld [vmem:[%s11587_s21 + $0x718] sm:$0xff]  ;;  %v5756_v28 = vmax.f32 %v5497_v43, 0.0 }
0x12df   :  { %8357 = vmatprep.subr.bf16.mxu0 %v8356_v14  ;;  %8389 = vmatprep.subr.bf16.mxu1 %v8388_v50  ;;  %v5936_v14 = vld [vmem:[%s11587_s21 + $0x560] sm:$0xff]  ;;  %v5937_v50 = vld [vmem:[%s11587_s21 + $0x568] sm:$0xff]  ;;  %v8370_v29 = vpack.c.bf16 %v5905_v39, %v5904_v33  ;;  %v8410_v33 = vpack.c.bf16 %v5957_v61, %v5956_v56  ;;  %v6010_v56 = vld [vmem:[%s11587_s21 + $0x7b0] sm:$0xff] }
0x12e0   :  { %v6011_v61 = vld [vmem:[%s11587_s21 + $0x7b8] sm:$0xff]  ;;  %v5982_v43 = vld [vmem:[%s11587_s21 + $0x6d0] sm:$0xff] }
0x12e2   :  { %8359 = vmatpush3.bf16.msra.mxu0 %v8358_v21  ;;  %8391 = vmatpush3.bf16.msra.mxu1 %v8390_v17  ;;  %v8402_v21 = vpack.c.bf16 %v5937_v50, %v5936_v14  ;;  %v5906_v17 = vld [vmem:[%s11587_s21 + $0x470] sm:$0xff]  ;;  %v5740_v14 = vmax.f32 %v5491_v1, 0.0 }
0x12e3   :  { %8361 = vmatprep.subr.bf16.mxu0 %v8360_v3  ;;  %8393 = vmatprep.subr.bf16.mxu1 %v8392_v47  ;;  %v5073_v3 = vrot.slane %v11099_v62, %v9417_v26  ;;  %v8404_v47 = vpack.c.bf16 %v5955_v38, %v5954_v6  ;;  %v6004_v26 = vld [vmem:[%s11587_s21 + $0x780] sm:$0xff]  ;;  %v6009_v38 = vld [vmem:[%s11587_s21 + $0x7a8] sm:$0xff]  ;;  %v5994_v1 = vld [vmem:[%s11587_s21 + $0x730] sm:$0xff] }
0x12e4   :  { %v8440_v34 = vpack.c.bf16 %v6005_v40, %v6004_v26  ;;  %v5976_v6 = vld [vmem:[%s11587_s21 + $0x6a0] sm:$0xff]  ;;  %v5978_v26 = vld [vmem:[%s11587_s21 + $0x6b0] sm:$0xff]  ;;  %v5979_v40 = vld [vmem:[%s11587_s21 + $0x6b8] sm:$0xff] }
0x12e5   :  { %v5568_v5 = vadd.f32 %v10966_v53, %v5073_v3  ;;  %v5576_v53 = vadd.f32 %v11008_v19, %v11137_v52  ;;  %v5574_v19 = vadd.f32 %v10998_v59, %v5073_v3  ;;  %v5990_v59 = vld [vmem:[%s11587_s21 + $0x710] sm:$0xff] }
0x12e6   :  { %8363 = vmatpush3.bf16.msra.mxu0 %v8362_v63  ;;  %8395 = vmatpush3.bf16.msra.mxu1 %v8394_v2  ;;  %v8374_v63 = vpack.c.bf16 %v5907_v49, %v5906_v17  ;;  %v8406_v2 = vpack.c.bf16 %v5939_v60, %v5938_v24  ;;  %v8446_v17 = vpack.c.bf16 %v5991_v7, %v5990_v59  ;;  %v5960_v49 = vld [vmem:[%s11587_s21 + $0x620] sm:$0xff]  ;;  %v5961_v24 = vld [vmem:[%s11587_s21 + $0x628] sm:$0xff] }
0x12e7   :  { %8365 = vmatprep.subr.bf16.mxu0 %v8364_v22  ;;  %8397 = vmatprep.subr.bf16.mxu1 %v8396_v23  ;;  %v5989_v22 = vld [vmem:[%s11587_s21 + $0x708] sm:$0xff]  ;;  %v5974_v23 = vld [vmem:[%s11587_s21 + $0x690] sm:$0xff]  ;;  %v5742_v50 = vmax.f32 %v5568_v5, 0.0  ;;  %v5759_v52 = vmax.f32 %v5576_v53, 0.0  ;;  %v5995_v5 = vld [vmem:[%s11587_s21 + $0x738] sm:$0xff] }
0x12e8   :  { %v8442_v39 = vpack.c.bf16 %v5989_v22, %v5988_v20  ;;  %v5963_v20 = vld [vmem:[%s11587_s21 + $0x638] sm:$0xff]  ;;  %v8420_v22 = vpack.c.bf16 %v5979_v40, %v5978_v26  ;;  %v8454_v53 = vpack.c.bf16 %v5995_v5, %v5994_v1  ;;  %v6018_v26 = vld [vmem:[%s11587_s21 + $0x7f0] sm:$0xff] }
0x12e9   :  { %v6019_v40 = vld [vmem:[%s11587_s21 + $0x7f8] sm:$0xff] }
0x12ea   :  { %8367 = vmatpush3.bf16.msra.mxu0 %v8366_v27  ;;  %8399 = vmatpush3.bf16.msra.mxu1 %v8398_v37  ;;  %v11349_v27 = vrot.slane %v11099_v62, %v9445_v36  ;;  %v11353_v37 = vrot.slane %v11099_v62, %v9466_v51  ;;  %v5958_v36 = vld [vmem:[%s11587_s21 + $0x610] sm:$0xff]  ;;  %v5959_v51 = vld [vmem:[%s11587_s21 + $0x618] sm:$0xff] }
0x12eb   :  { %8369 = vmatprep.subr.bf16.mxu0 %v8368_v48  ;;  %8401 = vmatprep.subr.bf16.mxu1 %v8400_v13  ;;  %v8412_v48 = vpack.c.bf16 %v5975_v42, %v5974_v23  ;;  %v8444_v13 = vpack.c.bf16 %v6007_v41, %v6006_v54  ;;  %v8452_v23 = vpack.c.bf16 %v6011_v61, %v6010_v56  ;;  %v5981_v42 = vld [vmem:[%s11587_s21 + $0x6c8] sm:$0xff]  ;;  %v6012_v54 = vld [vmem:[%s11587_s21 + $0x7c0] sm:$0xff]  ;;  %v6003_v1 = vld [vmem:[%s11587_s21 + $0x778] sm:$0xff] }
0x12ec   :  { %v5647_v44 = vadd.f32 %v11038_v35, %v11349_v27  ;;  %v5724_v32 = vadd.f32 %v11040_v0, %v11353_v37  ;;  %v5977_v35 = vld [vmem:[%s11587_s21 + $0x6a8] sm:$0xff]  ;;  %v6008_v0 = vld [vmem:[%s11587_s21 + $0x7a0] sm:$0xff]  ;;  %v5081_v56 = vrot.slane %v11099_v62, %v9627_v46  ;;  %v6002_v46 = vld [vmem:[%s11587_s21 + $0x770] sm:$0xff] }
0x12ed   :  { %v8448_v60 = vpack.c.bf16 %v6009_v38, %v6008_v0  ;;  %v6013_v41 = vld [vmem:[%s11587_s21 + $0x7c8] sm:$0xff]  ;;  %v5984_v0 = vld [vmem:[%s11587_s21 + $0x6e0] sm:$0xff] }
0x12ee   :  { %8371 = vmatpush3.bf16.msra.mxu0 %v8370_v29  ;;  %8403 = vmatpush3.bf16.msra.mxu1 %v8402_v21  ;;  %v5758_v29 = vmax.f32 %v5574_v19, 0.0  ;;  %v8414_v21 = vpack.c.bf16 %v5959_v51, %v5958_v36  ;;  %v5745_v3 = vmax.f32 %v5647_v44, 0.0  ;;  %v5983_v19 = vld [vmem:[%s11587_s21 + $0x6d8] sm:$0xff]  ;;  %v6014_v36 = vld [vmem:[%s11587_s21 + $0x7d0] sm:$0xff]  ;;  %v5985_v38 = vld [vmem:[%s11587_s21 + $0x6e8] sm:$0xff] }
0x12ef   :  { %8373 = vmatprep.subr.bf16.mxu0 %v8372_v25  ;;  %8405 = vmatprep.subr.bf16.mxu1 %v8404_v47  ;;  %v5747_v25 = vmax.f32 %v5724_v32, 0.0  ;;  %v8416_v47 = vpack.c.bf16 %v5977_v35, %v5976_v6  ;;  %v6015_v51 = vld [vmem:[%s11587_s21 + $0x7d8] sm:$0xff]  ;;  %v5966_v44 = vld [vmem:[%s11587_s21 + $0x650] sm:$0xff]  ;;  %v8428_v59 = vpack.c.bf16 %v5983_v19, %v5982_v43 }
0x12f0   :  { %v5967_v32 = vld [vmem:[%s11587_s21 + $0x658] sm:$0xff]  ;;  %v8460_v7 = vpack.c.bf16 %v6015_v51, %v6014_v36  ;;  %v5998_v6 = vld [vmem:[%s11587_s21 + $0x750] sm:$0xff] }
0x12f1   :  { %v5999_v35 = vld [vmem:[%s11587_s21 + $0x758] sm:$0xff] }
0x12f2   :  { %8375 = vmatpush3.bf16.msra.mxu0 %v8374_v63  ;;  %8407 = vmatpush3.bf16.msra.mxu1 %v8406_v2  ;;  %v8418_v63 = vpack.c.bf16 %v5961_v24, %v5960_v49  ;;  %v8450_v2 = vpack.c.bf16 %v5993_v15, %v5992_v18  ;;  %v5968_v49 = vld [vmem:[%s11587_s21 + $0x660] sm:$0xff]  ;;  %v5969_v24 = vld [vmem:[%s11587_s21 + $0x668] sm:$0xff]  ;;  %v5986_v18 = vld [vmem:[%s11587_s21 + $0x6f0] sm:$0xff] }
0x12f3   :  { %8409 = vmatprep.subr.bf16.mxu0 %v8408_v58  ;;  %8441 = vmatprep.subr.bf16.mxu1 %v8440_v34  ;;  %v5962_v58 = vld [vmem:[%s11587_s21 + $0x630] sm:$0xff]  ;;  %v5980_v34 = vld [vmem:[%s11587_s21 + $0x6c0] sm:$0xff]  ;;  %v5987_v15 = vld [vmem:[%s11587_s21 + $0x6f8] sm:$0xff]  ;;  %v8434_v61 = vpack.c.bf16 %v5969_v24, %v5968_v49 }
0x12f4   :  { %v8422_v11 = vpack.c.bf16 %v5963_v20, %v5962_v58  ;;  %v5089_v58 = vrot.slane %v11099_v62, %v9640_v57  ;;  %v8436_v20 = vpack.c.bf16 %v5987_v15, %v5986_v18  ;;  %v8470_v57 = vpack.c.bf16 %v6003_v1, %v6002_v46 }
0x12f5   :  { %6392 = vmatmul.mubr.f32.vlgmr.msra.gmra.mrb[90].mxu0 %v5740_v14  ;;  %6467 = vmatmul.mubr.f32.vlgmr.msra.gmra.mrb[94].mxu1 %v5742_v50  ;;  %v5996_v14 = vld [vmem:[%s11587_s21 + $0x740] sm:$0xff]  ;;  %v5997_v50 = vld [vmem:[%s11587_s21 + $0x748] sm:$0xff]  ;;  %v5645_v62 = vadd.f32 %v11028_v4, %v5081_v56 }
0x12f6   :  { %6396 = vmatprep.mubr.f32.mxu0 %v5757_v31  ;;  %6471 = vmatprep.mubr.f32.mxu1 %v5759_v52  ;;  %v8458_v52 = vpack.c.bf16 %v5997_v50, %v5996_v14 }
0x12f7   :  { %8411 = vmatpush3.bf16.msra.mxu0 %v8410_v33  ;;  %8443 = vmatpush3.bf16.msra.mxu1 %v8442_v39  ;;  %v5964_v33 = vld [vmem:[%s11587_s21 + $0x640] sm:$0xff]  ;;  %v5965_v39 = vld [vmem:[%s11587_s21 + $0x648] sm:$0xff] }
0x12f8   :  { %8413 = vmatprep.subr.bf16.mxu0 %v8412_v48  ;;  %8445 = vmatprep.subr.bf16.mxu1 %v8444_v13  ;;  %v8424_v48 = vpack.c.bf16 %v5981_v42, %v5980_v34  ;;  %v8456_v13 = vpack.c.bf16 %v6013_v41, %v6012_v54  ;;  %v8426_v31 = vpack.c.bf16 %v5965_v39, %v5964_v33  ;;  %v5744_v41 = vmax.f32 %v5645_v62, 0.0 }
0x12f9   :  { %6397 = vmatmul.mubr.f32.gmra.mrb[92].mxu0 %v5756_v28  ;;  %6472 = vmatmul.mubr.f32.gmra.mrb[96].mxu1 %v5758_v29  ;;  %v6016_v28 = vld [vmem:[%s11587_s21 + $0x7e0] sm:$0xff]  ;;  %v6017_v29 = vld [vmem:[%s11587_s21 + $0x7e8] sm:$0xff]  ;;  %v5722_v34 = vadd.f32 %v11030_v45, %v5089_v58  ;;  %v5653_v42 = vadd.f32 %v11077_v8, %v11349_v27  ;;  %v5730_v54 = vadd.f32 %v11079_v9, %v11353_v37 }
0x12fa   :  { %6541 = vmatprep.mubr.f32.mxu0 %v5745_v3  ;;  %6616 = vmatprep.mubr.f32.mxu1 %v5747_v25  ;;  %v8432_v3 = vpack.c.bf16 %v5985_v38, %v5984_v0  ;;  %v8464_v25 = vpack.c.bf16 %v6017_v29, %v6016_v28  ;;  %v5728_v33 = vadd.f32 %v11064_v30, %v5089_v58 }
0x12fb   :  { %8415 = vmatpush3.bf16.msra.mxu0 %v8414_v21  ;;  %8447 = vmatpush3.bf16.msra.mxu1 %v8446_v17  ;;  %v8430_v21 = vpack.c.bf16 %v5967_v32, %v5966_v44  ;;  %v8462_v17 = vpack.c.bf16 %v5999_v35, %v5998_v6  ;;  %v5761_v39 = vmax.f32 %v5653_v42, 0.0  ;;  %v5763_v4 = vmax.f32 %v5730_v54, 0.0 }
0x12fc   :  { %8417 = vmatprep.subr.bf16.mxu0 %v8416_v47  ;;  %8449 = vmatprep.subr.bf16.mxu1 %v8448_v60  ;;  %v6000_v47 = vld [vmem:[%s11587_s21 + $0x760] sm:$0xff]  ;;  %v6001_v60 = vld [vmem:[%s11587_s21 + $0x768] sm:$0xff] }
0x12ff   :  { %8419 = vmatpush3.bf16.msra.mxu0 %v8418_v63  ;;  %8451 = vmatpush3.bf16.msra.mxu1 %v8450_v2  ;;  %v8466_v63 = vpack.c.bf16 %v6001_v60, %v6000_v47  ;;  %v5970_v2 = vld [vmem:[%s11587_s21 + $0x670] sm:$0xff] }
0x1300   :  { %8421 = vmatprep.subr.bf16.mxu0 %v8420_v22  ;;  %8453 = vmatprep.subr.bf16.mxu1 %v8452_v23  ;;  %v8468_v22 = vpack.c.bf16 %v6019_v40, %v6018_v26  ;;  %v5971_v23 = vld [vmem:[%s11587_s21 + $0x678] sm:$0xff] }
0x1301   :  { %v8438_v5 = vpack.c.bf16 %v5971_v23, %v5970_v2 }
0x1303   :  { %8423 = vmatpush3.bf16.msra.mxu0 %v8422_v11  ;;  %8455 = vmatpush3.bf16.msra.mxu1 %v8454_v53  ;;  %v5746_v11 = vmax.f32 %v5722_v34, 0.0  ;;  %v5651_v53 = vadd.f32 %v11062_v12, %v5081_v56  ;;  %v6879_v12 = vld [vmem:[%s11589_s22] ss:$0 sm:$0xff] }
0x1304   :  { %8425 = vmatprep.subr.bf16.mxu0 %v8424_v48  ;;  %8457 = vmatprep.subr.bf16.mxu1 %v8456_v13  ;;  %v5762_v48 = vmax.f32 %v5728_v33, 0.0 }
0x1305   :  { %v5760_v45 = vmax.f32 %v5651_v53, 0.0 }
0x1307   :  { %8427 = vmatpush3.bf16.msra.mxu0 %v8426_v31  ;;  %8459 = vmatpush3.bf16.msra.mxu1 %v8458_v52 }
0x1308   :  { %8429 = vmatprep.subr.bf16.mxu0 %v8428_v59  ;;  %8461 = vmatprep.subr.bf16.mxu1 %v8460_v7 }
0x130b   :  { %8431 = vmatpush3.bf16.msra.mxu0 %v8430_v21  ;;  %8463 = vmatpush3.bf16.msra.mxu1 %v8462_v17 }
0x130c   :  { %8433 = vmatprep.subr.bf16.mxu0 %v8432_v3  ;;  %8465 = vmatprep.subr.bf16.mxu1 %v8464_v25 }
0x130f   :  { %8435 = vmatpush3.bf16.msra.mxu0 %v8434_v61  ;;  %8467 = vmatpush3.bf16.msra.mxu1 %v8466_v63 }
0x1310   :  { %8437 = vmatprep.subr.bf16.mxu0 %v8436_v20  ;;  %8469 = vmatprep.subr.bf16.mxu1 %v8468_v22 }
0x1313   :  { %8439 = vmatpush3.bf16.msra.mxu0 %v8438_v5  ;;  %8471 = vmatpush3.bf16.msra.mxu1 %v8470_v57 }
0x1316   :  { %6542 = vmatmul.mubr.f32.vlgmr.msra.gmra.mrb[94].mxu0 %v5744_v41  ;;  %6617 = vmatmul.mubr.f32.vlgmr.msra.gmra.mrb[98].mxu1 %v5746_v11 }
0x1317   :  { %6546 = vmatprep.mubr.f32.mxu0 %v5761_v39  ;;  %6621 = vmatprep.mubr.f32.mxu1 %v5763_v4 }
0x131a   :  { %6547 = vmatmul.mubr.f32.gmra.mrb[96].mxu0 %v5760_v45  ;;  %6622 = vmatmul.mubr.f32.gmra.mrb[100].mxu1 %v5762_v48 }
0x131b   :  { %7797 = vmatprep.mubr.msk.f32.mxu0 %vm8572_vm1, %v8569_v10 }
0x1387   :  { %v7308_v8 = vpop.f32.mrb[82].mxu0  ;;  %v7346_v9 = vpop.f32.mrb[86].mxu1 }
0x1388   :  { %v7309_v30 = vpop.f32.mrb[83].mxu0  ;;  %v7347_v27 = vpop.f32.mrb[87].mxu1 }
0x1389   :  { %v7310_v37 = vadd.f32 %v7309_v30, %v7308_v8  ;;  %v7348_v13 = vadd.f32 %v7347_v27, %v7346_v9 }
0x138b   :  { %v6094_v14 = vadd.f32 %v7310_v37, %v6879_v12  ;;  %v7311_v50 = vpop.f32.mrb[84].mxu0  ;;  %v7349_v43 = vpop.f32.mrb[88].mxu1 }
0x138c   :  { %v7312_v19 = vpop.f32.mrb[85].mxu0  ;;  %v7350_v36 = vpop.f32.mrb[89].mxu1 }
0x138d   :  { %v6169_v51 = vadd.f32 %v7348_v13, %v6094_v14  ;;  %v7313_v31 = vadd.f32 %v7312_v19, %v7311_v50  ;;  %v7351_v52 = vadd.f32 %v7350_v36, %v7349_v43 }
0x138f   :  { %v6099_v44 = vadd.f32 %v7313_v31, %v6879_v12 }
0x1391   :  { %v6174_v10 = vadd.f32 %v7351_v52, %v6099_v44 }
0x13a7   :  { %v7384_v32 = vpop.f32.mrb[86].mxu0  ;;  %v7422_v59 = vpop.f32.mrb[90].mxu1 }
0x13a8   :  { %v7385_v7 = vpop.f32.mrb[87].mxu0  ;;  %v7423_v6 = vpop.f32.mrb[91].mxu1 }
0x13a9   :  { %v7386_v35 = vadd.f32 %v7385_v7, %v7384_v32  ;;  %v7424_v0 = vadd.f32 %v7423_v6, %v7422_v59  ;;  %v6688_v32 = vld [vmem:[%s11590_s25 + $0x8] sm:$0xff]  ;;  %v6689_v59 = vld [vmem:[%s11590_s25 + $0x10] sm:$0xff]  ;;  %v6690_v6 = vld [vmem:[%s11590_s25 + $0x18] sm:$0xff] }
0x13ab   :  { %v6244_v38 = vadd.f32 %v7386_v35, %v6169_v51  ;;  %v7387_v28 = vpop.f32.mrb[88].mxu0  ;;  %v7425_v29 = vpop.f32.mrb[92].mxu1  ;;  %v8476_v35 = vpack.c.bf16 %v6690_v6, %v6689_v59 }
0x13ac   :  { %v7388_v21 = vpop.f32.mrb[89].mxu0  ;;  %v7426_v17 = vpop.f32.mrb[93].mxu1 }
0x13ad   :  { %v6319_v49 = vadd.f32 %v7424_v0, %v6244_v38  ;;  %v7389_v24 = vadd.f32 %v7388_v21, %v7387_v28  ;;  %v7427_v3 = vadd.f32 %v7426_v17, %v7425_v29  ;;  %v32_v0 = vstv %s11591_s26 }
0x13ae   :  { %33 = vst [vmem:[#allocation2] sm:$0x1] %v32_v0 }
0x13af   :  { %v6249_v25 = vadd.f32 %v7389_v24, %v6174_v10  ;;  %v8579_v10 = vmov 0.0|0.0  }
0x13b0   :  { %8472 = vmatprep.subr.bf16.mxu0 %v8579_v10 }
0x13b1   :  { %v6324_v47 = vadd.f32 %v7427_v3, %v6249_v25  ;;  %v6880_v3 = vld [vmem:[%s11592_s23] ss:$0 sm:$0xff] }
0x13c8   :  { %v7460_v60 = vpop.f32.mrb[90].mxu0  ;;  %v7498_v18 = vpop.f32.mrb[94].mxu1 }
0x13c9   :  { %v7461_v15 = vpop.f32.mrb[91].mxu0  ;;  %v7499_v26 = vpop.f32.mrb[95].mxu1 }
0x13ca   :  { %v7462_v40 = vadd.f32 %v7461_v15, %v7460_v60  ;;  %v7500_v56 = vadd.f32 %v7499_v26, %v7498_v18 }
0x13cc   :  { %v6394_v61 = vadd.f32 %v7462_v40, %v6319_v49  ;;  %v7463_v63 = vpop.f32.mrb[92].mxu0  ;;  %v7501_v2 = vpop.f32.mrb[96].mxu1 }
0x13cd   :  { %v7464_v58 = vpop.f32.mrb[93].mxu0  ;;  %v7502_v20 = vpop.f32.mrb[97].mxu1 }
0x13ce   :  { %v6469_v22 = vadd.f32 %v7500_v56, %v6394_v61  ;;  %v7465_v23 = vadd.f32 %v7464_v58, %v7463_v63  ;;  %v7503_v46 = vadd.f32 %v7502_v20, %v7501_v2 }
0x13d0   :  { %v6399_v1 = vadd.f32 %v7465_v23, %v6324_v47  ;;  %v6881_v47 = vld [vmem:[%s11593_s24] ss:$0 sm:$0xff] }
0x13d2   :  { %v6474_v5 = vadd.f32 %v7503_v46, %v6399_v1 }
0x13e9   :  { %v7536_v57 = vpop.f32.mrb[94].mxu0  ;;  %v7574_v62 = vpop.f32.mrb[98].mxu1 }
0x13ea   :  { %v7537_v34 = vpop.f32.mrb[95].mxu0  ;;  %v7575_v42 = vpop.f32.mrb[99].mxu1 }
0x13eb   :  { %v7538_v54 = vadd.f32 %v7537_v34, %v7536_v57  ;;  %v7576_v41 = vadd.f32 %v7575_v42, %v7574_v62 }
0x13ed   :  { %v6544_v11 = vadd.f32 %v7538_v54, %v6469_v22  ;;  %v7539_v53 = vpop.f32.mrb[96].mxu0  ;;  %v7577_v33 = vpop.f32.mrb[100].mxu1 }
0x13ee   :  { %v7540_v39 = vpop.f32.mrb[97].mxu0  ;;  %v7578_v4 = vpop.f32.mrb[101].mxu1 }
0x13ef   :  { %v6619_v45 = vadd.f32 %v7576_v41, %v6544_v11  ;;  %v7541_v48 = vadd.f32 %v7540_v39, %v7539_v53  ;;  %v7579_v8 = vadd.f32 %v7578_v4, %v7577_v33  ;;  %v6882_v41 = vld [vmem:[#allocation2] ss:$0 sm:$0xff] }
0x13f1   :  { %v6549_v9 = vadd.f32 %v7541_v48, %v6474_v5  ;;  %v6627_v12 = vadd.f32 %v6619_v45, %v10473_v16 }
0x13f3   :  { %v6624_v30 = vadd.f32 %v7579_v8, %v6549_v9  ;;  %v6631_v27 = vsel %vm101_vm0, %v6627_v12, 0.0 }
0x13f4   :  { %6632 = vadd.xlane.f32.xlu1 %v6631_v27 }
0x13f5   :  { %v6628_v37 = vadd.f32 %v6624_v30, %v10504_v55  ;;  %v6687_v55 = vld [vmem:[%s11590_s25] sm:$0xff] }
0x13f6   :  { %v8473_v7 = vpack.c.bf16 %v6688_v32, %v6687_v55 }
0x13f7   :  { %v6634_v13 = vsel %vm101_vm0, %v6628_v37, 0.0 }
0x13f8   :  { %6635 = vadd.xlane.f32.xlu0 %v6634_v13  ;;  %8474 = vmatpush3.bf16.msra.mxu0 %v8473_v7 }
0x13f9   :  { %8475 = vmatprep.subr.bf16.mxu0 %v8579_v10 }
0x13fc   :  { %8477 = vmatpush3.bf16.msra.mxu0 %v8476_v35 }
0x1481   :  { %v6633_v14 = vpop.xlane.xlu1 %6632 }
0x1482   :  { %v6637_v50 = vmul.f32 0.03125, %v6633_v14 }
0x1484   :  { %v6639_v43 = vsub.f32 %v6627_v12, %v6637_v50 }
0x1485   :  { %v6636_v19 = vpop.xlane.xlu0 %6635 }
0x1486   :  { %v6638_v36 = vmul.f32 0.03125, %v6636_v19  ;;  %v6641_v51 = vmul.f32 %v6639_v43, %v6639_v43 }
0x1488   :  { %v6640_v31 = vsub.f32 %v6628_v37, %v6638_v36  ;;  %v6643_v52 = vsel %vm101_vm0, %v6641_v51, 0.0 }
0x1489   :  { %6644 = vadd.xlane.f32.xlu1 %v6643_v52 }
0x148a   :  { %v6642_v16 = vmul.f32 %v6640_v31, %v6640_v31 }
0x148c   :  { %v6646_v44 = vsel %vm101_vm0, %v6642_v16, 0.0 }
0x148d   :  { %6647 = vadd.xlane.f32.xlu0 %v6646_v44 }
0x1516   :  { %v6645_v38 = vpop.xlane.xlu1 %6644 }
0x1517   :  { %v6649_v28 = vmul.f32 0.03125, %v6645_v38 }
0x1519   :  { %v6651_v29 = vadd.f32 1e-05, %v6649_v28 }
0x151a   :  { %v6648_v21 = vpop.xlane.xlu0 %6647 }
0x151b   :  { %8565 = vrsqrt.f32 %v6651_v29  ;;  %v6650_v17 = vmul.f32 0.03125, %v6648_v21 }
0x151d   :  { %v6652_v49 = vadd.f32 1e-05, %v6650_v17 }
0x151f   :  { %8567 = vrsqrt.f32 %v6652_v49 }
0x1525   :  { %v8566_v24 = vpop.eup %8565 }
0x1526   :  { %v6655_v25 = vmul.f32 %v8566_v24, %v6639_v43 }
0x1528   :  { %v6663_v60 = vmul.f32 %v6880_v3, %v6655_v25 }
0x1529   :  { %v8568_v18 = vpop.eup %8567 }
0x152a   :  { %v6671_v15 = vadd.f32 %v6881_v47, %v6663_v60  ;;  %v6656_v26 = vmul.f32 %v8568_v18, %v6640_v31 }
0x152c   :  { %v6673_v40 = vsel %vm101_vm0, %v6671_v15, -inf  ;;  %v6664_v56 = vmul.f32 %v6880_v3, %v6656_v26 }
0x152d   :  { %v6674_v61 = vrot.slane %v6673_v40, 4 }
0x152e   :  { %v6672_v63 = vadd.f32 %v6881_v47, %v6664_v56 }
0x152f   :  { %v6675_v2 = vmax.f32 %v6673_v40, %v6674_v61 }
0x1530   :  { %v6680_v58 = vsel %vm101_vm0, %v6672_v63, -inf }
0x1531   :  { %v6681_v20 = vrot.slane %v6680_v58, 4  ;;  %v6676_v22 = vrot.slane %v6675_v2, 2 }
0x1533   :  { %v6677_v23 = vmax.f32 %v6675_v2, %v6676_v22  ;;  %v6682_v46 = vmax.f32 %v6680_v58, %v6681_v20 }
0x1535   :  { %v6683_v1 = vrot.slane %v6682_v46, 2  ;;  %v6678_v5 = vrot.slane %v6677_v23, 1 }
0x1537   :  { %v6684_v57 = vmax.f32 %v6682_v46, %v6683_v1  ;;  %v6679_v34 = vmax.f32 %v6677_v23, %v6678_v5 }
0x1539   :  { %v6685_v62 = vrot.slane %v6684_v57, 1 }
0x153b   :  { %v6686_v42 = vmax.f32 %v6684_v57, %v6685_v62 }
0x153d   :  { %v6701_v54 = vsel %vm6700_vm5, %v6686_v42, %v6679_v34 }
0x153e   :  { %7798 = vmatmul.mubr.msk.f32.vlgmr.msra.gmra.mrb[98].mxu0 %vm101_vm0, %v6701_v54 }
0x1611   :  { %v6770_v11 = vpop.f32.mrb[98].mxu0 }
0x1612   :  { %v6771_v53 = vadd.f32 %v6882_v41, %v6770_v11  ;;  %v7799_v33 = vpop.f32.mrb[99].mxu0 }
0x1614   :  { %6775 = vst.msk [vmem:[%s11594_s27] sm:$0x3] %vm6774_vm6, %v6771_v53 }

</bundles_post_ra>
